<compile_context>
chip_gen: v7x
topology: tpu7x:2x2x1
jax: 0.10.0
libtpu: 0.0.40
codegen_flags: <defaults>
</compile_context>

<pallas_src>
import functools

import jax
import jax.numpy as jnp
from jax import lax
from jax.experimental import pallas as pl
from jax.experimental.pallas import tpu as pltpu


def _conv_stats_kernel(x_ref, w_ref, y_ref, sum_ref, ssq_ref, *, tile_rows, W):
    # x_ref   : (1, H+2, W+2, Cin) bf16  -- padded NHWC image, resident per n
    # w_ref   : (9, Cin, Cout)     bf16  -- 3x3 taps, tap-major
    # y_ref   : (1, Cout, tile_rows*W) bf16 -- conv output tile, NCHW-flattened
    # sum_ref / ssq_ref : (1, Cout, 1) f32 -- per-image partial stats,
    #                                         accumulated over the row-tile axis
    r = pl.program_id(1)

    @pl.when(r == 0)
    def _():
        sum_ref[...] = jnp.zeros_like(sum_ref)
        ssq_ref[...] = jnp.zeros_like(ssq_ref)

    cin = w_ref.shape[1]
    row0 = r * tile_rows

    acc = None
    for t in range(9):                      # static unroll: 9 accumulating MXU dots
        dy, dx = t // 3, t % 3
        tap = x_ref[0, pl.ds(row0 + dy, tile_rows), dx:dx + W, :]
        tap = tap.reshape(tile_rows * W, cin)          # merge leading dims only
        d = jnp.dot(tap, w_ref[t], preferred_element_type=jnp.float32)
        acc = d if acc is None else acc + d            # (tile_rows*W, Cout) f32

    acc_t = acc.T                                      # (Cout, tile_rows*W): lane-dense
    y_ref[0] = acc_t.astype(y_ref.dtype)
    sum_ref[0] += jnp.sum(acc_t, axis=1, keepdims=True)
    ssq_ref[0] += jnp.sum(acc_t * acc_t, axis=1, keepdims=True)


def _scale_shift_relu_kernel(y_ref, sc_ref, sh_ref, o_ref):
    # y_ref: (1, Cout, hw_tile) bf16 ; sc/sh: (Cout, 1) f32 ; o_ref: f32
    y = y_ref[0].astype(jnp.float32)
    o_ref[0] = jnp.maximum(y * sc_ref[...] + sh_ref[...], 0.0).astype(o_ref.dtype)


def _pick_tile_rows(H, W, Cin, Cout, budget_bytes=4 << 20):
    """Largest row tile whose per-step blocks stay within a conservative VMEM
    budget (safe under the default scoped VMEM limit on v5e/v6e/v7x).
    Sub-image tiles are only used when their lane width is a multiple of 128
    so stores stay unmasked."""
    def step_bytes(tr):
        hw = tr * W
        x_block = (H + 2) * (W + 2) * Cin * 2          # bf16 padded image (resident)
        per_tile = hw * Cout * (2 + 4 + 4)             # y bf16 + f32 acc + f32 out
        return x_block + 2 * per_tile                  # x2 for double buffering
    if step_bytes(H) <= budget_bytes:
        return H
    for tr in range(H - 1, 0, -1):
        if H % tr == 0 and (tr * W) % 128 == 0 and step_bytes(tr) <= budget_bytes:
            return tr
    return H   # fall back to the full image; bump vmem_limit_bytes if this OOMs


@functools.partial(jax.jit, static_argnames=("bn",))
def conv_bn_relu_forward(x_nchw, w, b, gamma, beta, *, bn=True, eps=1e-5):
    N, Cin, H, W = x_nchw.shape
    Cout = w.shape[0]
    HW = H * W
    tile_rows = _pick_tile_rows(H, W, Cin, Cout)
    n_rt = H // tile_rows
    hw_tile = tile_rows * W

    # ---- glue: NCHW -> padded NHWC bf16; weights -> (9, Cin, Cout) bf16 ----
    x_nhwc = jnp.transpose(x_nchw, (0, 2, 3, 1)).astype(jnp.bfloat16)
    x_pad = jnp.pad(x_nhwc, ((0, 0), (1, 1), (1, 1), (0, 0)))
    w_taps = jnp.transpose(w, (2, 3, 1, 0)).reshape(9, Cin, Cout).astype(jnp.bfloat16)

    # ---- kernel 1: fused im2col + conv GEMM + per-image channel stats ----
    conv_call = pl.pallas_call(
        functools.partial(_conv_stats_kernel, tile_rows=tile_rows, W=W),
        out_shape=(
            jax.ShapeDtypeStruct((N, Cout, HW), jnp.bfloat16),   # conv activation (bf16)
            jax.ShapeDtypeStruct((N, Cout, 1), jnp.float32),     # per-image sum
            jax.ShapeDtypeStruct((N, Cout, 1), jnp.float32),     # per-image sum of squares
        ),
        grid_spec=pltpu.PrefetchScalarGridSpec(
            num_scalar_prefetch=0,
            grid=(N, n_rt),                                      # reduction (row) axis last
            in_specs=[
                pl.BlockSpec((1, H + 2, W + 2, Cin), lambda n, r: (n, 0, 0, 0)),
                pl.BlockSpec((9, Cin, Cout), lambda n, r: (0, 0, 0)),
            ],
            out_specs=(
                pl.BlockSpec((1, Cout, hw_tile), lambda n, r: (n, 0, r)),
                pl.BlockSpec((1, Cout, 1), lambda n, r: (n, 0, 0)),
                pl.BlockSpec((1, Cout, 1), lambda n, r: (n, 0, 0)),
            ),
        ),
        compiler_params=pltpu.CompilerParams(
            dimension_semantics=("parallel", "arbitrary")),
    )
    y, s, ssq = conv_call(x_pad, w_taps)

    # ---- tiny (Cout,) reduction + scale/shift, computed once in the wrapper ----
    if bn:
        count = jnp.float32(N * HW)
        total = jnp.sum(s[:, :, 0], axis=0)
        total_sq = jnp.sum(ssq[:, :, 0], axis=0)
        mean = total / count
        var = jnp.maximum(total_sq / count - mean * mean, 0.0)   # biased (training BN)
        scale = gamma.astype(jnp.float32) * lax.rsqrt(var + eps)
        shift = beta.astype(jnp.float32) - mean * scale
        # conv bias is dropped: a per-channel constant is cancelled exactly by
        # training-mode BatchNorm's mean subtraction.
    else:
        scale = jnp.ones((Cout,), jnp.float32)
        shift = b.astype(jnp.float32)                            # bias folded into shift

    # ---- kernel 2: y*scale + shift, ReLU (lane-dense NCHW-flattened output) ----
    bn_call = pl.pallas_call(
        _scale_shift_relu_kernel,
        out_shape=jax.ShapeDtypeStruct((N, Cout, HW), jnp.float32),
        grid_spec=pltpu.PrefetchScalarGridSpec(
            num_scalar_prefetch=0,
            grid=(N, n_rt),
            in_specs=[
                pl.BlockSpec((1, Cout, hw_tile), lambda n, r: (n, 0, r)),
                pl.BlockSpec((Cout, 1), lambda n, r: (0, 0)),
                pl.BlockSpec((Cout, 1), lambda n, r: (0, 0)),
            ],
            out_specs=pl.BlockSpec((1, Cout, hw_tile), lambda n, r: (n, 0, r)),
        ),
        compiler_params=pltpu.CompilerParams(
            dimension_semantics=("parallel", "parallel")),
    )
    out = bn_call(y, scale.reshape(Cout, 1), shift.reshape(Cout, 1))

    # (N, Cout, H*W) -> (N, Cout, H, W): contiguous reshape only, no transpose.
    return out.reshape(N, Cout, H, W)


def _reference(x, w, b, gamma, beta, bn=True, eps=1e-5):
    # Reference matches the kernel's bf16 GEMM inputs (accumulation in f32).
    xb = x.astype(jnp.bfloat16).astype(jnp.float32)
    wb = w.astype(jnp.bfloat16).astype(jnp.float32)
    y = lax.conv_general_dilated(
        xb, wb, window_strides=(1, 1), padding=((1, 1), (1, 1)),
        dimension_numbers=("NCHW", "OIHW", "NCHW"),
        precision=lax.Precision.HIGHEST)
    y = y + b.reshape(1, -1, 1, 1)
    if bn:
        mean = y.mean(axis=(0, 2, 3), keepdims=True)
        var = ((y - mean) ** 2).mean(axis=(0, 2, 3), keepdims=True)   # biased
        y = gamma.reshape(1, -1, 1, 1) * (y - mean) * lax.rsqrt(var + eps) \
            + beta.reshape(1, -1, 1, 1)
    return jnp.maximum(y, 0.0)


if __name__ == "__main__":
    key = jax.random.PRNGKey(0)
    kx, kw, kb, kg, kbt = jax.random.split(key, 5)
    N, Cin, Cout, H, W = 2, 4, 8, 16, 16

    # Deterministic synthetic params (shapes per nn.Conv2d(Cin, Cout, 3, padding=1)
    # and nn.BatchNorm2d(Cout)); non-trivial gamma/beta exercise the affine path.
    x = jax.random.normal(kx, (N, Cin, H, W), jnp.float32)
    w = 0.1 * jax.random.normal(kw, (Cout, Cin, 3, 3), jnp.float32)
    b = 0.1 * jax.random.normal(kb, (Cout,), jnp.float32)
    gamma = 1.0 + 0.1 * jax.random.normal(kg, (Cout,), jnp.float32)
    beta = 0.1 * jax.random.normal(kbt, (Cout,), jnp.float32)

    # bn=True path (Conv -> BN(batch stats) -> ReLU)
    out = jax.block_until_ready(conv_bn_relu_forward(x, w, b, gamma, beta, bn=True))
    ref = _reference(x, w, b, gamma, beta, bn=True)
    assert out.shape == (N, Cout, H, W), out.shape
    err = float(jnp.max(jnp.abs(out - ref)))
    # bf16 MXU inputs + bf16 inter-kernel activation -> ~1e-2 level tolerance.
    assert err < 3e-2, err

    # bn=False path (Conv + bias -> ReLU)
    out2 = jax.block_until_ready(conv_bn_relu_forward(x, w, b, gamma, beta, bn=False))
    ref2 = _reference(x, w, b, gamma, beta, bn=False)
    err2 = float(jnp.max(jnp.abs(out2 - ref2)))
    assert err2 < 3e-2, err2

    # TODO(synk): BatchNorm running_mean/running_var updates (training-state side
    # effect) are not materialized; only the forward output is reproduced.
    print("KERNEL_OK")
</pallas_src>

<mosaic_0001>
module attributes {stable_mosaic.version = 11 : i64} {
  func.func @_conv_stats_kernel(%arg0: i32, %arg1: i32, %arg2: memref<1x18x18x4xbf16, #tpu.memory_space<vmem>>, %arg3: memref<9x4x8xbf16, #tpu.memory_space<vmem>>, %arg4: memref<1x8x256xbf16, #tpu.memory_space<vmem>>, %arg5: memref<1x8x1xf32, #tpu.memory_space<vmem>>, %arg6: memref<1x8x1xf32, #tpu.memory_space<vmem>>) attributes {dimension_semantics = [#tpu.dimension_semantics<parallel>, #tpu.dimension_semantics<arbitrary>], iteration_bounds = array<i64: 2, 1>, scalar_prefetch = 0 : i64, scratch_operands = 0 : i64, tpu.core_type = #tpu.core_type<tc>, window_params = [{transform_indices = @transform_0, window_bounds = array<i64: 1, 18, 18, 4>}, {pipeline_mode = #tpu.pipeline_mode<synchronous>, transform_indices = @transform_1, window_bounds = array<i64: 9, 4, 8>}, {transform_indices = @transform_2, window_bounds = array<i64: 1, 8, 256>}, {transform_indices = @transform_3, window_bounds = array<i64: 1, 8, 1>}, {transform_indices = @transform_4, window_bounds = array<i64: 1, 8, 1>}]} {
    %c0_i32 = arith.constant 0 : i32
    %0 = arith.cmpi eq, %arg1, %c0_i32 : i32
    %1 = arith.extui %0 : i1 to i32
    %c0_i32_0 = arith.constant 0 : i32
    %2 = arith.cmpi ne, %1, %c0_i32_0 : i32
    scf.if %2 {
      %cst_78 = arith.constant 0.000000e+00 : f32
      %106 = vector.broadcast %cst_78 : f32 to vector<1x8x1xf32>
      %c0_79 = arith.constant 0 : index
      %c0_80 = arith.constant 0 : index
      %c0_81 = arith.constant 0 : index
      %107 = vector.load %arg5[%c0_79, %c0_80, %c0_81] : memref<1x8x1xf32, #tpu.memory_space<vmem>>, vector<1x8x1xf32>
      tpu.vector_store %arg5[%c0_79, %c0_80, %c0_81], %106 {strides = array<i32>} : memref<1x8x1xf32, #tpu.memory_space<vmem>>, vector<1x8x1xf32>,
      %cst_82 = arith.constant 0.000000e+00 : f32
      %108 = vector.broadcast %cst_82 : f32 to vector<1x8x1xf32>
      %c0_83 = arith.constant 0 : index
      %c0_84 = arith.constant 0 : index
      %c0_85 = arith.constant 0 : index
      %109 = vector.load %arg6[%c0_83, %c0_84, %c0_85] : memref<1x8x1xf32, #tpu.memory_space<vmem>>, vector<1x8x1xf32>
      tpu.vector_store %arg6[%c0_83, %c0_84, %c0_85], %108 {strides = array<i32>} : memref<1x8x1xf32, #tpu.memory_space<vmem>>, vector<1x8x1xf32>,
    } else {
    }
    %c16_i32 = arith.constant 16 : i32
    %3 = arith.muli %arg1, %c16_i32 : i32
    %c0_i32_1 = arith.constant 0 : i32
    %4 = arith.addi %3, %c0_i32_1 : i32
    %c0 = arith.constant 0 : index
    %5 = arith.index_cast %4 : i32 to index
    %c0_2 = arith.constant 0 : index
    %c0_3 = arith.constant 0 : index
    %6 = vector.load %arg2[%c0, %5, %c0_2, %c0_3] : memref<1x18x18x4xbf16, #tpu.memory_space<vmem>>, vector<1x16x16x4xbf16>
    %7 = vector.shape_cast %6 : vector<1x16x16x4xbf16> to vector<16x16x4xbf16>
    %8 = vector.shape_cast %7 : vector<16x16x4xbf16> to vector<256x4xbf16>
    %c0_4 = arith.constant 0 : index
    %c0_5 = arith.constant 0 : index
    %c0_6 = arith.constant 0 : index
    %9 = vector.load %arg3[%c0_4, %c0_5, %c0_6] : memref<9x4x8xbf16, #tpu.memory_space<vmem>>, vector<1x4x8xbf16>
    %10 = vector.shape_cast %9 : vector<1x4x8xbf16> to vector<4x8xbf16>
    %cst = arith.constant dense<0.000000e+00> : vector<256x8xf32>
    %11 = tpu.matmul %8, %10, %cst {dimension_numbers = #tpu.dot_dimension_numbers<[1], [0], [0], [1], [0, 0, 1, 1], [], []>} : vector<256x4xbf16>, vector<4x8xbf16>, vector<256x8xf32> -> vector<256x8xf32>
    %c0_i32_7 = arith.constant 0 : i32
    %12 = arith.addi %3, %c0_i32_7 : i32
    %c0_8 = arith.constant 0 : index
    %13 = arith.index_cast %12 : i32 to index
    %c1 = arith.constant 1 : index
    %c0_9 = arith.constant 0 : index
    %14 = vector.load %arg2[%c0_8, %13, %c1, %c0_9] : memref<1x18x18x4xbf16, #tpu.memory_space<vmem>>, vector<1x16x16x4xbf16>
    %15 = vector.shape_cast %14 : vector<1x16x16x4xbf16> to vector<16x16x4xbf16>
    %16 = vector.shape_cast %15 : vector<16x16x4xbf16> to vector<256x4xbf16>
    %c1_10 = arith.constant 1 : index
    %c0_11 = arith.constant 0 : index
    %c0_12 = arith.constant 0 : index
    %17 = vector.load %arg3[%c1_10, %c0_11, %c0_12] : memref<9x4x8xbf16, #tpu.memory_space<vmem>>, vector<1x4x8xbf16>
    %18 = vector.shape_cast %17 : vector<1x4x8xbf16> to vector<4x8xbf16>
    %cst_13 = arith.constant dense<0.000000e+00> : vector<256x8xf32>
    %19 = tpu.matmul %16, %18, %cst_13 {dimension_numbers = #tpu.dot_dimension_numbers<[1], [0], [0], [1], [0, 0, 1, 1], [], []>} : vector<256x4xbf16>, vector<4x8xbf16>, vector<256x8xf32> -> vector<256x8xf32>
    %20 = arith.addf %11, %19 : vector<256x8xf32>
    %c0_i32_14 = arith.constant 0 : i32
    %21 = arith.addi %3, %c0_i32_14 : i32
    %c0_15 = arith.constant 0 : index
    %22 = arith.index_cast %21 : i32 to index
    %c2 = arith.constant 2 : index
    %c0_16 = arith.constant 0 : index
    %23 = vector.load %arg2[%c0_15, %22, %c2, %c0_16] : memref<1x18x18x4xbf16, #tpu.memory_space<vmem>>, vector<1x16x16x4xbf16>
    %24 = vector.shape_cast %23 : vector<1x16x16x4xbf16> to vector<16x16x4xbf16>
    %25 = vector.shape_cast %24 : vector<16x16x4xbf16> to vector<256x4xbf16>
    %c2_17 = arith.constant 2 : index
    %c0_18 = arith.constant 0 : index
    %c0_19 = arith.constant 0 : index
    %26 = vector.load %arg3[%c2_17, %c0_18, %c0_19] : memref<9x4x8xbf16, #tpu.memory_space<vmem>>, vector<1x4x8xbf16>
    %27 = vector.shape_cast %26 : vector<1x4x8xbf16> to vector<4x8xbf16>
    %cst_20 = arith.constant dense<0.000000e+00> : vector<256x8xf32>
    %28 = tpu.matmul %25, %27, %cst_20 {dimension_numbers = #tpu.dot_dimension_numbers<[1], [0], [0], [1], [0, 0, 1, 1], [], []>} : vector<256x4xbf16>, vector<4x8xbf16>, vector<256x8xf32> -> vector<256x8xf32>
    %29 = arith.addf %20, %28 : vector<256x8xf32>
    %c1_i32 = arith.constant 1 : i32
    %30 = arith.addi %3, %c1_i32 : i32
    %c0_21 = arith.constant 0 : index
    %31 = arith.index_cast %30 : i32 to index
    %c0_22 = arith.constant 0 : index
    %c0_23 = arith.constant 0 : index
    %32 = vector.load %arg2[%c0_21, %31, %c0_22, %c0_23] : memref<1x18x18x4xbf16, #tpu.memory_space<vmem>>, vector<1x16x16x4xbf16>
    %33 = vector.shape_cast %32 : vector<1x16x16x4xbf16> to vector<16x16x4xbf16>
    %34 = vector.shape_cast %33 : vector<16x16x4xbf16> to vector<256x4xbf16>
    %c3 = arith.constant 3 : index
    %c0_24 = arith.constant 0 : index
    %c0_25 = arith.constant 0 : index
    %35 = vector.load %arg3[%c3, %c0_24, %c0_25] : memref<9x4x8xbf16, #tpu.memory_space<vmem>>, vector<1x4x8xbf16>
    %36 = vector.shape_cast %35 : vector<1x4x8xbf16> to vector<4x8xbf16>
    %cst_26 = arith.constant dense<0.000000e+00> : vector<256x8xf32>
    %37 = tpu.matmul %34, %36, %cst_26 {dimension_numbers = #tpu.dot_dimension_numbers<[1], [0], [0], [1], [0, 0, 1, 1], [], []>} : vector<256x4xbf16>, vector<4x8xbf16>, vector<256x8xf32> -> vector<256x8xf32>
    %38 = arith.addf %29, %37 : vector<256x8xf32>
    %c1_i32_27 = arith.constant 1 : i32
    %39 = arith.addi %3, %c1_i32_27 : i32
    %c0_28 = arith.constant 0 : index
    %40 = arith.index_cast %39 : i32 to index
    %c1_29 = arith.constant 1 : index
    %c0_30 = arith.constant 0 : index
    %41 = vector.load %arg2[%c0_28, %40, %c1_29, %c0_30] : memref<1x18x18x4xbf16, #tpu.memory_space<vmem>>, vector<1x16x16x4xbf16>
    %42 = vector.shape_cast %41 : vector<1x16x16x4xbf16> to vector<16x16x4xbf16>
    %43 = vector.shape_cast %42 : vector<16x16x4xbf16> to vector<256x4xbf16>
    %c4 = arith.constant 4 : index
    %c0_31 = arith.constant 0 : index
    %c0_32 = arith.constant 0 : index
    %44 = vector.load %arg3[%c4, %c0_31, %c0_32] : memref<9x4x8xbf16, #tpu.memory_space<vmem>>, vector<1x4x8xbf16>
    %45 = vector.shape_cast %44 : vector<1x4x8xbf16> to vector<4x8xbf16>
    %cst_33 = arith.constant dense<0.000000e+00> : vector<256x8xf32>
    %46 = tpu.matmul %43, %45, %cst_33 {dimension_numbers = #tpu.dot_dimension_numbers<[1], [0], [0], [1], [0, 0, 1, 1], [], []>} : vector<256x4xbf16>, vector<4x8xbf16>, vector<256x8xf32> -> vector<256x8xf32>
    %47 = arith.addf %38, %46 : vector<256x8xf32>
    %c1_i32_34 = arith.constant 1 : i32
    %48 = arith.addi %3, %c1_i32_34 : i32
    %c0_35 = arith.constant 0 : index
    %49 = arith.index_cast %48 : i32 to index
    %c2_36 = arith.constant 2 : index
    %c0_37 = arith.constant 0 : index
    %50 = vector.load %arg2[%c0_35, %49, %c2_36, %c0_37] : memref<1x18x18x4xbf16, #tpu.memory_space<vmem>>, vector<1x16x16x4xbf16>
    %51 = vector.shape_cast %50 : vector<1x16x16x4xbf16> to vector<16x16x4xbf16>
    %52 = vector.shape_cast %51 : vector<16x16x4xbf16> to vector<256x4xbf16>
    %c5 = arith.constant 5 : index
    %c0_38 = arith.constant 0 : index
    %c0_39 = arith.constant 0 : index
    %53 = vector.load %arg3[%c5, %c0_38, %c0_39] : memref<9x4x8xbf16, #tpu.memory_space<vmem>>, vector<1x4x8xbf16>
    %54 = vector.shape_cast %53 : vector<1x4x8xbf16> to vector<4x8xbf16>
    %cst_40 = arith.constant dense<0.000000e+00> : vector<256x8xf32>
    %55 = tpu.matmul %52, %54, %cst_40 {dimension_numbers = #tpu.dot_dimension_numbers<[1], [0], [0], [1], [0, 0, 1, 1], [], []>} : vector<256x4xbf16>, vector<4x8xbf16>, vector<256x8xf32> -> vector<256x8xf32>
    %56 = arith.addf %47, %55 : vector<256x8xf32>
    %c2_i32 = arith.constant 2 : i32
    %57 = arith.addi %3, %c2_i32 : i32
    %c0_41 = arith.constant 0 : index
    %58 = arith.index_cast %57 : i32 to index
    %c0_42 = arith.constant 0 : index
    %c0_43 = arith.constant 0 : index
    %59 = vector.load %arg2[%c0_41, %58, %c0_42, %c0_43] : memref<1x18x18x4xbf16, #tpu.memory_space<vmem>>, vector<1x16x16x4xbf16>
    %60 = vector.shape_cast %59 : vector<1x16x16x4xbf16> to vector<16x16x4xbf16>
    %61 = vector.shape_cast %60 : vector<16x16x4xbf16> to vector<256x4xbf16>
    %c6 = arith.constant 6 : index
    %c0_44 = arith.constant 0 : index
    %c0_45 = arith.constant 0 : index
    %62 = vector.load %arg3[%c6, %c0_44, %c0_45] : memref<9x4x8xbf16, #tpu.memory_space<vmem>>, vector<1x4x8xbf16>
    %63 = vector.shape_cast %62 : vector<1x4x8xbf16> to vector<4x8xbf16>
    %cst_46 = arith.constant dense<0.000000e+00> : vector<256x8xf32>
    %64 = tpu.matmul %61, %63, %cst_46 {dimension_numbers = #tpu.dot_dimension_numbers<[1], [0], [0], [1], [0, 0, 1, 1], [], []>} : vector<256x4xbf16>, vector<4x8xbf16>, vector<256x8xf32> -> vector<256x8xf32>
    %65 = arith.addf %56, %64 : vector<256x8xf32>
    %c2_i32_47 = arith.constant 2 : i32
    %66 = arith.addi %3, %c2_i32_47 : i32
    %c0_48 = arith.constant 0 : index
    %67 = arith.index_cast %66 : i32 to index
    %c1_49 = arith.constant 1 : index
    %c0_50 = arith.constant 0 : index
    %68 = vector.load %arg2[%c0_48, %67, %c1_49, %c0_50] : memref<1x18x18x4xbf16, #tpu.memory_space<vmem>>, vector<1x16x16x4xbf16>
    %69 = vector.shape_cast %68 : vector<1x16x16x4xbf16> to vector<16x16x4xbf16>
    %70 = vector.shape_cast %69 : vector<16x16x4xbf16> to vector<256x4xbf16>
    %c7 = arith.constant 7 : index
    %c0_51 = arith.constant 0 : index
    %c0_52 = arith.constant 0 : index
    %71 = vector.load %arg3[%c7, %c0_51, %c0_52] : memref<9x4x8xbf16, #tpu.memory_space<vmem>>, vector<1x4x8xbf16>
    %72 = vector.shape_cast %71 : vector<1x4x8xbf16> to vector<4x8xbf16>
    %cst_53 = arith.constant dense<0.000000e+00> : vector<256x8xf32>
    %73 = tpu.matmul %70, %72, %cst_53 {dimension_numbers = #tpu.dot_dimension_numbers<[1], [0], [0], [1], [0, 0, 1, 1], [], []>} : vector<256x4xbf16>, vector<4x8xbf16>, vector<256x8xf32> -> vector<256x8xf32>
    %74 = arith.addf %65, %73 : vector<256x8xf32>
    %c2_i32_54 = arith.constant 2 : i32
    %75 = arith.addi %3, %c2_i32_54 : i32
    %c0_55 = arith.constant 0 : index
    %76 = arith.index_cast %75 : i32 to index
    %c2_56 = arith.constant 2 : index
    %c0_57 = arith.constant 0 : index
    %77 = vector.load %arg2[%c0_55, %76, %c2_56, %c0_57] : memref<1x18x18x4xbf16, #tpu.memory_space<vmem>>, vector<1x16x16x4xbf16>
    %78 = vector.shape_cast %77 : vector<1x16x16x4xbf16> to vector<16x16x4xbf16>
    %79 = vector.shape_cast %78 : vector<16x16x4xbf16> to vector<256x4xbf16>
    %c8 = arith.constant 8 : index
    %c0_58 = arith.constant 0 : index
    %c0_59 = arith.constant 0 : index
    %80 = vector.load %arg3[%c8, %c0_58, %c0_59] : memref<9x4x8xbf16, #tpu.memory_space<vmem>>, vector<1x4x8xbf16>
    %81 = vector.shape_cast %80 : vector<1x4x8xbf16> to vector<4x8xbf16>
    %cst_60 = arith.constant dense<0.000000e+00> : vector<256x8xf32>
    %82 = tpu.matmul %79, %81, %cst_60 {dimension_numbers = #tpu.dot_dimension_numbers<[1], [0], [0], [1], [0, 0, 1, 1], [], []>} : vector<256x4xbf16>, vector<4x8xbf16>, vector<256x8xf32> -> vector<256x8xf32>
    %83 = arith.addf %74, %82 : vector<256x8xf32>
    %84 = tpu.transpose %83, [1, 0] : vector<256x8xf32> -> vector<8x256xf32>
    %85 = arith.truncf %84 : vector<8x256xf32> to vector<8x256xbf16>
    %c0_61 = arith.constant 0 : index
    %c0_62 = arith.constant 0 : index
    %c0_63 = arith.constant 0 : index
    %86 = vector.load %arg4[%c0_61, %c0_62, %c0_63] : memref<1x8x256xbf16, #tpu.memory_space<vmem>>, vector<1x8x256xbf16>
    %87 = vector.shape_cast %86 : vector<1x8x256xbf16> to vector<8x256xbf16>
    %88 = vector.shape_cast %85 : vector<8x256xbf16> to vector<1x8x256xbf16>
    tpu.vector_store %arg4[%c0_61, %c0_62, %c0_63], %88 {strides = array<i32>} : memref<1x8x256xbf16, #tpu.memory_space<vmem>>, vector<1x8x256xbf16>,
    %c0_64 = arith.constant 0 : index
    %c0_65 = arith.constant 0 : index
    %c0_66 = arith.constant 0 : index
    %89 = vector.load %arg5[%c0_64, %c0_65, %c0_66] : memref<1x8x1xf32, #tpu.memory_space<vmem>>, vector<1x8x1xf32>
    %90 = vector.shape_cast %89 : vector<1x8x1xf32> to vector<8x1xf32>
    %cst_67 = arith.constant dense<0.000000e+00> : vector<8xf32>
    %91 = vector.multi_reduction <add>, %84, %cst_67 [1] : vector<8x256xf32> to vector<8xf32>
    %92 = vector.shape_cast %91 : vector<8xf32> to vector<8x1xf32>
    %93 = arith.addf %90, %92 : vector<8x1xf32>
    %c0_68 = arith.constant 0 : index
    %c0_69 = arith.constant 0 : index
    %c0_70 = arith.constant 0 : index
    %94 = vector.load %arg5[%c0_68, %c0_69, %c0_70] : memref<1x8x1xf32, #tpu.memory_space<vmem>>, vector<1x8x1xf32>
    %95 = vector.shape_cast %94 : vector<1x8x1xf32> to vector<8x1xf32>
    %96 = vector.shape_cast %93 : vector<8x1xf32> to vector<1x8x1xf32>
    tpu.vector_store %arg5[%c0_68, %c0_69, %c0_70], %96 {strides = array<i32>} : memref<1x8x1xf32, #tpu.memory_space<vmem>>, vector<1x8x1xf32>,
    %c0_71 = arith.constant 0 : index
    %c0_72 = arith.constant 0 : index
    %c0_73 = arith.constant 0 : index
    %97 = vector.load %arg6[%c0_71, %c0_72, %c0_73] : memref<1x8x1xf32, #tpu.memory_space<vmem>>, vector<1x8x1xf32>
    %98 = vector.shape_cast %97 : vector<1x8x1xf32> to vector<8x1xf32>
    %99 = arith.mulf %84, %84 : vector<8x256xf32>
    %cst_74 = arith.constant dense<0.000000e+00> : vector<8xf32>
    %100 = vector.multi_reduction <add>, %99, %cst_74 [1] : vector<8x256xf32> to vector<8xf32>
    %101 = vector.shape_cast %100 : vector<8xf32> to vector<8x1xf32>
    %102 = arith.addf %98, %101 : vector<8x1xf32>
    %c0_75 = arith.constant 0 : index
    %c0_76 = arith.constant 0 : index
    %c0_77 = arith.constant 0 : index
    %103 = vector.load %arg6[%c0_75, %c0_76, %c0_77] : memref<1x8x1xf32, #tpu.memory_space<vmem>>, vector<1x8x1xf32>
    %104 = vector.shape_cast %103 : vector<1x8x1xf32> to vector<8x1xf32>
    %105 = vector.shape_cast %102 : vector<8x1xf32> to vector<1x8x1xf32>
    tpu.vector_store %arg6[%c0_75, %c0_76, %c0_77], %105 {strides = array<i32>} : memref<1x8x1xf32, #tpu.memory_space<vmem>>, vector<1x8x1xf32>,
    return
  }
  func.func @transform_0(%arg0: i32, %arg1: i32) -> (i32, i32, i32, i32) {
    %c0_i32 = arith.constant 0 : i32
    %c0_i32_0 = arith.constant 0 : i32
    %c0_i32_1 = arith.constant 0 : i32
    %c0_i32_2 = arith.constant 0 : i32
    return %arg0, %c0_i32, %c0_i32_0, %c0_i32_1 : i32, i32, i32, i32
  }
  func.func @transform_1(%arg0: i32, %arg1: i32) -> (i32, i32, i32) {
    %c0_i32 = arith.constant 0 : i32
    %c0_i32_0 = arith.constant 0 : i32
    %c0_i32_1 = arith.constant 0 : i32
    %c0_i32_2 = arith.constant 0 : i32
    return %c0_i32, %c0_i32_0, %c0_i32_1 : i32, i32, i32
  }
  func.func @transform_2(%arg0: i32, %arg1: i32) -> (i32, i32, i32) {
    %c0_i32 = arith.constant 0 : i32
    %c0_i32_0 = arith.constant 0 : i32
    return %arg0, %c0_i32, %arg1 : i32, i32, i32
  }
  func.func @transform_3(%arg0: i32, %arg1: i32) -> (i32, i32, i32) {
    %c0_i32 = arith.constant 0 : i32
    %c0_i32_0 = arith.constant 0 : i32
    %c0_i32_1 = arith.constant 0 : i32
    return %arg0, %c0_i32, %c0_i32_0 : i32, i32, i32
  }
  func.func @transform_4(%arg0: i32, %arg1: i32) -> (i32, i32, i32) {
    %c0_i32 = arith.constant 0 : i32
    %c0_i32_0 = arith.constant 0 : i32
    %c0_i32_1 = arith.constant 0 : i32
    return %arg0, %c0_i32, %c0_i32_0 : i32, i32, i32
  }
}

module attributes {stable_mosaic.version = 11 : i64} {
  func.func @_scale_shift_relu_kernel(%arg0: i32, %arg1: i32, %arg2: memref<1x8x256xbf16, #tpu.memory_space<vmem>>, %arg3: memref<8x1xf32, #tpu.memory_space<vmem>>, %arg4: memref<8x1xf32, #tpu.memory_space<vmem>>, %arg5: memref<1x8x256xf32, #tpu.memory_space<vmem>>) attributes {dimension_semantics = [#tpu.dimension_semantics<parallel>, #tpu.dimension_semantics<parallel>], iteration_bounds = array<i64: 2, 1>, scalar_prefetch = 0 : i64, scratch_operands = 0 : i64, tpu.core_type = #tpu.core_type<tc>, window_params = [{transform_indices = @transform_0, window_bounds = array<i64: 1, 8, 256>}, {pipeline_mode = #tpu.pipeline_mode<synchronous>, transform_indices = @transform_1, window_bounds = array<i64: 8, 1>}, {pipeline_mode = #tpu.pipeline_mode<synchronous>, transform_indices = @transform_2, window_bounds = array<i64: 8, 1>}, {transform_indices = @transform_3, window_bounds = array<i64: 1, 8, 256>}]} {
    %c0 = arith.constant 0 : index
    %c0_0 = arith.constant 0 : index
    %c0_1 = arith.constant 0 : index
    %0 = vector.load %arg2[%c0, %c0_0, %c0_1] : memref<1x8x256xbf16, #tpu.memory_space<vmem>>, vector<1x8x256xbf16>
    %1 = vector.shape_cast %0 : vector<1x8x256xbf16> to vector<8x256xbf16>
    %2 = arith.extf %1 : vector<8x256xbf16> to vector<8x256xf32>
    %c0_2 = arith.constant 0 : index
    %c0_3 = arith.constant 0 : index
    %3 = vector.load %arg3[%c0_2, %c0_3] : memref<8x1xf32, #tpu.memory_space<vmem>>, vector<8x1xf32>
    %4 = vector.broadcast %3 : vector<8x1xf32> to vector<8x256xf32>
    %5 = arith.mulf %2, %4 : vector<8x256xf32>
    %c0_4 = arith.constant 0 : index
    %c0_5 = arith.constant 0 : index
    %6 = vector.load %arg4[%c0_4, %c0_5] : memref<8x1xf32, #tpu.memory_space<vmem>>, vector<8x1xf32>
    %7 = vector.broadcast %6 : vector<8x1xf32> to vector<8x256xf32>
    %8 = arith.addf %5, %7 : vector<8x256xf32>
    %cst = arith.constant 0.000000e+00 : f32
    %9 = vector.broadcast %cst : f32 to vector<8x256xf32>
    %10 = arith.maximumf %8, %9 : vector<8x256xf32>
    %c0_6 = arith.constant 0 : index
    %c0_7 = arith.constant 0 : index
    %c0_8 = arith.constant 0 : index
    %11 = vector.load %arg5[%c0_6, %c0_7, %c0_8] : memref<1x8x256xf32, #tpu.memory_space<vmem>>, vector<1x8x256xf32>
    %12 = vector.shape_cast %11 : vector<1x8x256xf32> to vector<8x256xf32>
    %13 = vector.shape_cast %10 : vector<8x256xf32> to vector<1x8x256xf32>
    tpu.vector_store %arg5[%c0_6, %c0_7, %c0_8], %13 {strides = array<i32>} : memref<1x8x256xf32, #tpu.memory_space<vmem>>, vector<1x8x256xf32>,
    return
  }
  func.func @transform_0(%arg0: i32, %arg1: i32) -> (i32, i32, i32) {
    %c0_i32 = arith.constant 0 : i32
    %c0_i32_0 = arith.constant 0 : i32
    return %arg0, %c0_i32, %arg1 : i32, i32, i32
  }
  func.func @transform_1(%arg0: i32, %arg1: i32) -> (i32, i32) {
    %c0_i32 = arith.constant 0 : i32
    %c0_i32_0 = arith.constant 0 : i32
    %c0_i32_1 = arith.constant 0 : i32
    return %c0_i32, %c0_i32_0 : i32, i32
  }
  func.func @transform_2(%arg0: i32, %arg1: i32) -> (i32, i32) {
    %c0_i32 = arith.constant 0 : i32
    %c0_i32_0 = arith.constant 0 : i32
    %c0_i32_1 = arith.constant 0 : i32
    return %c0_i32, %c0_i32_0 : i32, i32
  }
  func.func @transform_3(%arg0: i32, %arg1: i32) -> (i32, i32, i32) {
    %c0_i32 = arith.constant 0 : i32
    %c0_i32_0 = arith.constant 0 : i32
    return %arg0, %c0_i32, %arg1 : i32, i32, i32
  }
}

</mosaic_0001>

<bundles_post_ra>
// kernel: conv_bn_relu_forward.3
= control target key start
LH: loop header
LB: loop body
LE: loop exit
PB: predicated region body
PF: predicated region fallthrough
CT: control target
= control target key end

     0   :  { %s404_s12 = smov 0   ;;  %s406_s13 = smov 0   ;;  %s443_s0 = inlined_call_operand.vmem [shape: bf16[2,8,256], index: 0, kind: input, shape index: {}]   ;;  %s444_s1 = inlined_call_operand.vmem [shape: f32[8,1], index: 1, kind: input, shape index: {}]   ;;  %s445_s2 = inlined_call_operand.vmem [shape: f32[8,1], index: 2, kind: input, shape index: {}]   ;;  %s446_s3 = inlined_call_operand.vmem [shape: f32[2,8,256], index: 3, kind: output, shape index: {}]  }
   0x1   :  { %s408_s14 = smov 0  }
   0x2 LB: > { %s25_s15 = sadd.s32 1, %s377_s13  ;;  %p324_p0 = scmp.ge.s32.totalorder %s381_s14, 1  ;;  %s381_s14 = sphi %s408_s14, %s13_s14   ;;  %s377_s13 = sphi %s406_s13, %s448_s13   ;;  %s373_s12 = sphi %s404_s12, %s447_s12  }
   0x3   : > { %p27_p1 = scmp.ge.s32.totalorder %s25_s15, 2  ;;  %p158_p2 = scmp.lt.s32.totalorder %s381_s14, 3 }
   0x5   : > { %s450_s15 = smov (%p27_p1, %s25_s15), 0  ;;  %p159_p3 = pnand %p324_p0, %p158_p2 }
   0x6   : > { %v213_v0 = vld [vmem:[%s444_s1] sm:$0xff] (!%p159_p3)  ;;  %v383_v1 = vmov (!%p159_p3), 0   ;;  %p191_p4 = scmp.lt.s32.totalorder (!%p159_p3), %s373_s12, 1 }
   0x7   : > { %162 = sbr.rel (%p159_p3) target bundleno = 145 (0x91), region = 32  ;;  %358 = vset.pattern.permute.xlu0 (!%p159_p3), %v383_v1  ;;  %v221_v2 = vld [vmem:[%s445_s2] sm:$0xff] (!%p159_p3) }
   0x8   : > { %216 = vperm.xlu0 (!%p159_p3), %358, %v213_v0  }
   0xc   : > { %224 = vperm.xlu0 (!%p159_p3), %358, %v221_v2  }
   0xe   : > { %s452_s12 = smov (!%p191_p4, %s373_s12), 1 }
   0xf   : > { %s331_s20 = sshll.u32 %s452_s12, 3  ;;  %s332_s24 = sshll.u32 %s452_s12, 4 }
  0x10   : > { %s198_s23 = scalar_lea.vmem %s443_s0, %s331_s20  ;;  %s208_s27 = scalar_lea.vmem %s446_s3, %s332_s24 }
  0x11   : > { %v210_v3 = vld [vmem:[%s198_s23] sm:$0xff] }
  0x12   : > { %v211_v4 = vunpack.c.l.bf16 %v210_v3  ;;  %v212_v5 = vunpack.c.h.bf16 %v210_v3 }
  0x87   : > { %v217_v6 = vpop.permute.xlu0 %216 }
  0x88   : > { %v219_v7 = vmul.f32 %v217_v6, %v211_v4  ;;  %v220_v8 = vmul.f32 %v217_v6, %v212_v5 }
  0x8b   : > { %v225_v9 = vpop.permute.xlu0 %224 }
  0x8c   : > { %v227_v10 = vadd.f32 %v225_v9, %v219_v7  ;;  %v228_v11 = vadd.f32 %v225_v9, %v220_v8 }
  0x8e   : > { %v229_v12 = vmax.f32 %v227_v10, 0.0  ;;  %v230_v13 = vmax.f32 %v228_v11, 0.0 }
  0x90   : > { %231 = vst [vmem:[%s208_s27] sm:$0xff] %v229_v12  ;;  %232 = vst [vmem:[%s208_s27 + $0x8] sm:$0xff] %v230_v13 }
  0x91 PF: > { %s13_s14 = sadd.s32 1, %s381_s14   ;;  %s447_s12 = smov %s377_s13 }
  0x92   : > { %p10_p5 = scmp.ge.s32.totalorder %s13_s14, 4   ;;  %s448_s13 = smov %s450_s15 }
  0x94   :  { %12 = sbr.rel (!%p10_p5) target bundleno = 2 (0x2), region = 62 }

// kernel: conv_bn_relu_forward.2
= control target key start
LH: loop header
LB: loop body
LE: loop exit
PB: predicated region body
PF: predicated region fallthrough
CT: control target
= control target key end

     0   :  { %s6519_s15 = smov 0   ;;  %s6521_s16 = smov 0   ;;  %s8279_s0 = inlined_call_operand.vmem [shape: bf16[2,18,18,4], index: 0, kind: input, shape index: {}]   ;;  %s8280_s1 = inlined_call_operand.vmem [shape: bf16[9,4,8], index: 1, kind: input, shape index: {}]   ;;  %s8281_s2 = inlined_call_operand.vmem [shape: bf16[2,8,256], index: 2, kind: output, shape index: {0}]   ;;  %s8282_s3 = inlined_call_operand.vmem [shape: f32[2,8,1], index: 3, kind: output, shape index: {1}]   ;;  %s8283_s4 = inlined_call_operand.vmem [shape: f32[2,8,1], index: 4, kind: output, shape index: {2}]  }
   0x1   :  { %s6523_s17 = smov 0  }
   0x2 LB: > { %s27_s18 = sadd.s32 1, %s6487_s16  ;;  %p5064_p0 = scmp.ge.s32.totalorder %s6491_s17, 1  ;;  %s6491_s17 = sphi %s6523_s17, %s15_s17   ;;  %s6487_s16 = sphi %s6521_s16, %s8352_s16   ;;  %s6483_s15 = sphi %s6519_s15, %s8351_s15  }
   0x3   : > { %p29_p1 = scmp.ge.s32.totalorder %s27_s18, 2  ;;  %p181_p2 = scmp.lt.s32.totalorder %s6491_s17, 3 }
   0x5   : > { %s8354_s18 = smov (%p29_p1, %s27_s18), 0  ;;  %p182_p3 = pnand %p5064_p0, %p181_p2 }
   0x7   : > { %185 = sbr.rel (%p182_p3) target bundleno = 835 (0x343), region = 28 }
   0xe   : > { %v5070_v0 = vld [vmem:[%s8280_s1 + $0x2] sm:$0x3]  ;;  %vm789_vm0 = vcmask 1041408   ;;  %v5297_v1 = vld [vmem:[%s8280_s1 + $0x8] sm:$0x3]  ;;  %p219_p4 = scmp.lt.s32.totalorder %s6483_s15, 1 }
   0xf   : > { %6328 = vmatprep.subr.msk.bf16.mxu1 %vm789_vm0, %v5070_v0  ;;  %6332 = vmatprep.subr.msk.bf16.mxu0 %vm789_vm0, %v5297_v1  ;;  %v791_v2 = vsel %vm789_vm0, %v5070_v0, 0  ;;  %v6547_v3 = vsel %vm789_vm0, %v5297_v1, 0  ;;  %v286_v4 = vld [vmem:[%s8280_s1] sm:$0x3]  ;;  %v5362_v5 = vld [vmem:[%s8280_s1 + $0xa] sm:$0x3] }
  0x10   : > { %8297 = vst [vmem:[#allocation2_spill] sm:$0xff] %v6547_v3  ;;  %5765 = vmatpush3.bf16.msra.mxu1 %v791_v2  ;;  %5901 = vmatpush3.bf16.msra.mxu0 %v6547_v3  ;;  %s8356_s15 = smov (!%p219_p4, %s6483_s15), 1  ;;  %vm303_vm1 = vsmask.f32 3328  ;;  %vm304_vm2 = vsmask.f32 7440 }
  0x11   : > { %6329 = vmatprep.subr.msk.bf16.mxu1 %vm789_vm0, %v286_v4  ;;  %6334 = vmatprep.subr.msk.bf16.mxu0 %vm789_vm0, %v5362_v5  ;;  %s6338_s27 = smul.u32 216, %s8356_s15  ;;  %vm740_vm3 = vcmask 31744   ;;  %v6577_v17 = vsel %vm789_vm0, %v286_v4, 0  ;;  %v6583_v26 = vld [vmem:[%s8280_s1 + $0xc] sm:$0x3]  ;;  %vm6590_vm4 = vmor %vm303_vm1, %vm304_vm2  ;;  %v6596_v37 = vsel %vm789_vm0, %v5362_v5, 0 }
  0x12   : > { %v6600_v41 = vsel %vm789_vm0, %v6583_v26, 0  ;;  %vm1294_vm5 = vcmask 1042432   ;;  %vm1295_vm6 = vcmask 1046532   ;;  %s8245_s23 = sshll.u32 %s8356_s15, 3  ;;  %vm247_vm8 = vcmask 7168  }
  0x13   : > { %s6564_s30 = scalar_lea.vmem %s8279_s0, %s6338_s27  ;;  %vm6816_vm7 = vmor %vm1294_vm5, %vm1295_vm6  ;;  %s8251_s26 = scalar_lea.vmem %s8282_s3, %s8245_s23 }
  0x14   : > { %v254_v6 = vld [vmem:[%s6564_s30] sm:$0xf]  ;;  %v255_v7 = vld [vmem:[%s6564_s30 + $0x4] sm:$0xf]  ;;  %v287_v8 = vld [vmem:[%s6564_s30 + $0x8] sm:$0x1]  ;;  %s232_s28 = scalar_lea.vmem %s8281_s2, %s8245_s23  ;;  %s241_s5 = scalar_lea.vmem %s8283_s4, %s8245_s23 }
  0x15   : > { %v307_v9 = vshrl.u32 %v254_v6, 16  ;;  %v310_v10 = vshll.u32 %v254_v6, 16  ;;  %v316_v11 = vshll.u32 %v255_v7, 16  ;;  %v320_v12 = vshrl.u32 %v255_v7, 16  ;;  %v5249_v13 = vld [vmem:[%s6564_s30 + $0xc] sm:$0xf] }
  0x16   : > { %v326_v14 = vshll.u32 %v287_v8, 16  ;;  %v6571_v15 = vld [vmem:[%s6564_s30 + $0x10] sm:$0xf]  ;;  %v6574_v16 = vld [vmem:[%s6564_s30 + $0x14] sm:$0x1]  ;;  %v2114_v23 = vshrl.u32 %v5249_v13, 16 }
  0x17   : > { %v309_v18 = vrot.slane %v307_v9, 4  ;;  %v312_v19 = vrot.slane %v310_v10, 5  ;;  %v318_v20 = vrot.slane %v316_v11, 5  ;;  %v322_v21 = vrot.slane %v320_v12, 4  ;;  %v256_v31 = vld [vmem:[%s6564_s30 + $0xc] sm:$0xf] }
  0x18   : > { %v328_v22 = vrot.slane %v326_v14, 5  ;;  %v2117_v24 = vshll.u32 %v5249_v13, 16  ;;  %v2123_v25 = vshll.u32 %v6571_v15, 16  ;;  %v2127_v29 = vshrl.u32 %v6571_v15, 16  ;;  %v257_v36 = vld [vmem:[%s6564_s30 + $0x10] sm:$0xf] }
  0x19   : > { %v313_v27 = vor.u32 %v312_v19, %v309_v18  ;;  %v323_v28 = vor.u32 %v322_v21, %v318_v20  ;;  %v2133_v30 = vshll.u32 %v6574_v16, 16  ;;  %v2116_v33 = vrot.slane %v2114_v23, 4  ;;  %v288_v44 = vld [vmem:[%s6564_s30 + $0x14] sm:$0x1]  ;;  %v5252_v55 = vld [vmem:[%s6564_s30 + $0x18] sm:$0xf] }
  0x1a   : > { %v2119_v34 = vrot.slane %v2117_v24, 5  ;;  %v2125_v35 = vrot.slane %v2123_v25, 5  ;;  %v2129_v40 = vrot.slane %v2127_v29, 4  ;;  %v331_v45 = vshrl.u32 %v256_v31, 16  ;;  %v6609_v60 = vld [vmem:[%s6564_s30 + $0x1c] sm:$0xf] }
  0x1b   : > { %v314_v38 = vrot.slane %v313_v27, 4  ;;  %v324_v39 = vrot.slane %v323_v28, 4  ;;  %v2135_v43 = vrot.slane %v2133_v30, 5  ;;  %v334_v46 = vshll.u32 %v256_v31, 16  ;;  %v6617_v1 = vld [vmem:[%s6564_s30 + $0x20] sm:$0x1] }
  0x1c   : > { %v2120_v42 = vor.u32 %v2119_v34, %v2116_v33  ;;  %v2130_v49 = vor.u32 %v2129_v40, %v2125_v35  ;;  %v340_v50 = vshll.u32 %v257_v36, 16  ;;  %v333_v53 = vrot.slane %v331_v45, 4  ;;  %v258_v18 = vld [vmem:[%s6564_s30 + $0x18] sm:$0xf]  ;;  %v259_v23 = vld [vmem:[%s6564_s30 + $0x1c] sm:$0xf] }
  0x1d   : > { %v319_v47 = vsel %vm6590_vm4, %v314_v38, %v318_v20  ;;  %v329_v48 = vsel %vm6590_vm4, %v324_v39, %v328_v22  ;;  %v336_v54 = vrot.slane %v334_v46, 5  ;;  %v344_v58 = vshrl.u32 %v257_v36, 16  ;;  %v289_v31 = vld [vmem:[%s6564_s30 + $0x20] sm:$0x1]  ;;  %v5255_v40 = vld [vmem:[%s6564_s30 + $0x24] sm:$0xf] }
  0x1e   : > { %v5071_v51 = vcombine.low %v319_v47, %v329_v48  ;;  %v2121_v52 = vrot.slane %v2120_v42, 4  ;;  %v2131_v56 = vrot.slane %v2130_v49, 4  ;;  %v342_v57 = vrot.slane %v340_v50, 5  ;;  %v6640_v46 = vld [vmem:[%s6564_s30 + $0x28] sm:$0xf] }
  0x1f   : > { %v350_v59 = vshll.u32 %v288_v44, 16  ;;  %v2857_v62 = vrot.slane %v6571_v15, 5  ;;  %v2860_v63 = vrot.slane %v6574_v16, 5  ;;  %v337_v0 = vor.u32 %v336_v54, %v333_v53  ;;  %v6649_v54 = vld [vmem:[%s6564_s30 + $0x2c] sm:$0x1] }
  0x20   : > { %5766 = vmatprep.mubr.msk.bf16.mxu1 %vm740_vm3, %v5071_v51  ;;  %v2126_v61 = vsel %vm6590_vm4, %v2121_v52, %v2125_v35  ;;  %v2136_v2 = vsel %vm6590_vm4, %v2131_v56, %v2135_v43  ;;  %v346_v4 = vrot.slane %v344_v58, 4  ;;  %v2138_v6 = vshrl.u32 %v5252_v55, 16  ;;  %v5151_v51 = vld [vmem:[%s8280_s1 + $0x4] sm:$0x3]  ;;  %v6849_v16 = vld [vmem:[%s6564_s30 + $0x7c] sm:$0xf] }
  0x21   : > { %v352_v5 = vrot.slane %v350_v59, 5  ;;  %v5298_v7 = vcombine.low %v2126_v61, %v2136_v2  ;;  %v338_v8 = vrot.slane %v337_v0, 4  ;;  %v2141_v9 = vshll.u32 %v5252_v55, 16  ;;  %v260_v0 = vld [vmem:[%s6564_s30 + $0x24] sm:$0xf] }
  0x22   : > { %v2147_v10 = vshll.u32 %v6609_v60, 16  ;;  %v347_v11 = vor.u32 %v346_v4, %v342_v57  ;;  %v2140_v12 = vrot.slane %v2138_v6, 4  ;;  %v2151_v13 = vshrl.u32 %v6609_v60, 16 }
  0x23   : > { %v2157_v14 = vshll.u32 %v6617_v1, 16  ;;  %5902 = vmatprep.mubr.msk.bf16.mxu0 %vm740_vm3, %v5298_v7  ;;  %v343_v19 = vsel %vm6590_vm4, %v338_v8, %v342_v57  ;;  %v2143_v20 = vrot.slane %v2141_v9, 5  ;;  %v2864_v22 = vrot.slane %v6609_v60, 5  ;;  %v261_v7 = vld [vmem:[%s6564_s30 + $0x28] sm:$0xf] }
  0x24   : > { %v2149_v21 = vrot.slane %v2147_v10, 5  ;;  %v348_v24 = vrot.slane %v347_v11, 4  ;;  %v2153_v25 = vrot.slane %v2151_v13, 4  ;;  %v2867_v28 = vrot.slane %v6617_v1, 5  ;;  %v290_v13 = vld [vmem:[%s6564_s30 + $0x2c] sm:$0x1] }
  0x25   : > { %v2159_v27 = vrot.slane %v2157_v14, 5  ;;  %v2144_v29 = vor.u32 %v2143_v20, %v2140_v12  ;;  %v6633_v30 = vrot.slane %v2864_v22, 4  ;;  %v355_v33 = vshrl.u32 %v258_v18, 16 }
  0x26   : > { %v358_v34 = vshll.u32 %v258_v18, 16  ;;  %v353_v35 = vsel %vm6590_vm4, %v348_v24, %v352_v5  ;;  %v2154_v36 = vor.u32 %v2153_v25, %v2149_v21  ;;  %v364_v38 = vshll.u32 %v259_v23, 16  ;;  %v5258_v24 = vld [vmem:[%s6564_s30 + $0x30] sm:$0xf] }
  0x27   : > { %v368_v39 = vshrl.u32 %v259_v23, 16  ;;  %v5072_v42 = vcombine.low %v343_v19, %v353_v35  ;;  %v2145_v43 = vrot.slane %v2144_v29, 4  ;;  %v357_v44 = vrot.slane %v355_v33, 4  ;;  %v6669_v33 = vld [vmem:[%s6564_s30 + $0x34] sm:$0xf] }
  0x28   : > { %v360_v45 = vrot.slane %v358_v34, 5  ;;  %v2155_v47 = vrot.slane %v2154_v36, 4  ;;  %v366_v48 = vrot.slane %v364_v38, 5  ;;  %v374_v50 = vshll.u32 %v289_v31, 16 }
  0x29   : > { %v370_v49 = vrot.slane %v368_v39, 4  ;;  %5767 = vmatmul.mubr.msk.bf16.vlgmr.msra.gmra.mrb[0].mxu1 %vm740_vm3, %v5072_v42  ;;  %v2150_v52 = vsel %vm6590_vm4, %v2145_v43, %v2149_v21  ;;  %v2162_v55 = vshrl.u32 %v5255_v40, 16  ;;  %v2165_v56 = vshll.u32 %v5255_v40, 16  ;;  %v6677_v40 = vld [vmem:[%s6564_s30 + $0x38] sm:$0x1] }
  0x2a   : > { %v361_v53 = vor.u32 %v360_v45, %v357_v44  ;;  %5799 = vmatpush3.bf16.msra.mxu1 %v6577_v17  ;;  %v2160_v57 = vsel %vm6590_vm4, %v2155_v47, %v2159_v27  ;;  %v376_v59 = vrot.slane %v374_v50, 5  ;;  %v2171_v61 = vshll.u32 %v6640_v46, 16 }
  0x2b   : > { %v371_v58 = vor.u32 %v370_v49, %v366_v48  ;;  %v5299_v2 = vcombine.low %v2150_v52, %v2160_v57  ;;  %v2164_v5 = vrot.slane %v2162_v55, 4  ;;  %v2167_v6 = vrot.slane %v2165_v56, 5  ;;  %6330 = vmatprep.subr.msk.bf16.mxu1 %vm789_vm0, %v5151_v51  ;;  %v262_v52 = vld [vmem:[%s6564_s30 + $0x30] sm:$0xf] }
  0x2c   : > { %v362_v4 = vrot.slane %v361_v53, 4  ;;  %v2173_v9 = vrot.slane %v2171_v61, 5  ;;  %v2175_v17 = vshrl.u32 %v6640_v46, 16  ;;  %v2181_v10 = vshll.u32 %v6649_v54, 16 }
  0x2d   : > { %v372_v8 = vrot.slane %v371_v58, 4  ;;  %5903 = vmatmul.mubr.msk.bf16.vlgmr.msra.gmra.mrb[0].mxu0 %vm740_vm3, %v5299_v2  ;;  %v2168_v12 = vor.u32 %v2167_v6, %v2164_v5  ;;  %v379_v14 = vshrl.u32 %v260_v0, 16  ;;  %v382_v18 = vshll.u32 %v260_v0, 16  ;;  %v263_v58 = vld [vmem:[%s6564_s30 + $0x34] sm:$0xf] }
  0x2e   : > { %v367_v11 = vsel %vm6590_vm4, %v362_v4, %v366_v48  ;;  %5935 = vmatpush3.bf16.msra.mxu0 %v6596_v37  ;;  %v2177_v20 = vrot.slane %v2175_v17, 4  ;;  %v2183_v21 = vrot.slane %v2181_v10, 5  ;;  %v388_v23 = vshll.u32 %v261_v7, 16  ;;  %v291_v4 = vld [vmem:[%s6564_s30 + $0x38] sm:$0x1] }
  0x2f   : > { %v377_v19 = vsel %vm6590_vm4, %v372_v8, %v376_v59  ;;  %v2169_v27 = vrot.slane %v2168_v12, 4  ;;  %v381_v29 = vrot.slane %v379_v14, 4  ;;  %v384_v31 = vrot.slane %v382_v18, 5  ;;  %6335 = vmatprep.subr.msk.bf16.mxu0 %vm789_vm0, %v6583_v26  ;;  %v5261_v12 = vld [vmem:[%s6564_s30 + $0x3c] sm:$0xf] }
  0x30   : > { %v5073_v25 = vcombine.low %v367_v11, %v377_v19  ;;  %v2178_v34 = vor.u32 %v2177_v20, %v2173_v9  ;;  %v390_v35 = vrot.slane %v388_v23, 5  ;;  %v392_v37 = vshrl.u32 %v261_v7, 16  ;;  %v6694_v20 = vld [vmem:[%s6564_s30 + $0x40] sm:$0xf] }
  0x31   : > { %v398_v36 = vshll.u32 %v290_v13, 16  ;;  %v2174_v38 = vsel %vm6590_vm4, %v2169_v27, %v2173_v9  ;;  %v385_v39 = vor.u32 %v384_v31, %v381_v29  ;;  %v2186_v42 = vshrl.u32 %v5258_v24, 16 }
  0x32   : > { %5770 = vmatprep.mubr.msk.bf16.mxu1 %vm740_vm3, %v5073_v25  ;;  %v2189_v43 = vshll.u32 %v5258_v24, 16  ;;  %v2179_v44 = vrot.slane %v2178_v34, 4  ;;  %v394_v45 = vrot.slane %v392_v37, 4  ;;  %v2195_v26 = vshll.u32 %v6669_v33, 16  ;;  %v6699_v34 = vld [vmem:[%s6564_s30 + $0x44] sm:$0x1] }
  0x33   : > { %v400_v47 = vrot.slane %v398_v36, 5  ;;  %v386_v48 = vrot.slane %v385_v39, 4  ;;  %v2188_v49 = vrot.slane %v2186_v42, 4  ;;  %v2199_v51 = vshrl.u32 %v6669_v33, 16  ;;  %v264_v42 = vld [vmem:[%s6564_s30 + $0x3c] sm:$0xf] }
  0x34   : > { %v2191_v50 = vrot.slane %v2189_v43, 5  ;;  %v2184_v53 = vsel %vm6590_vm4, %v2179_v44, %v2183_v21  ;;  %v395_v55 = vor.u32 %v394_v45, %v390_v35  ;;  %v2197_v56 = vrot.slane %v2195_v26, 5  ;;  %v265_v26 = vld [vmem:[%s6564_s30 + $0x40] sm:$0xf] }
  0x35   : > { %v2205_v57 = vshll.u32 %v6677_v40, 16  ;;  %v5300_v59 = vcombine.low %v2174_v38, %v2184_v53  ;;  %v391_v61 = vsel %vm6590_vm4, %v386_v48, %v390_v35  ;;  %v2201_v2 = vrot.slane %v2199_v51, 4 }
  0x36   : > { %v2192_v0 = vor.u32 %v2191_v50, %v2188_v49  ;;  %v396_v5 = vrot.slane %v395_v55, 4  ;;  %v403_v7 = vshrl.u32 %v262_v52, 16  ;;  %v406_v8 = vshll.u32 %v262_v52, 16 }
  0x37   : > { %v2207_v6 = vrot.slane %v2205_v57, 5  ;;  %5906 = vmatprep.mubr.msk.bf16.mxu0 %vm740_vm3, %v5300_v59  ;;  %v2202_v17 = vor.u32 %v2201_v2, %v2197_v56  ;;  %v412_v10 = vshll.u32 %v263_v58, 16  ;;  %v416_v11 = vshrl.u32 %v263_v58, 16  ;;  %v5264_v2 = vld [vmem:[%s6564_s30 + $0x48] sm:$0xf] }
  0x38   : > { %v2193_v9 = vrot.slane %v2192_v0, 4  ;;  %v401_v13 = vsel %vm6590_vm4, %v396_v5, %v400_v47  ;;  %v405_v14 = vrot.slane %v403_v7, 4  ;;  %v408_v18 = vrot.slane %v406_v8, 5  ;;  %v6717_v8 = vld [vmem:[%s6564_s30 + $0x4c] sm:$0xf] }
  0x39   : > { %v422_v19 = vshll.u32 %v291_v4, 16  ;;  %v5074_v21 = vcombine.low %v391_v61, %v401_v13  ;;  %v2203_v24 = vrot.slane %v2202_v17, 4  ;;  %v414_v25 = vrot.slane %v412_v10, 5  ;;  %v292_v61 = vld [vmem:[%s6564_s30 + $0x44] sm:$0x1] }
  0x3a   : > { %v2198_v23 = vsel %vm6590_vm4, %v2193_v9, %v2197_v56  ;;  %v409_v27 = vor.u32 %v408_v18, %v405_v14  ;;  %v418_v29 = vrot.slane %v416_v11, 4  ;;  %v2210_v35 = vshrl.u32 %v5261_v12, 16 }
  0x3b   : > { %v424_v31 = vrot.slane %v422_v19, 5  ;;  %5771 = vmatmul.mubr.msk.bf16.gmra.mrb[4].mxu1 %vm740_vm3, %v5074_v21  ;;  %v2208_v37 = vsel %vm6590_vm4, %v2203_v24, %v2207_v6  ;;  %v2213_v36 = vshll.u32 %v5261_v12, 16  ;;  %v2219_v38 = vshll.u32 %v6694_v20, 16 }
  0x3c   : > { %v2223_v39 = vshrl.u32 %v6694_v20, 16  ;;  %v5301_v43 = vcombine.low %v2198_v23, %v2208_v37  ;;  %v410_v44 = vrot.slane %v409_v27, 4  ;;  %v419_v45 = vor.u32 %v418_v29, %v414_v25  ;;  %v6725_v23 = vld [vmem:[%s6564_s30 + $0x50] sm:$0x1]  ;;  %v6729_v27 = vld [vmem:[%s6564_s30 + $0x48] sm:$0xf] }
  0x3d   : > { %v2212_v47 = vrot.slane %v2210_v35, 4  ;;  %v2215_v48 = vrot.slane %v2213_v36, 5  ;;  %v2221_v49 = vrot.slane %v2219_v38, 5  ;;  %v2229_v51 = vshll.u32 %v6699_v34, 16  ;;  %v6732_v36 = vld [vmem:[%s6564_s30 + $0x4c] sm:$0xf] }
  0x3e   : > { %v2225_v50 = vrot.slane %v2223_v39, 4  ;;  %5907 = vmatmul.mubr.msk.bf16.gmra.mrb[4].mxu0 %vm740_vm3, %v5301_v43  ;;  %v415_v52 = vsel %vm6590_vm4, %v410_v44, %v414_v25  ;;  %v420_v53 = vrot.slane %v419_v45, 4  ;;  %v427_v55 = vshrl.u32 %v264_v42, 16 }
  0x3f   : > { %v430_v56 = vshll.u32 %v264_v42, 16  ;;  %v2216_v57 = vor.u32 %v2215_v48, %v2212_v47  ;;  %v2231_v59 = vrot.slane %v2229_v51, 5  ;;  %v436_v0 = vshll.u32 %v265_v26, 16 }
  0x40   : > { %v2226_v58 = vor.u32 %v2225_v50, %v2221_v49  ;;  %v425_v4 = vsel %vm6590_vm4, %v420_v53, %v424_v31  ;;  %v429_v5 = vrot.slane %v427_v55, 4  ;;  %v440_v7 = vshrl.u32 %v265_v26, 16  ;;  %v293_v26 = vld [vmem:[%s6564_s30 + $0x50] sm:$0x1]  ;;  %v5267_v53 = vld [vmem:[%s6564_s30 + $0x54] sm:$0xf] }
  0x41   : > { %v432_v6 = vrot.slane %v430_v56, 5  ;;  %v5075_v9 = vcombine.low %v415_v52, %v425_v4  ;;  %v2217_v17 = vrot.slane %v2216_v57, 4  ;;  %v438_v11 = vrot.slane %v436_v0, 5  ;;  %v6748_v4 = vld [vmem:[%s6564_s30 + $0x58] sm:$0xf] }
  0x42   : > { %v2227_v10 = vrot.slane %v2226_v58, 4  ;;  %v442_v13 = vrot.slane %v440_v7, 4  ;;  %v446_v14 = vshll.u32 %v292_v61, 16  ;;  %v2234_v18 = vshrl.u32 %v5264_v2, 16 }
  0x43   : > { %v433_v12 = vor.u32 %v432_v6, %v429_v5  ;;  %5774 = vmatprep.mubr.msk.bf16.mxu1 %vm740_vm3, %v5075_v9  ;;  %v2222_v19 = vsel %vm6590_vm4, %v2217_v17, %v2221_v49  ;;  %v2237_v24 = vshll.u32 %v5264_v2, 16  ;;  %v2243_v25 = vshll.u32 %v6717_v8, 16 }
  0x44   : > { %v2232_v21 = vsel %vm6590_vm4, %v2227_v10, %v2231_v59  ;;  %v443_v35 = vor.u32 %v442_v13, %v438_v11  ;;  %v448_v37 = vrot.slane %v446_v14, 5  ;;  %v2236_v38 = vrot.slane %v2234_v18, 4 }
  0x45   : > { %v5302_v29 = vcombine.low %v2222_v19, %v2232_v21  ;;  %v434_v31 = vrot.slane %v433_v12, 4  ;;  %v2239_v39 = vrot.slane %v2237_v24, 5  ;;  %v2245_v42 = vrot.slane %v2243_v25, 5  ;;  %v6754_v12 = vld [vmem:[%s6564_s30 + $0x5c] sm:$0x1] }
  0x46   : > { %v2247_v43 = vshrl.u32 %v6717_v8, 16  ;;  %v444_v45 = vrot.slane %v443_v35, 4  ;;  %v2253_v47 = vshll.u32 %v6725_v23, 16  ;;  %v451_v48 = vshrl.u32 %v6729_v27, 16  ;;  %v6758_v24 = vld [vmem:[%s6564_s30 + $0x54] sm:$0xf] }
  0x47   : > { %5910 = vmatprep.mubr.msk.bf16.mxu0 %vm740_vm3, %v5302_v29  ;;  %v439_v44 = vsel %vm6590_vm4, %v434_v31, %v438_v11  ;;  %v2240_v49 = vor.u32 %v2239_v39, %v2236_v38  ;;  %v454_v51 = vshll.u32 %v6729_v27, 16  ;;  %v460_v52 = vshll.u32 %v6732_v36, 16 }
  0x48   : > { %v2249_v50 = vrot.slane %v2247_v43, 4  ;;  %v449_v55 = vsel %vm6590_vm4, %v444_v45, %v448_v37  ;;  %v2255_v56 = vrot.slane %v2253_v47, 5  ;;  %v453_v57 = vrot.slane %v451_v48, 4  ;;  %v6764_v37 = vld [vmem:[%s6564_s30 + $0x58] sm:$0xf] }
  0x49   : > { %v464_v58 = vshrl.u32 %v6732_v36, 16  ;;  %v5076_v59 = vcombine.low %v439_v44, %v449_v55  ;;  %v2241_v61 = vrot.slane %v2240_v49, 4  ;;  %v456_v2 = vrot.slane %v454_v51, 5 }
  0x4a   : > { %v2250_v0 = vor.u32 %v2249_v50, %v2245_v42  ;;  %v462_v5 = vrot.slane %v460_v52, 5  ;;  %v470_v7 = vshll.u32 %v293_v26, 16  ;;  %v2258_v9 = vshrl.u32 %v5267_v53, 16  ;;  %v294_v26 = vld [vmem:[%s6564_s30 + $0x5c] sm:$0x1] }
  0x4b   : > { %v466_v6 = vrot.slane %v464_v58, 4  ;;  %5775 = vmatmul.mubr.msk.bf16.gmra.mrb[8].mxu1 %vm740_vm3, %v5076_v59  ;;  %v2246_v17 = vsel %vm6590_vm4, %v2241_v61, %v2245_v42  ;;  %v457_v11 = vor.u32 %v456_v2, %v453_v57  ;;  %v2261_v13 = vshll.u32 %v5267_v53, 16  ;;  %v5270_v53 = vld [vmem:[%s6564_s30 + $0x60] sm:$0xf]  ;;  %v6778_v59 = vld [vmem:[%s6564_s30 + $0x64] sm:$0xf] }
  0x4c   : > { %v2251_v10 = vrot.slane %v2250_v0, 4  ;;  %v472_v18 = vrot.slane %v470_v7, 5  ;;  %v2260_v19 = vrot.slane %v2258_v9, 4  ;;  %v2267_v21 = vshll.u32 %v6748_v4, 16  ;;  %v6785_v9 = vld [vmem:[%s6564_s30 + $0x68] sm:$0x1] }
  0x4d   : > { %v467_v14 = vor.u32 %v466_v6, %v462_v5  ;;  %v458_v29 = vrot.slane %v457_v11, 4  ;;  %v2263_v31 = vrot.slane %v2261_v13, 5  ;;  %v2271_v35 = vshrl.u32 %v6748_v4, 16 }
  0x4e   : > { %v2256_v25 = vsel %vm6590_vm4, %v2251_v10, %v2255_v56  ;;  %v2269_v42 = vrot.slane %v2267_v21, 5  ;;  %v2277_v43 = vshll.u32 %v6754_v12, 16  ;;  %v475_v48 = vshrl.u32 %v6758_v24, 16 }
  0x4f   : > { %v5303_v38 = vcombine.low %v2246_v17, %v2256_v25  ;;  %v468_v39 = vrot.slane %v467_v14, 4  ;;  %v463_v44 = vsel %vm6590_vm4, %v458_v29, %v462_v5  ;;  %v2264_v45 = vor.u32 %v2263_v31, %v2260_v19  ;;  %v6789_v19 = vld [vmem:[%s6564_s30 + $0x60] sm:$0xf] }
  0x50   : > { %v2273_v47 = vrot.slane %v2271_v35, 4  ;;  %v2279_v50 = vrot.slane %v2277_v43, 5  ;;  %v478_v51 = vshll.u32 %v6758_v24, 16  ;;  %v484_v52 = vshll.u32 %v6764_v37, 16  ;;  %v6795_v35 = vld [vmem:[%s6564_s30 + $0x64] sm:$0xf] }
  0x51   : > { %5911 = vmatmul.mubr.msk.bf16.gmra.mrb[8].mxu0 %vm740_vm3, %v5303_v38  ;;  %v473_v49 = vsel %vm6590_vm4, %v468_v39, %v472_v18  ;;  %v2265_v56 = vrot.slane %v2264_v45, 4  ;;  %v477_v58 = vrot.slane %v475_v48, 4  ;;  %v488_v2 = vshrl.u32 %v6764_v37, 16 }
  0x52   : > { %v5077_v55 = vcombine.low %v463_v44, %v473_v49  ;;  %v2274_v57 = vor.u32 %v2273_v47, %v2269_v42  ;;  %v480_v61 = vrot.slane %v478_v51, 5  ;;  %v486_v0 = vrot.slane %v484_v52, 5 }
  0x53   : > { %v494_v5 = vshll.u32 %v294_v26, 16  ;;  %v2270_v6 = vsel %vm6590_vm4, %v2265_v56, %v2269_v42  ;;  %v2282_v17 = vshrl.u32 %v5270_v53, 16  ;;  %v2285_v10 = vshll.u32 %v5270_v53, 16 }
  0x54   : > { %5778 = vmatprep.mubr.msk.bf16.mxu1 %vm740_vm3, %v5077_v55  ;;  %v2275_v7 = vrot.slane %v2274_v57, 4  ;;  %v481_v11 = vor.u32 %v480_v61, %v477_v58  ;;  %v490_v13 = vrot.slane %v488_v2, 4  ;;  %v2291_v18 = vshll.u32 %v6778_v59, 16  ;;  %v5330_v58 = vld [vmem:[%s6564_s30 + $0xc] sm:$0xe] }
  0x55   : > { %v496_v14 = vrot.slane %v494_v5, 5  ;;  %v2284_v25 = vrot.slane %v2282_v17, 4  ;;  %v2287_v29 = vrot.slane %v2285_v10, 5  ;;  %v2295_v31 = vshrl.u32 %v6778_v59, 16 }
  0x56   : > { %v2280_v21 = vsel %vm6590_vm4, %v2275_v7, %v2279_v50  ;;  %v482_v39 = vrot.slane %v481_v11, 4  ;;  %v491_v42 = vor.u32 %v490_v13, %v486_v0  ;;  %v2293_v43 = vrot.slane %v2291_v18, 5  ;;  %v295_v50 = vld [vmem:[%s6564_s30 + $0x68] sm:$0x1] }
  0x57   : > { %v5304_v38 = vcombine.low %v2270_v6, %v2280_v21  ;;  %v2288_v44 = vor.u32 %v2287_v29, %v2284_v25  ;;  %v2297_v45 = vrot.slane %v2295_v31, 4  ;;  %v2301_v47 = vshll.u32 %v6785_v9, 16  ;;  %v6823_v29 = vld [vmem:[%s6564_s30 + $0x70] sm:$0xf] }
  0x58   : > { %v499_v26 = vshrl.u32 %v6789_v19, 16  ;;  %v487_v48 = vsel %vm6590_vm4, %v482_v39, %v486_v0  ;;  %v492_v49 = vrot.slane %v491_v42, 4  ;;  %v502_v51 = vshll.u32 %v6789_v19, 16  ;;  %v6810_v0 = vld [vmem:[%s6564_s30 + $0x6c] sm:$0xf] }
  0x59   : > { %5914 = vmatprep.mubr.msk.bf16.mxu0 %vm740_vm3, %v5304_v38  ;;  %v508_v52 = vshll.u32 %v6795_v35, 16  ;;  %v2289_v53 = vrot.slane %v2288_v44, 4  ;;  %v2298_v55 = vor.u32 %v2297_v45, %v2293_v43  ;;  %v2303_v56 = vrot.slane %v2301_v47, 5 }
  0x5a   : > { %v501_v57 = vrot.slane %v499_v26, 4  ;;  %v497_v61 = vsel %vm6590_vm4, %v492_v49, %v496_v14  ;;  %v504_v2 = vrot.slane %v502_v51, 5  ;;  %v512_v6 = vshrl.u32 %v6795_v35, 16  ;;  %v296_v26 = vld [vmem:[%s6564_s30 + $0x74] sm:$0x1] }
  0x5b   : > { %v510_v5 = vrot.slane %v508_v52, 5  ;;  %v5078_v7 = vcombine.low %v487_v48, %v497_v61  ;;  %v2294_v17 = vsel %vm6590_vm4, %v2289_v53, %v2293_v43  ;;  %v2299_v10 = vrot.slane %v2298_v55, 4  ;;  %v5331_v48 = vld [vmem:[%s6564_s30 + $0x18] sm:$0xe] }
  0x5c   : > { %v518_v11 = vshll.u32 %v295_v50, 16  ;;  %v505_v14 = vor.u32 %v504_v2, %v501_v57  ;;  %v514_v18 = vrot.slane %v512_v6, 4  ;;  %v5346_v21 = vrot.slane %v5330_v58, 9  ;;  %v6842_v53 = vld [vmem:[%s6564_s30 + $0x78] sm:$0xf] }
  0x5d   : > { %v2859_v25 = vrot.slane %v2857_v62, 4  ;;  %5779 = vmatmul.mubr.msk.bf16.gmra.mrb[12].mxu1 %vm740_vm3, %v5078_v7  ;;  %v2304_v31 = vsel %vm6590_vm4, %v2299_v10, %v2303_v56  ;;  %v523_v39 = vshrl.u32 %v6810_v0, 16  ;;  %v526_v42 = vshll.u32 %v6810_v0, 16  ;;  %v297_v57 = vld [vmem:[%s6564_s30 + $0x80] sm:$0x1] }
  0x5e   : > { %v520_v38 = vrot.slane %v518_v11, 5  ;;  %v5305_v43 = vcombine.low %v2294_v17, %v2304_v31  ;;  %v506_v44 = vrot.slane %v505_v14, 4  ;;  %v515_v45 = vor.u32 %v514_v18, %v510_v5  ;;  %v5332_v10 = vld [vmem:[%s6564_s30 + $0x24] sm:$0xe] }
  0x5f   : > { %v2858_v47 = vsel %vm6816_vm7, %v5346_v21, %v2857_v62  ;;  %v2861_v49 = vsel %vm6816_vm7, %v2859_v25, %v2860_v63  ;;  %v525_v50 = vrot.slane %v523_v39, 4  ;;  %v528_v51 = vrot.slane %v526_v42, 5  ;;  %v6868_v39 = vld [vmem:[%s6564_s30 + $0x84] sm:$0xf] }
  0x60   : > { %v532_v52 = vshll.u32 %v6823_v29, 16  ;;  %5915 = vmatmul.mubr.msk.bf16.gmra.mrb[12].mxu0 %vm740_vm3, %v5305_v43  ;;  %v511_v15 = vsel %vm6590_vm4, %v506_v44, %v510_v5  ;;  %v516_v62 = vrot.slane %v515_v45, 4  ;;  %v5363_v55 = vcombine.low %v2858_v47, %v2861_v49  ;;  %v6876_v43 = vld [vmem:[%s6564_s30 + $0x88] sm:$0xf] }
  0x61   : > { %v536_v56 = vshrl.u32 %v6823_v29, 16  ;;  %v529_v63 = vor.u32 %v528_v51, %v525_v50  ;;  %v542_v61 = vshll.u32 %v296_v26, 16  ;;  %v5347_v2 = vrot.slane %v5331_v48, 9 }
  0x62   : > { %v534_v58 = vrot.slane %v532_v52, 5  ;;  %v521_v6 = vsel %vm6590_vm4, %v516_v62, %v520_v38  ;;  %5936 = vmatprep.mubr.msk.bf16.mxu0 %vm740_vm3, %v5363_v55  ;;  %v2868_v5 = vsel %vm6816_vm7, %v6633_v30, %v2867_v28  ;;  %v547_v17 = vshrl.u32 %v6842_v53, 16  ;;  %v298_v52 = vld [vmem:[%s6564_s30 + $0x8c] sm:$0x1] }
  0x63   : > { %v538_v7 = vrot.slane %v536_v56, 4  ;;  %v5079_v11 = vcombine.low %v511_v15, %v521_v6  ;;  %v530_v14 = vrot.slane %v529_v63, 4  ;;  %v544_v18 = vrot.slane %v542_v61, 5 }
  0x64   : > { %v2865_v21 = vsel %vm6816_vm7, %v5347_v2, %v2864_v22  ;;  %v549_v38 = vrot.slane %v547_v17, 4  ;;  %v550_v1 = vshll.u32 %v6842_v53, 16  ;;  %v556_v30 = vshll.u32 %v6849_v16, 16  ;;  %v6881_v22 = vld [vmem:[%s8280_s1 + $0xe] sm:$0x3] }
  0x65   : > { %v539_v25 = vor.u32 %v538_v7, %v534_v58  ;;  %v5364_v31 = vcombine.low %v2865_v21, %v2868_v5  ;;  %5782 = vmatprep.mubr.msk.bf16.mxu1 %vm740_vm3, %v5079_v11  ;;  %v535_v28 = vsel %vm6590_vm4, %v530_v14, %v534_v58  ;;  %v560_v60 = vshrl.u32 %v6849_v16, 16  ;;  %v6900_v5 = vld [vmem:[%s6564_s30 + $0x90] sm:$0xf] }
  0x66   : > { %v566_v42 = vshll.u32 %v297_v57, 16  ;;  %v552_v45 = vrot.slane %v550_v1, 5  ;;  %v5348_v47 = vrot.slane %v5332_v10, 9  ;;  %v2871_v26 = vrot.slane %v6640_v46, 5  ;;  %v5333_v57 = vld [vmem:[%s6564_s30 + $0x30] sm:$0xe] }
  0x67   : > { %v540_v44 = vrot.slane %v539_v25, 4  ;;  %v558_v48 = vrot.slane %v556_v30, 5  ;;  %v562_v49 = vrot.slane %v560_v60, 4  ;;  %v2874_v51 = vrot.slane %v6649_v54, 5  ;;  %v6912_v30 = vld [vmem:[%s6564_s30 + $0x94] sm:$0xf] }
  0x68   : > { %v568_v50 = vrot.slane %v566_v42, 5  ;;  %5937 = vmatmul.mubr.msk.bf16.vlgmr.msra.gmra.mrb[0].mxu0 %vm740_vm3, %v5364_v31  ;;  %v553_v62 = vor.u32 %v552_v45, %v549_v38  ;;  %v2872_v55 = vsel %vm6816_vm7, %v5348_v47, %v2871_v26  ;;  %v2873_v56 = vrot.slane %v2871_v26, 4  ;;  %v299_v60 = vld [vmem:[%s6564_s30 + $0x98] sm:$0x1]  ;;  %v5334_v26 = vld [vmem:[%s6564_s30 + $0x3c] sm:$0xe] }
  0x69   : > { %v545_v15 = vsel %vm6590_vm4, %v540_v44, %v544_v18  ;;  %5969 = vmatpush3.bf16.msra.mxu0 %v6600_v41  ;;  %v563_v46 = vor.u32 %v562_v49, %v558_v48  ;;  %v571_v58 = vshrl.u32 %v6868_v39, 16  ;;  %v574_v54 = vshll.u32 %v6868_v39, 16 }
  0x6a   : > { %v5080_v63 = vcombine.low %v535_v28, %v545_v15  ;;  %v554_v61 = vrot.slane %v553_v62, 4  ;;  %v2875_v2 = vsel %vm6816_vm7, %v2873_v56, %v2874_v51  ;;  %v580_v6 = vshll.u32 %v6876_v43, 16  ;;  %6336 = vmatprep.subr.msk.bf16.mxu0 %vm789_vm0, %v6881_v22 }
  0x6b   : > { %v584_v7 = vshrl.u32 %v6876_v43, 16  ;;  %v564_v41 = vrot.slane %v563_v46, 4  ;;  %v5365_v17 = vcombine.low %v2872_v55, %v2875_v2  ;;  %v573_v10 = vrot.slane %v571_v58, 4  ;;  %v6932_v46 = vld [vmem:[%s6564_s30 + $0xa0] sm:$0xf] }
  0x6c   : > { %5783 = vmatmul.mubr.msk.bf16.gmra.mrb[16].mxu1 %vm740_vm3, %v5080_v63  ;;  %v576_v11 = vrot.slane %v574_v54, 5  ;;  %v559_v14 = vsel %vm6590_vm4, %v554_v61, %v558_v48  ;;  %v582_v18 = vrot.slane %v580_v6, 5  ;;  %v590_v25 = vshll.u32 %v298_v52, 16  ;;  %v6921_v52 = vld [vmem:[%s6564_s30 + $0x9c] sm:$0xf] }
  0x6d   : > { %v586_v21 = vrot.slane %v584_v7, 4  ;;  %v569_v31 = vsel %vm6590_vm4, %v564_v41, %v568_v50  ;;  %5940 = vmatprep.mubr.msk.bf16.mxu0 %vm740_vm3, %v5365_v17  ;;  %v5349_v1 = vrot.slane %v5333_v57, 9  ;;  %v2878_v28 = vrot.slane %v6669_v33, 5 }
  0x6e   : > { %v577_v38 = vor.u32 %v576_v11, %v573_v10  ;;  %v5081_v42 = vcombine.low %v559_v14, %v569_v31  ;;  %v592_v45 = vrot.slane %v590_v25, 5  ;;  %v2881_v47 = vrot.slane %v6677_v40, 5  ;;  %v300_v10 = vld [vmem:[%s6564_s30 + $0xa4] sm:$0x1]  ;;  %v5335_v11 = vld [vmem:[%s6564_s30 + $0x48] sm:$0xe] }
  0x6f   : > { %v587_v44 = vor.u32 %v586_v21, %v582_v18  ;;  %v2879_v49 = vsel %vm6816_vm7, %v5349_v1, %v2878_v28  ;;  %v2880_v50 = vrot.slane %v2878_v28, 4  ;;  %v595_v51 = vshrl.u32 %v6900_v5, 16 }
  0x70   : > { %v578_v48 = vrot.slane %v577_v38, 4  ;;  %5786 = vmatprep.mubr.msk.bf16.mxu1 %vm740_vm3, %v5081_v42  ;;  %v598_v15 = vshll.u32 %v6900_v5, 16  ;;  %v604_v62 = vshll.u32 %v6912_v30, 16  ;;  %v608_v40 = vshrl.u32 %v6912_v30, 16 }
  0x71   : > { %v588_v33 = vrot.slane %v587_v44, 4  ;;  %v2882_v56 = vsel %vm6816_vm7, %v2880_v50, %v2881_v47  ;;  %v597_v57 = vrot.slane %v595_v51, 4  ;;  %v614_v63 = vshll.u32 %v299_v60, 16 }
  0x72   : > { %v583_v55 = vsel %vm6590_vm4, %v578_v48, %v582_v18  ;;  %v5366_v54 = vcombine.low %v2879_v49, %v2882_v56  ;;  %v600_v61 = vrot.slane %v598_v15, 5  ;;  %v606_v2 = vrot.slane %v604_v62, 5  ;;  %v6958_v56 = vld [vmem:[%s6564_s30 + $0xac] sm:$0xf] }
  0x73   : > { %v593_v58 = vsel %vm6590_vm4, %v588_v33, %v592_v45  ;;  %v610_v7 = vrot.slane %v608_v40, 4  ;;  %v616_v41 = vrot.slane %v614_v63, 5  ;;  %v5350_v17 = vrot.slane %v5334_v26, 9  ;;  %v6953_v33 = vld [vmem:[%s6564_s30 + $0xa8] sm:$0xf] }
  0x74   : > { %v5082_v6 = vcombine.low %v583_v55, %v593_v58  ;;  %5941 = vmatmul.mubr.msk.bf16.gmra.mrb[4].mxu0 %vm740_vm3, %v5366_v54  ;;  %v601_v14 = vor.u32 %v600_v61, %v597_v57  ;;  %v2885_v18 = vrot.slane %v6694_v20, 5  ;;  %v2888_v21 = vrot.slane %v6699_v34, 5  ;;  %v301_v61 = vld [vmem:[%s6564_s30 + $0xb0] sm:$0x1] }
  0x75   : > { %v619_v25 = vshrl.u32 %v6921_v52, 16  ;;  %v611_v31 = vor.u32 %v610_v7, %v606_v2  ;;  %v622_v38 = vshll.u32 %v6921_v52, 16  ;;  %v628_v1 = vshll.u32 %v6932_v46, 16 }
  0x76   : > { %5787 = vmatmul.mubr.msk.bf16.gmra.mrb[20].mxu1 %vm740_vm3, %v5082_v6  ;;  %v632_v28 = vshrl.u32 %v6932_v46, 16  ;;  %v602_v60 = vrot.slane %v601_v14, 4  ;;  %v2886_v42 = vsel %vm6816_vm7, %v5350_v17, %v2885_v18  ;;  %v2887_v20 = vrot.slane %v2885_v18, 4  ;;  %v6973_v14 = vld [vmem:[%s6564_s30 + $0xb4] sm:$0xf] }
  0x77   : > { %v621_v44 = vrot.slane %v619_v25, 4  ;;  %v612_v34 = vrot.slane %v611_v31, 4  ;;  %v624_v45 = vrot.slane %v622_v38, 5  ;;  %v630_v47 = vrot.slane %v628_v1, 5 }
  0x78   : > { %v634_v26 = vrot.slane %v632_v28, 4  ;;  %v607_v48 = vsel %vm6590_vm4, %v602_v60, %v606_v2  ;;  %v2889_v49 = vsel %vm6816_vm7, %v2887_v20, %v2888_v21  ;;  %v638_v50 = vshll.u32 %v300_v10, 16  ;;  %v5336_v2 = vld [vmem:[%s6564_s30 + $0x54] sm:$0xe] }
  0x79   : > { %v5351_v51 = vrot.slane %v5335_v11, 9  ;;  %v617_v15 = vsel %vm6590_vm4, %v612_v34, %v616_v41  ;;  %v5367_v62 = vcombine.low %v2886_v42, %v2889_v49  ;;  %v625_v40 = vor.u32 %v624_v45, %v621_v44  ;;  %v6982_v42 = vld [vmem:[%s6564_s30 + $0xb8] sm:$0xf]  ;;  %v302_v49 = vld [vmem:[%s6564_s30 + $0xbc] sm:$0x1] }
  0x7a   : > { %v635_v55 = vor.u32 %v634_v26, %v630_v47  ;;  %v5083_v57 = vcombine.low %v607_v48, %v617_v15  ;;  %v640_v63 = vrot.slane %v638_v50, 5  ;;  %v2892_v58 = vrot.slane %v6717_v8, 5 }
  0x7b   : > { %v2895_v54 = vrot.slane %v6725_v23, 5  ;;  %5944 = vmatprep.mubr.msk.bf16.mxu0 %vm740_vm3, %v5367_v62  ;;  %v626_v6 = vrot.slane %v625_v40, 4  ;;  %v643_v41 = vshrl.u32 %v6953_v33, 16  ;;  %v646_v17 = vshll.u32 %v6953_v33, 16 }
  0x7c   : > { %v636_v7 = vrot.slane %v635_v55, 4  ;;  %5790 = vmatprep.mubr.msk.bf16.mxu1 %vm740_vm3, %v5083_v57  ;;  %v2893_v10 = vsel %vm6816_vm7, %v5351_v51, %v2892_v58  ;;  %v2894_v11 = vrot.slane %v2892_v58, 4  ;;  %v652_v8 = vshll.u32 %v6958_v56, 16  ;;  %v5337_v55 = vld [vmem:[%s6564_s30 + $0x60] sm:$0xe] }
  0x7d   : > { %v656_v23 = vshrl.u32 %v6958_v56, 16  ;;  %v631_v18 = vsel %vm6590_vm4, %v626_v6, %v630_v47  ;;  %v645_v25 = vrot.slane %v643_v41, 4  ;;  %v648_v31 = vrot.slane %v646_v17, 5  ;;  %v5338_v6 = vld [vmem:[%s6564_s30 + $0x6c] sm:$0xe] }
  0x7e   : > { %v641_v21 = vsel %vm6590_vm4, %v636_v7, %v640_v63  ;;  %v2896_v1 = vsel %vm6816_vm7, %v2894_v11, %v2895_v54  ;;  %v654_v28 = vrot.slane %v652_v8, 5  ;;  %v662_v34 = vshll.u32 %v301_v61, 16  ;;  %v5274_v11 = vld [vmem:[%s6564_s30 + $0x70] sm:$0xf]  ;;  %v5275_v8 = vld [vmem:[%s6564_s30 + $0x74] sm:$0x1] }
  0x7f   : > { %v5084_v38 = vcombine.low %v631_v18, %v641_v21  ;;  %v658_v60 = vrot.slane %v656_v23, 4  ;;  %v5368_v20 = vcombine.low %v2893_v10, %v2896_v1  ;;  %v649_v44 = vor.u32 %v648_v31, %v645_v25 }
  0x80   : > { %v5352_v45 = vrot.slane %v5336_v2, 9  ;;  %v2899_v26 = vrot.slane %v6748_v4, 5  ;;  %v2902_v48 = vrot.slane %v6754_v12, 5  ;;  %v667_v50 = vshrl.u32 %v6973_v14, 16 }
  0x81   : > { %5791 = vmatmul.mubr.msk.bf16.gmra.mrb[24].mxu1 %vm740_vm3, %v5084_v38  ;;  %v659_v47 = vor.u32 %v658_v60, %v654_v28  ;;  %5945 = vmatmul.mubr.msk.bf16.gmra.mrb[8].mxu0 %vm740_vm3, %v5368_v20  ;;  %v650_v51 = vrot.slane %v649_v44, 4  ;;  %v664_v15 = vrot.slane %v662_v34, 5  ;;  %v670_v62 = vshll.u32 %v6973_v14, 16 }
  0x82   : > { %v676_v40 = vshll.u32 %v6982_v42, 16  ;;  %v2900_v4 = vsel %vm6816_vm7, %v5352_v45, %v2899_v26  ;;  %v2901_v12 = vrot.slane %v2899_v26, 4  ;;  %v669_v63 = vrot.slane %v667_v50, 4 }
  0x83   : > { %v660_v57 = vrot.slane %v659_v47, 4  ;;  %v655_v58 = vsel %vm6590_vm4, %v650_v51, %v654_v28  ;;  %v672_v54 = vrot.slane %v670_v62, 5  ;;  %v680_v2 = vshrl.u32 %v6982_v42, 16  ;;  %v5339_v47 = vld [vmem:[%s6564_s30 + $0x78] sm:$0xe] }
  0x84   : > { %v678_v61 = vrot.slane %v676_v40, 5  ;;  %v2903_v41 = vsel %vm6816_vm7, %v2901_v12, %v2902_v48  ;;  %v686_v17 = vshll.u32 %v302_v49, 16  ;;  %v5353_v10 = vrot.slane %v5337_v55, 9  ;;  %v6412_v51 = vld [vmem:[%s6564_s30] sm:$0xf] }
  0x85   : > { %v665_v7 = vsel %vm6590_vm4, %v660_v57, %v664_v15  ;;  %v5369_v18 = vcombine.low %v2900_v4, %v2903_v41  ;;  %v673_v21 = vor.u32 %v672_v54, %v669_v63  ;;  %v682_v25 = vrot.slane %v680_v2, 4  ;;  %v7020_v15 = vld [vmem:[%s6564_s30 + $0x4] sm:$0xf]  ;;  %v7024_v40 = vld [vmem:[%s6564_s30 + $0x7c] sm:$0xf] }
  0x86   : > { %v5085_v23 = vcombine.low %v655_v58, %v665_v7  ;;  %v688_v31 = vrot.slane %v686_v17, 5  ;;  %v2906_v38 = vrot.slane %v6778_v59, 5  ;;  %v2909_v1 = vrot.slane %v6785_v9, 5  ;;  %v7027_v55 = vld [vmem:[%s6564_s30 + $0x80] sm:$0x1] }
  0x87   : > { %v5354_v28 = vrot.slane %v5338_v6, 9  ;;  %5948 = vmatprep.mubr.msk.bf16.mxu0 %vm740_vm3, %v5369_v18  ;;  %v674_v60 = vrot.slane %v673_v21, 4  ;;  %v683_v20 = vor.u32 %v682_v25, %v678_v61  ;;  %v2913_v44 = vrot.slane %v5274_v11, 5  ;;  %v5280_v57 = vld [vmem:[%s6564_s30 + $0x88] sm:$0xf] }
  0x88   : > { %5794 = vmatprep.mubr.msk.bf16.mxu1 %vm740_vm3, %v5085_v23  ;;  %v2916_v34 = vrot.slane %v5275_v8, 5  ;;  %v2907_v45 = vsel %vm6816_vm7, %v5353_v10, %v2906_v38  ;;  %v2908_v59 = vrot.slane %v2906_v38, 4  ;;  %v5103_v62 = vcombine.low %v6412_v51, %v7020_v15  ;;  %v5281_v54 = vld [vmem:[%s6564_s30 + $0x8c] sm:$0x1]  ;;  %v5283_v17 = vld [vmem:[%s6564_s30 + $0x94] sm:$0xf] }
  0x89   : > { %v679_v9 = vsel %vm6590_vm4, %v674_v60, %v678_v61  ;;  %v684_v26 = vrot.slane %v683_v20, 4  ;;  %v2914_v48 = vsel %vm6816_vm7, %v5354_v28, %v2913_v44  ;;  %v2915_v49 = vrot.slane %v2913_v44, 4  ;;  %v5340_v61 = vld [vmem:[%s6564_s30 + $0x84] sm:$0xe]  ;;  %v5341_v23 = vld [vmem:[%s6564_s30 + $0x90] sm:$0xe] }
  0x8a   : > { %v2910_v50 = vsel %vm6816_vm7, %v2908_v59, %v2909_v1  ;;  %v5355_v58 = vrot.slane %v5339_v47, 9  ;;  %v2920_v7 = vrot.slane %v7024_v40, 5  ;;  %v2923_v41 = vrot.slane %v7027_v55, 5  ;;  %v5284_v25 = vld [vmem:[%s6564_s30 + $0x98] sm:$0x1] }
  0x8b   : > { %v689_v4 = vsel %vm6590_vm4, %v684_v26, %v688_v31  ;;  %v5370_v12 = vcombine.low %v2907_v45, %v2910_v50  ;;  %v2917_v63 = vsel %vm6816_vm7, %v2915_v49, %v2916_v34  ;;  %v5356_v10 = vrot.slane %v5340_v61, 9  ;;  %v5286_v31 = vld [vmem:[%s6564_s30 + $0xa0] sm:$0xf]  ;;  %v5287_v60 = vld [vmem:[%s6564_s30 + $0xa4] sm:$0x1] }
  0x8c   : > { %v5086_v2 = vcombine.low %v679_v9, %v689_v4  ;;  %v5371_v6 = vcombine.low %v2914_v48, %v2917_v63  ;;  %v2927_v11 = vrot.slane %v5280_v57, 5  ;;  %v2930_v8 = vrot.slane %v5281_v54, 5  ;;  %v5342_v20 = vld [vmem:[%s6564_s30 + $0x9c] sm:$0xe]  ;;  %v6414_v44 = vld [vmem:[%s6564_s30 + $0xc] sm:$0xf] }
  0x8d   : > { %5949 = vmatmul.mubr.msk.bf16.gmra.mrb[12].mxu0 %vm740_vm3, %v5370_v12  ;;  %v2921_v18 = vsel %vm6816_vm7, %v5355_v58, %v2920_v7  ;;  %v2922_v21 = vrot.slane %v2920_v7, 4  ;;  %v2934_v28 = vrot.slane %v5283_v17, 5  ;;  %v7054_v34 = vld [vmem:[%s6564_s30 + $0x10] sm:$0xf]  ;;  %v6416_v47 = vld [vmem:[%s6564_s30 + $0x18] sm:$0xf] }
  0x8e   : > { %5795 = vmatmul.mubr.msk.bf16.gmra.mrb[28].mxu1 %vm740_vm3, %v5086_v2  ;;  %5952 = vmatprep.mubr.msk.bf16.mxu0 %vm740_vm3, %v5371_v6  ;;  %v2928_v38 = vsel %vm6816_vm7, %v5356_v10, %v2927_v11  ;;  %v2929_v1 = vrot.slane %v2927_v11, 4  ;;  %v5104_v45 = vcombine.low %v6414_v44, %v7054_v34  ;;  %v7061_v9 = vld [vmem:[%s6564_s30 + $0x1c] sm:$0xf]  ;;  %v5357_v48 = vrot.slane %v5341_v23, 9  ;;  %v5289_v57 = vld [vmem:[%s6564_s30 + $0xac] sm:$0xf] }
  0x8f   : > { %5800 = vmatprep.mubr.msk.bf16.mxu1 %vm740_vm3, %v5103_v62  ;;  %v2924_v59 = vsel %vm6816_vm7, %v2922_v21, %v2923_v41  ;;  %v5105_v26 = vcombine.low %v6416_v47, %v7061_v9  ;;  %v2936_v51 = vrot.slane %v2934_v28, 4  ;;  %v2937_v62 = vrot.slane %v5284_v25, 5  ;;  %v6418_v54 = vld [vmem:[%s8280_s1 + $0x4] sm:$0x3]  ;;  %v5292_v2 = vld [vmem:[%s6564_s30 + $0xb8] sm:$0xf] }
  0x90   : > { %v5372_v49 = vcombine.low %v2921_v18, %v2924_v59  ;;  %v2931_v50 = vsel %vm6816_vm7, %v2929_v1, %v2930_v8  ;;  %v5358_v12 = vrot.slane %v5342_v20, 9  ;;  %v2941_v63 = vrot.slane %v5286_v31, 5  ;;  %v7076_v7 = vld [vmem:[%s8280_s1 + $0x6] sm:$0x3]  ;;  %v5290_v10 = vld [vmem:[%s6564_s30 + $0xb0] sm:$0x1] }
  0x91   : > { %v5373_v4 = vcombine.low %v2928_v38, %v2931_v50  ;;  %v2944_v58 = vrot.slane %v5287_v60, 5  ;;  %v1508_v61 = vsel %vm789_vm0, %v6418_v54, 0  ;;  %v2935_v41 = vsel %vm6816_vm7, %v5357_v48, %v2934_v28  ;;  %v5343_v11 = vld [vmem:[%s6564_s30 + $0xa8] sm:$0xe]  ;;  %v5293_v25 = vld [vmem:[%s6564_s30 + $0xbc] sm:$0x1] }
  0x92   : > { %v2943_v6 = vrot.slane %v2941_v63, 4  ;;  %v2938_v17 = vsel %vm6816_vm7, %v2936_v51, %v2937_v62  ;;  %v2948_v8 = vrot.slane %v5289_v57, 5  ;;  %v2942_v23 = vsel %vm6816_vm7, %v5358_v12, %v2941_v63  ;;  %v5344_v31 = vld [vmem:[%s6564_s30 + $0xb4] sm:$0xe]  ;;  %v6419_v38 = vld [vmem:[%s6564_s30 + $0x24] sm:$0xf] }
  0x93   : > { %v2955_v21 = vrot.slane %v5292_v2, 5  ;;  %v7097_v1 = vld [vmem:[%s6564_s30 + $0x28] sm:$0xf]  ;;  %v5374_v60 = vcombine.low %v2935_v41, %v2938_v17  ;;  %v5359_v44 = vrot.slane %v5343_v11, 9  ;;  %v2951_v59 = vrot.slane %v5290_v10, 5 }
  0x94   : > { %v2945_v18 = vsel %vm6816_vm7, %v2943_v6, %v2944_v58  ;;  %v5106_v28 = vcombine.low %v6419_v38, %v7097_v1  ;;  %v6421_v47 = vld [vmem:[%s6564_s30 + $0x30] sm:$0xf]  ;;  %v2958_v51 = vrot.slane %v5293_v25, 5  ;;  %v5295_v62 = vld [vmem:[%s6564_s30 + $0xc4] sm:$0xf]  ;;  %v2343_v25 = vshrl.u32 %v7024_v40, 16 }
  0x95   : > { %5953 = vmatmul.mubr.msk.bf16.gmra.mrb[16].mxu0 %vm740_vm3, %v5372_v49  ;;  %v5375_v20 = vcombine.low %v2942_v23, %v2945_v18  ;;  %v5360_v49 = vrot.slane %v5344_v31, 9  ;;  %v2957_v50 = vrot.slane %v2955_v21, 4  ;;  %v2949_v57 = vsel %vm6816_vm7, %v5359_v44, %v2948_v8  ;;  %v5345_v12 = vld [vmem:[%s6564_s30 + $0xc0] sm:$0xe]  ;;  %v6423_v41 = vld [vmem:[%s6564_s30 + $0x3c] sm:$0xf] }
  0x96   : > { %5801 = vmatmul.mubr.msk.bf16.vlgmr.msra.gmra.mrb[0].mxu1 %vm740_vm3, %v5104_v45  ;;  %5956 = vmatprep.mubr.msk.bf16.mxu0 %vm740_vm3, %v5373_v4  ;;  %v2950_v45 = vrot.slane %v2948_v8, 4  ;;  %v2962_v63 = vrot.slane %v5295_v62, 5  ;;  %v5361_v6 = vrot.slane %v5345_v12, 9  ;;  %v7122_v17 = vld [vmem:[%s6564_s30 + $0x40] sm:$0xf]  ;;  %v5109_v18 = vcombine.low %v6729_v27, %v6732_v36  ;;  %v6375_v62 = vld [vmem:[%s6564_s30 + $0x24] sm:$0xff]  }
  0x97   : > { %5833 = vmatpush3.bf16.msra.mxu1 %v1508_v61  ;;  %5804 = vmatprep.mubr.msk.bf16.mxu1 %vm740_vm3, %v5105_v26  ;;  %v7102_v26 = vld [vmem:[%s6564_s30 + $0x34] sm:$0xf]  ;;  %v2956_v58 = vsel %vm6816_vm7, %v5360_v49, %v2955_v21  ;;  %v2959_v54 = vsel %vm6816_vm7, %v2957_v50, %v2958_v51  ;;  %v5296_v61 = vld [vmem:[%s6564_s30 + $0xc8] sm:$0x1]  ;;  %v5108_v10 = vcombine.low %v6423_v41, %v7122_v17  ;;  %v2339_v21 = vshll.u32 %v7024_v40, 16 }
  0x98   : > { %6331 = vmatprep.subr.msk.bf16.mxu1 %vm789_vm0, %v7076_v7  ;;  %v5107_v48 = vcombine.low %v6421_v47, %v7102_v26  ;;  %v2952_v4 = vsel %vm6816_vm7, %v2950_v45, %v2951_v59  ;;  %v5377_v11 = vcombine.low %v2956_v58, %v2959_v54  ;;  %v2964_v8 = vrot.slane %v2962_v63, 4  ;;  %v1246_v45 = vld [vmem:[%s6564_s30] sm:$0xe]  ;;  %v1247_v59 = vld [vmem:[%s6564_s30 + $0xc] sm:$0xe] }
  0x99   : > { %v5376_v2 = vcombine.low %v2949_v57, %v2952_v4  ;;  %v2965_v23 = vrot.slane %v5296_v61, 5  ;;  %v2963_v31 = vsel %vm6816_vm7, %v5361_v6, %v2962_v63  ;;  %v7137_v27 = vrot.slane %v2339_v21, 5  ;;  %v1250_v41 = vld [vmem:[%s6564_s30 + $0x30] sm:$0xe] }
  0x9a   : > { %v2345_v36 = vrot.slane %v2343_v25, 4  ;;  %v5111_v44 = vcombine.low %v6789_v19, %v6795_v35  ;;  %v2349_v47 = vshll.u32 %v7027_v55, 16  ;;  %v5135_v19 = vrot.slane %v1246_v45, 9 }
  0x9b   : > { %v2966_v38 = vsel %vm6816_vm7, %v2964_v8, %v2965_v23  ;;  %8302 = vst [vmem:[#allocation3_spill] sm:$0xff] %v7137_v27  ;;  %v5136_v35 = vrot.slane %v1247_v59, 9  ;;  %v1313_v4 = vrot.slane %v7061_v9, 5  ;;  %v1320_v12 = vrot.slane %v7097_v1, 5  ;;  %v1251_v8 = vld [vmem:[%s6564_s30 + $0x3c] sm:$0xe] }
  0x9c   : > { %v5378_v40 = vcombine.low %v2963_v31, %v2966_v38  ;;  %v2346_v49 = vor.u32 %v2345_v36, %v7137_v27  ;;  %v7157_v51 = vrot.slane %v2349_v47, 5  ;;  %v5112_v58 = vcombine.low %v6810_v0, %v6823_v29  ;;  %v1252_v31 = vld [vmem:[%s6564_s30 + $0x48] sm:$0xe]  ;;  %v6429_v59 = vld [vmem:[%s6564_s30 + $0x38] sm:$0x1] }
  0x9d   : > { %5957 = vmatmul.mubr.msk.bf16.gmra.mrb[20].mxu0 %vm740_vm3, %v5374_v60  ;;  %v5110_v60 = vcombine.low %v6758_v24, %v6764_v37  ;;  %v6426_v24 = vld [vmem:[%s6564_s30 + $0x14] sm:$0x1]  ;;  %v4154_v54 = vsel %vm789_vm0, %v6881_v22, 0  ;;  %v5113_v61 = vcombine.low %v6842_v53, %v6849_v16  ;;  %v5114_v6 = vcombine.low %v6868_v39, %v6876_v43  ;;  %v6427_v16 = vld [vmem:[%s6564_s30 + $0x20] sm:$0x1] }
  0x9e   : > { %5805 = vmatmul.mubr.msk.bf16.gmra.mrb[4].mxu1 %vm740_vm3, %v5106_v28  ;;  %5960 = vmatprep.mubr.msk.bf16.mxu0 %vm740_vm3, %v5375_v20  ;;  %v1306_v28 = vrot.slane %v7054_v34, 5  ;;  %v6373_v20 = vld [vmem:[%s6564_s30 + $0x18] sm:$0xff]   ;;  %v6425_v34 = vld [vmem:[%s6564_s30 + $0x8] sm:$0x1]  ;;  %v1309_v37 = vrot.slane %v6426_v24, 5  ;;  %8303 = vst [vmem:[#allocation4_spill] sm:$0xff] %v7157_v51  ;;  %v5115_v9 = vcombine.low %v6900_v5, %v6912_v30 }
  0x9f   : > { %5808 = vmatprep.mubr.msk.bf16.mxu1 %vm740_vm3, %v5107_v48  ;;  %v1299_v48 = vrot.slane %v7020_v15, 5  ;;  %v1302_v50 = vrot.slane %v6425_v34, 5  ;;  %v1248_v15 = vld [vmem:[%s6564_s30 + $0x18] sm:$0xe]  ;;  %v7162_v63 = vrot.slane %v2346_v49, 4  ;;  %v1316_v22 = vrot.slane %v6427_v16, 5 }
  0xa0   : > { %v1308_v55 = vrot.slane %v1306_v28, 4  ;;  %v5137_v1 = vrot.slane %v1248_v15, 9  ;;  %v7184_v29 = vsel %vm6816_vm7, %v5136_v35, %v1306_v28  ;;  %v1322_v25 = vrot.slane %v1320_v12, 4  ;;  %v5460_v24 = vld [vmem:[%s6564_s30 + $0x18] sm:$0xf] }
  0xa1   : > { %v1301_v57 = vrot.slane %v1299_v48, 4  ;;  %8304 = vst [vmem:[#allocation5_spill] sm:$0xff] %v7162_v63  ;;  %v7180_v0 = vsel %vm6816_vm7, %v5135_v19, %v1299_v48  ;;  %v1330_v47 = vrot.slane %v6429_v59, 5  ;;  %v7221_v49 = vsel %vm789_vm0, %v7076_v7, 0  ;;  %v5461_v7 = vld [vmem:[%s6564_s30 + $0x1c] sm:$0xf] }
  0xa2   : > { %v7188_v53 = vsel %vm6816_vm7, %v1308_v55, %v1309_v37  ;;  %v7225_v34 = vsel %vm6816_vm7, %v5137_v1, %v1313_v4  ;;  %v6379_v37 = vld [vmem:[%s6564_s30 + $0x3c] sm:$0xff]   ;;  %v5140_v35 = vrot.slane %v1251_v8, 9  ;;  %v6430_v55 = vld [vmem:[%s6564_s30 + $0x44] sm:$0x1]  ;;  %v3675_v8 = vshll.u32 %v5460_v24, 16 }
  0xa3   : > { %v7199_v23 = vsel %vm6816_vm7, %v1301_v57, %v1302_v50  ;;  %v1253_v50 = vld [vmem:[%s6564_s30 + $0x54] sm:$0xe]  ;;  %v1337_v15 = vrot.slane %v6430_v55, 5  ;;  %v5464_v39 = vld [vmem:[%s6564_s30 + $0x28] sm:$0xf] }
  0xa4   : > { %v6437_v5 = vld [vmem:[%s6564_s30 + $0x70] sm:$0xf] }
  0xa5   : > { %5961 = vmatmul.mubr.msk.bf16.gmra.mrb[24].mxu0 %vm740_vm3, %v5376_v2  ;;  %v1249_v2 = vld [vmem:[%s6564_s30 + $0x24] sm:$0xe]  ;;  %v1362_v30 = vrot.slane %v6437_v5, 5 }
  0xa6   : > { %5809 = vmatmul.mubr.msk.bf16.gmra.mrb[8].mxu1 %vm740_vm3, %v5108_v10  ;;  %5964 = vmatprep.mubr.msk.bf16.mxu0 %vm740_vm3, %v5377_v11  ;;  %v1327_v10 = vrot.slane %v7102_v26, 5  ;;  %v6377_v11 = vld [vmem:[%s6564_s30 + $0x30] sm:$0xff]   ;;  %v5138_v21 = vrot.slane %v1249_v2, 9 }
  0xa7   : > { %5812 = vmatprep.mubr.msk.bf16.mxu1 %vm740_vm3, %v5109_v18  ;;  %v7195_v26 = vld [vmem:[%s8280_s1 + $0x10] sm:$0x3]  ;;  %v1315_v18 = vrot.slane %v1313_v4, 4  ;;  %v1364_v48 = vrot.slane %v1362_v30, 4 }
  0xa8   : > { %v1329_v45 = vrot.slane %v1327_v10, 4  ;;  %v7232_v19 = vsel %vm6816_vm7, %v5138_v21, %v1320_v12  ;;  %v3685_v21 = vshrl.u32 %v5461_v7, 16 }
  0xa9   : > { %v7241_v4 = vsel %vm6816_vm7, %v1315_v18, %v1316_v22  ;;  %v3672_v22 = vshrl.u32 %v5460_v24, 16  ;;  %v3681_v18 = vshll.u32 %v5461_v7, 16  ;;  %v5463_v24 = vld [vmem:[%s6564_s30 + $0x24] sm:$0xf] }
  0xaa   : > { %v7254_v1 = vsel %vm6816_vm7, %v1329_v45, %v1330_v47 }
  0xab   : > { %v3674_v43 = vrot.slane %v3672_v22, 4  ;;  %v7296_v7 = vrot.slane %v3681_v18, 5  ;;  %v3699_v22 = vshll.u32 %v5463_v24, 16  ;;  %v3709_v18 = vshrl.u32 %v5464_v39, 16 }
  0xad   : > { %5965 = vmatmul.mubr.msk.bf16.gmra.mrb[28].mxu0 %vm740_vm3, %v5378_v40  ;;  %v6428_v40 = vld [vmem:[%s6564_s30 + $0x2c] sm:$0x1]  ;;  %v3701_v27 = vrot.slane %v3699_v22, 5 }
  0xae   : > { %5813 = vmatmul.mubr.msk.bf16.gmra.mrb[12].mxu1 %vm740_vm3, %v5110_v60  ;;  %5970 = vmatprep.mubr.msk.bf16.mxu0 %vm740_vm3, %v6373_v20  ;;  %v1323_v28 = vrot.slane %v6428_v40, 5  ;;  %v1334_v60 = vrot.slane %v7122_v17, 5  ;;  %v6433_v40 = vld [vmem:[%s6564_s30 + $0x50] sm:$0x1]  ;;  %v6438_v17 = vld [vmem:[%s6564_s30 + $0x74] sm:$0x1] }
  0xaf   : > { %5816 = vmatprep.mubr.msk.bf16.mxu1 %vm740_vm3, %v5111_v44  ;;  %v5139_v44 = vrot.slane %v1250_v41, 9  ;;  %v5142_v41 = vrot.slane %v1253_v50, 9  ;;  %v1254_v50 = vld [vmem:[%s6564_s30 + $0x60] sm:$0xe]  ;;  %v5465_v20 = vld [vmem:[%s6564_s30 + $0x2c] sm:$0x1] }
  0xb0   : > { %v1336_v12 = vrot.slane %v1334_v60, 4  ;;  %v7267_v45 = vsel %vm6816_vm7, %v5140_v35, %v1334_v60  ;;  %v6434_v35 = vld [vmem:[%s6564_s30 + $0x5c] sm:$0x1] }
  0xb1   : > { %v7250_v2 = vsel %vm6816_vm7, %v5139_v44, %v1327_v10  ;;  %v1351_v55 = vrot.slane %v6434_v35, 5  ;;  %v1255_v35 = vld [vmem:[%s6564_s30 + $0x6c] sm:$0xe] }
  0xb2   : > { %v7271_v59 = vsel %vm6816_vm7, %v1336_v12, %v1337_v15  ;;  %v6435_v15 = vld [vmem:[%s6564_s30 + $0x64] sm:$0xf]  ;;  %v3687_v12 = vrot.slane %v3685_v21, 4  ;;  %v5144_v5 = vrot.slane %v1255_v35, 9 }
  0xb3   : > { %v6385_v21 = vld [vmem:[%s6564_s30 + $0x60] sm:$0xff]  }
  0xb5   : > { %5971 = vmatmul.mubr.msk.bf16.vlgmr.msra.gmra.mrb[0].mxu0 %vm740_vm3, %v6375_v62  ;;  %v6431_v62 = vld [vmem:[%s6564_s30 + $0x4c] sm:$0xf] }
  0xb6   : > { %5817 = vmatmul.mubr.msk.bf16.gmra.mrb[16].mxu1 %vm740_vm3, %v5112_v58  ;;  %6003 = vmatpush3.bf16.msra.mxu0 %v4154_v54  ;;  %v1341_v57 = vrot.slane %v6431_v62, 5  ;;  %v7245_v58 = vsel %vm6816_vm7, %v1322_v25, %v1323_v28  ;;  %v5141_v54 = vrot.slane %v1252_v31, 9  ;;  %v1344_v28 = vrot.slane %v6433_v40, 5 }
  0xb7   : > { %5820 = vmatprep.mubr.msk.bf16.mxu1 %vm740_vm3, %v5113_v61  ;;  %5974 = vmatprep.mubr.msk.bf16.mxu0 %vm740_vm3, %v6377_v11  ;;  %v6381_v61 = vld [vmem:[%s6564_s30 + $0x48] sm:$0xff]   ;;  %v6432_v11 = vld [vmem:[%s6564_s30 + $0x58] sm:$0xf]  ;;  %v1355_v62 = vrot.slane %v6435_v15, 5  ;;  %v5467_v15 = vld [vmem:[%s6564_s30 + $0x34] sm:$0xf] }
  0xb8   : > { %6337 = vmatprep.subr.msk.bf16.mxu0 %vm789_vm0, %v7195_v26  ;;  %v1348_v16 = vrot.slane %v6432_v11, 5  ;;  %v1343_v31 = vrot.slane %v1341_v57, 4  ;;  %v7275_v47 = vsel %vm6816_vm7, %v5141_v54, %v1341_v57  ;;  %v5462_v57 = vld [vmem:[%s6564_s30 + $0x20] sm:$0x1]  ;;  %v5466_v54 = vld [vmem:[%s6564_s30 + $0x30] sm:$0xf] }
  0xb9   : > { %v5143_v11 = vrot.slane %v1254_v50, 9  ;;  %v3723_v50 = vshll.u32 %v5466_v54, 16  ;;  %v3691_v25 = vshll.u32 %v5462_v57, 16  ;;  %v3729_v36 = vshll.u32 %v5467_v15, 16 }
  0xba   : > { %v7286_v60 = vsel %vm6816_vm7, %v5142_v41, %v1348_v16  ;;  %v7302_v41 = vsel %vm6816_vm7, %v1343_v31, %v1344_v28  ;;  %v1357_v31 = vrot.slane %v1355_v62, 4  ;;  %v3720_v28 = vshrl.u32 %v5466_v54, 16 }
  0xbb   : > { %v7344_v35 = vrot.slane %v3729_v36, 5 }
  0xbd   : > { %5975 = vmatmul.mubr.msk.bf16.gmra.mrb[4].mxu0 %vm740_vm3, %v6379_v37  ;;  %v1350_v37 = vrot.slane %v1348_v16, 4  ;;  %v6436_v16 = vld [vmem:[%s6564_s30 + $0x68] sm:$0x1] }
  0xbe   : > { %5821 = vmatmul.mubr.msk.bf16.gmra.mrb[20].mxu1 %vm740_vm3, %v5114_v6  ;;  %5978 = vmatprep.mubr.msk.bf16.mxu0 %vm740_vm3, %v6381_v61  ;;  %v3677_v6 = vrot.slane %v3675_v8, 5  ;;  %v6383_v61 = vld [vmem:[%s6564_s30 + $0x54] sm:$0xff]   ;;  %v1358_v40 = vrot.slane %v6436_v16, 5  ;;  %v3705_v8 = vshll.u32 %v5464_v39, 16  ;;  %v3688_v16 = vor.u32 %v3687_v12, %v7296_v7 }
  0xbf   : > { %5824 = vmatprep.mubr.msk.bf16.mxu1 %vm740_vm3, %v5115_v9  ;;  %v3696_v9 = vshrl.u32 %v5463_v24, 16  ;;  %v7311_v44 = vsel %vm6816_vm7, %v1350_v37, %v1351_v55  ;;  %v1365_v24 = vrot.slane %v6438_v17, 5  ;;  %v3733_v39 = vshrl.u32 %v5467_v15, 16 }
  0xc0   : > { %v3678_v10 = vor.u32 %v3677_v6, %v3674_v43  ;;  %v7317_v37 = vrot.slane %v3705_v8, 5  ;;  %v3711_v55 = vrot.slane %v3709_v18, 4  ;;  %v8305_v43 = vcombine.low %v6921_v52, %v6932_v46  ;;  %v6439_v8 = vld [vmem:[%s6564_s30 + $0x7c] sm:$0xf]  ;;  %v7353_v18 = vld [vmem:[%s6564_s30 + $0x38] sm:$0x1] }
  0xc1   : > { %v3698_v38 = vrot.slane %v3696_v9, 4  ;;  %v7326_v17 = vsel %vm6816_vm7, %v5143_v11, %v1355_v62  ;;  %v7330_v57 = vsel %vm6816_vm7, %v1357_v31, %v1358_v40  ;;  %v3722_v6 = vrot.slane %v3720_v28, 4  ;;  %8307 = vst [vmem:[#allocation6_spill] sm:$0xff] %v7353_v18 }
  0xc2   : > { %v3725_v12 = vrot.slane %v3723_v50, 5  ;;  %v8306_v52 = vcombine.low %v6953_v33, %v6958_v56  ;;  %v3679_v46 = vrot.slane %v3678_v10, 4  ;;  %v3689_v54 = vrot.slane %v3688_v16, 4  ;;  %v6387_v33 = vld [vmem:[%s6564_s30 + $0x6c] sm:$0xff]   ;;  %v1257_v16 = vld [vmem:[%s6564_s30 + $0x84] sm:$0xe] }
  0xc3   : > { %v3715_v62 = vshll.u32 %v5465_v20, 16  ;;  %v7338_v11 = vsel %vm6816_vm7, %v5144_v5, %v1362_v30  ;;  %v7342_v40 = vsel %vm6816_vm7, %v1364_v48, %v1365_v24  ;;  %v3735_v9 = vrot.slane %v3733_v39, 4  ;;  %v6388_v48 = vld [vmem:[%s6564_s30 + $0x78] sm:$0xff]  }
  0xc4   : > { %v3702_v10 = vor.u32 %v3701_v27, %v3698_v38  ;;  %v3712_v20 = vor.u32 %v3711_v55, %v7317_v37  ;;  %v1369_v30 = vrot.slane %v6439_v8, 5  ;;  %v3726_v38 = vor.u32 %v3725_v12, %v3722_v6  ;;  %v5469_v5 = vld [vmem:[%s6564_s30 + $0x3c] sm:$0xf] }
  0xc5   : > { %5979 = vmatmul.mubr.msk.bf16.gmra.mrb[8].mxu0 %vm740_vm3, %v6383_v61  ;;  %v3693_v61 = vrot.slane %v3691_v25, 5  ;;  %v1256_v25 = vld [vmem:[%s6564_s30 + $0x78] sm:$0xe]  ;;  %v7369_v50 = vrot.slane %v3715_v62, 5  ;;  %v3736_v39 = vor.u32 %v3735_v9, %v7344_v35  ;;  %v3739_v55 = vshll.u32 %v7353_v18, 16 }
  0xc6   : > { %5825 = vmatmul.mubr.msk.bf16.gmra.mrb[24].mxu1 %vm740_vm3, %v8305_v43  ;;  %5982 = vmatprep.mubr.msk.bf16.mxu0 %vm740_vm3, %v6385_v21  ;;  %v3684_v21 = vsel %vm6590_vm4, %v3679_v46, %v7296_v7  ;;  %v5145_v24 = vrot.slane %v1256_v25, 9  ;;  %v6440_v43 = vld [vmem:[%s6564_s30 + $0x88] sm:$0xf]  ;;  %v7377_v7 = vld [vmem:[%s6564_s30 + $0x40] sm:$0xf]  ;;  %v3703_v12 = vrot.slane %v3702_v10, 4  ;;  %v8309_v62 = vcombine.low %v6973_v14, %v6982_v42 }
  0xc7   : > { %5828 = vmatprep.mubr.msk.bf16.mxu1 %vm740_vm3, %v8306_v52  ;;  %v3694_v31 = vsel %vm6590_vm4, %v3689_v54, %v3693_v61  ;;  %v1376_v6 = vrot.slane %v6440_v43, 5  ;;  %8308 = vst [vmem:[#allocation7_spill] sm:$0xff] %v7377_v7  ;;  %v3713_v52 = vrot.slane %v3712_v20, 4  ;;  %v1371_v46 = vrot.slane %v1369_v30, 4  ;;  %v6441_v54 = vld [vmem:[%s6564_s30 + $0x80] sm:$0x1] }
  0xc8   : > { %v1372_v61 = vrot.slane %v6441_v54, 5  ;;  %v3727_v9 = vrot.slane %v3726_v38, 4  ;;  %v5146_v25 = vrot.slane %v1257_v16, 9  ;;  %v3744_v8 = vshrl.u32 %v5469_v5, 16  ;;  %v6389_v10 = vld [vmem:[%s6564_s30 + $0x84] sm:$0xff]  }
  0xc9   : > { %v3747_v43 = vshll.u32 %v5469_v5, 16  ;;  %v7391_v20 = vcombine.low %v3684_v21, %v3694_v31  ;;  %v7395_v14 = vsel %vm789_vm0, %v7195_v26, 0  ;;  %v3757_v38 = vshrl.u32 %v7377_v7, 16  ;;  %v6390_v21 = vld [vmem:[%s6564_s30 + $0x90] sm:$0xff]   ;;  %v6446_v18 = vld [vmem:[%s6564_s30 + $0xa0] sm:$0xf] }
  0xca   : > { %v3737_v16 = vrot.slane %v3736_v39, 4  ;;  %v3741_v5 = vrot.slane %v3739_v55, 5  ;;  %v1378_v54 = vrot.slane %v1376_v6, 4  ;;  %v3708_v31 = vsel %vm6590_vm4, %v3703_v12, %v7317_v37 }
  0xcb   : > { %v3718_v26 = vsel %vm6590_vm4, %v3713_v52, %v7369_v50  ;;  %v7410_v39 = vsel %vm6816_vm7, %v5145_v24, %v1369_v30  ;;  %v7414_v55 = vsel %vm6816_vm7, %v1371_v46, %v1372_v61  ;;  %v3732_v37 = vsel %vm6590_vm4, %v3727_v9, %v7344_v35  ;;  %v5475_v30 = vld [vmem:[%s6564_s30 + $0x54] sm:$0xf]  ;;  %v7431_v24 = vld [vmem:[%s6564_s30 + $0x58] sm:$0xf]  ;;  %v7436_v61 = vld [vmem:[%s6564_s30 + $0x90] sm:$0xe] }
  0xcc   : > { %v7427_v12 = vsel %vm6816_vm7, %v5146_v25, %v1376_v6  ;;  %v3746_v50 = vrot.slane %v3744_v8, 4  ;;  %v3749_v52 = vrot.slane %v3747_v43, 5  ;;  %v3759_v46 = vrot.slane %v3757_v38, 4 }
  0xcd   : > { %5983 = vmatmul.mubr.msk.bf16.gmra.mrb[12].mxu0 %vm740_vm3, %v6387_v33  ;;  %v8310_v33 = vcombine.low %v7180_v0, %v7199_v23  ;;  %v6442_v0 = vld [vmem:[%s6564_s30 + $0x8c] sm:$0x1]  ;;  %v3742_v36 = vsel %vm6590_vm4, %v3737_v16, %v3741_v5  ;;  %v3792_v25 = vshrl.u32 %v5475_v30, 16  ;;  %v3795_v8 = vshll.u32 %v5475_v30, 16 }
  0xce   : > { %5829 = vmatmul.mubr.msk.bf16.gmra.mrb[28].mxu1 %vm740_vm3, %v8309_v62  ;;  %5986 = vmatprep.mubr.msk.bf16.mxu0 %vm740_vm3, %v6388_v48  ;;  %v3753_v48 = vshll.u32 %v7377_v7, 16  ;;  %v1379_v23 = vrot.slane %v6442_v0, 5  ;;  %v5472_v62 = vld [vmem:[%s6564_s30 + $0x48] sm:$0xf]  ;;  %v7420_v0 = vld [vmem:[%s6564_s30 + $0x4c] sm:$0xf]  ;;  %v8312_v38 = vcombine.low %v7184_v29, %v7188_v53  ;;  %v7454_v16 = vcombine.low %v3708_v31, %v3718_v26 }
  0xcf   : > { %5834 = vmatprep.mubr.msk.bf16.mxu1 %vm740_vm3, %v8310_v33  ;;  %v7417_v33 = vld [vmem:[%s6564_s30 + $0x44] sm:$0x1]  ;;  %v3768_v27 = vshrl.u32 %v5472_v62, 16  ;;  %v3771_v15 = vshll.u32 %v5472_v62, 16  ;;  %v3777_v6 = vshll.u32 %v7420_v0, 16  ;;  %v3781_v9 = vshrl.u32 %v7420_v0, 16 }
  0xd0   : > { %8311 = vst [vmem:[#allocation8_spill] sm:$0xff] %v7417_v33  ;;  %v7433_v28 = vrot.slane %v3753_v48, 5  ;;  %v7442_v35 = vsel %vm6816_vm7, %v1378_v54, %v1379_v23  ;;  %v3801_v43 = vshll.u32 %v7431_v24, 16  ;;  %v3805_v48 = vshrl.u32 %v7431_v24, 16  ;;  %v5478_v31 = vld [vmem:[%s6564_s30 + $0x60] sm:$0xf] }
  0xd1   : > { %v3763_v5 = vshll.u32 %v7417_v33, 16  ;;  %v5147_v54 = vrot.slane %v7436_v61, 9  ;;  %v8313_v23 = vcombine.low %v7225_v34, %v7241_v4  ;;  %v7465_v29 = vcombine.low %v3732_v37, %v3742_v36  ;;  %v6391_v26 = vld [vmem:[%s6564_s30 + $0x9c] sm:$0xff]   ;;  %v6392_v30 = vld [vmem:[%s6564_s30 + $0xa8] sm:$0xff]  }
  0xd2   : > { %v3750_v53 = vor.u32 %v3749_v52, %v3746_v50  ;;  %v3770_v62 = vrot.slane %v3768_v27, 4  ;;  %v7476_v34 = vrot.slane %v3777_v6, 5  ;;  %v3783_v4 = vrot.slane %v3781_v9, 4  ;;  %v6443_v36 = vld [vmem:[%s8280_s1 + $0x8] sm:$0x3] }
  0xd3   : > { %v3794_v27 = vrot.slane %v3792_v25, 4  ;;  %v3797_v37 = vrot.slane %v3795_v8, 5  ;;  %v7485_v50 = vrot.slane %v3801_v43, 5  ;;  %v3807_v52 = vrot.slane %v3805_v48, 4  ;;  %v6444_v6 = vld [vmem:[%s6564_s30 + $0x94] sm:$0xf] }
  0xd4   : > { %v7491_v9 = vld [vmem:[%s6564_s30 + $0x64] sm:$0xf]  ;;  %v3816_v61 = vshrl.u32 %v5478_v31, 16  ;;  %v7493_v22 = vrot.slane %v3750_v53, 4  ;;  %v1390_v25 = vrot.slane %v6446_v18, 5  ;;  %v3784_v43 = vor.u32 %v3783_v4, %v7476_v34 }
  0xd5   : > { %5987 = vmatmul.mubr.msk.bf16.gmra.mrb[16].mxu0 %vm740_vm3, %v6389_v10  ;;  %8314 = vst [vmem:[#allocation9_spill] sm:$0xff] %v7491_v9  ;;  %v3819_v10 = vshll.u32 %v5478_v31, 16  ;;  %v3798_v31 = vor.u32 %v3797_v37, %v3794_v27  ;;  %v3808_v53 = vor.u32 %v3807_v52, %v7485_v50  ;;  %v8315_v18 = vcombine.low %v7232_v19, %v7245_v58  ;;  %v6393_v37 = vld [vmem:[%s6564_s30 + $0xb4] sm:$0xff]  }
  0xd6   : > { %5835 = vmatmul.mubr.msk.bf16.vlgmr.msra.gmra.mrb[0].mxu1 %vm740_vm3, %v8312_v38  ;;  %5990 = vmatprep.mubr.msk.bf16.mxu0 %vm740_vm3, %v6390_v21  ;;  %v3773_v21 = vrot.slane %v3771_v15, 5  ;;  %v7474_v38 = vld [vmem:[%s6564_s30 + $0x50] sm:$0x1]  ;;  %v7483_v15 = vld [vmem:[%s6564_s30 + $0x5c] sm:$0x1]  ;;  %v8316_v27 = vcombine.low %v7250_v2, %v7254_v1  ;;  %v1392_v52 = vrot.slane %v1390_v25, 4 }
  0xd7   : > { %5867 = vmatpush3.bf16.msra.mxu1 %v7221_v49  ;;  %5838 = vmatprep.mubr.msk.bf16.mxu1 %vm740_vm3, %v8313_v23  ;;  %v3760_v49 = vor.u32 %v3759_v46, %v7433_v28  ;;  %v7487_v46 = vrot.slane %v3763_v5, 5  ;;  %v1383_v23 = vrot.slane %v6444_v6, 5  ;;  %v3787_v48 = vshll.u32 %v7474_v38, 16  ;;  %v1259_v5 = vld [vmem:[%s6564_s30 + $0x9c] sm:$0xe] }
  0xd8   : > { %6333 = vmatprep.subr.msk.bf16.mxu1 %vm789_vm0, %v6443_v36  ;;  %v6445_v36 = vld [vmem:[%s6564_s30 + $0x98] sm:$0x1]  ;;  %v3774_v7 = vor.u32 %v3773_v21, %v3770_v62  ;;  %v3811_v6 = vshll.u32 %v7483_v15, 16  ;;  %v3829_v62 = vshrl.u32 %v7491_v9, 16  ;;  %v3821_v4 = vrot.slane %v3819_v10, 5 }
  0xd9   : > { %v1386_v33 = vrot.slane %v6445_v36, 5  ;;  %v3761_v8 = vrot.slane %v3760_v49, 4  ;;  %v3825_v36 = vshll.u32 %v7491_v9, 16  ;;  %v7512_v21 = vsel %vm6816_vm7, %v5147_v54, %v1383_v23  ;;  %v7523_v2 = vld [vmem:[%s6564_s30 + $0x68] sm:$0x1] }
  0xda   : > { %v3818_v49 = vrot.slane %v3816_v61, 4  ;;  %v3775_v19 = vrot.slane %v3774_v7, 4  ;;  %v5148_v58 = vrot.slane %v1259_v5, 9  ;;  %v3785_v3 = vrot.slane %v3784_v43, 4  ;;  %8317 = vst [vmem:[#allocation10_spill] sm:$0xff] %v7523_v2  ;;  %v6394_v5 = vld [vmem:[%s6564_s30 + $0xc0] sm:$0xff]  }
  0xdb   : > { %v3789_v54 = vrot.slane %v3787_v48, 5  ;;  %v3813_v63 = vrot.slane %v3811_v6, 5  ;;  %v1397_v61 = vrot.slane %v6958_v56, 5  ;;  %v3799_v10 = vrot.slane %v3798_v31, 4  ;;  %v1261_v31 = vld [vmem:[%s6564_s30 + $0xb4] sm:$0xe] }
  0xdc   : > { %v3809_v51 = vrot.slane %v3808_v53, 4  ;;  %v7525_v1 = vrot.slane %v3825_v36, 5  ;;  %v3831_v7 = vrot.slane %v3829_v62, 4  ;;  %v3756_v43 = vsel %vm6590_vm4, %v7493_v22, %v7433_v28  ;;  %v6448_v62 = vld [vmem:[%s6564_s30 + $0xb0] sm:$0x1] }
  0xdd   : > { %5991 = vmatmul.mubr.msk.bf16.gmra.mrb[20].mxu0 %vm740_vm3, %v6391_v26  ;;  %v1385_v26 = vrot.slane %v1383_v23, 4  ;;  %v1260_v23 = vld [vmem:[%s6564_s30 + $0xa8] sm:$0xe]  ;;  %v3766_v48 = vsel %vm6590_vm4, %v3761_v8, %v7487_v46  ;;  %v3822_v6 = vor.u32 %v3821_v4, %v3818_v49  ;;  %v3780_v53 = vsel %vm6590_vm4, %v3775_v19, %v7476_v34  ;;  %v5481_v46 = vld [vmem:[%s6564_s30 + $0x6c] sm:$0xf] }
  0xde   : > { %5839 = vmatmul.mubr.msk.bf16.gmra.mrb[4].mxu1 %vm740_vm3, %v8315_v18  ;;  %5994 = vmatprep.mubr.msk.bf16.mxu0 %vm740_vm3, %v6392_v30  ;;  %v6447_v18 = vld [vmem:[%s6564_s30 + $0xa4] sm:$0x1]  ;;  %v7545_v36 = vsel %vm6816_vm7, %v5148_v58, %v1390_v25  ;;  %v5149_v28 = vrot.slane %v1260_v23, 9  ;;  %v1399_v8 = vrot.slane %v1397_v61, 4  ;;  %v3835_v49 = vshll.u32 %v7523_v2, 16 }
  0xdf   : > { %5842 = vmatprep.mubr.msk.bf16.mxu1 %vm740_vm3, %v8316_v27  ;;  %v1393_v30 = vrot.slane %v6447_v18, 5  ;;  %v7537_v56 = vsel %vm6816_vm7, %v1385_v26, %v1386_v33  ;;  %v3790_v33 = vsel %vm6590_vm4, %v3785_v3, %v3789_v54  ;;  %v1400_v26 = vrot.slane %v6448_v62, 5  ;;  %v5484_v18 = vld [vmem:[%s6564_s30 + $0x78] sm:$0xf]  ;;  %v7600_v54 = vld [vmem:[%s6564_s30 + $0xbc] sm:$0x1] }
  0xe0   : > { %v3804_v34 = vsel %vm6590_vm4, %v3799_v10, %v7485_v50  ;;  %v3814_v25 = vsel %vm6590_vm4, %v3809_v51, %v3813_v63  ;;  %v3832_v4 = vor.u32 %v3831_v7, %v7525_v1  ;;  %v5150_v27 = vrot.slane %v1261_v31, 9  ;;  %v7574_v51 = vld [vmem:[%s6564_s30 + $0x70] sm:$0xf]  ;;  %v7604_v10 = vld [vmem:[%s6564_s30 + $0x7c] sm:$0xf] }
  0xe1   : > { %v7549_v22 = vsel %vm6816_vm7, %v1392_v52, %v1393_v30  ;;  %v8319_v3 = vcombine.low %v7267_v45, %v7271_v59  ;;  %v7570_v19 = vrot.slane %v3822_v6, 4  ;;  %v1404_v50 = vrot.slane %v6982_v42, 5  ;;  %8320 = vst [vmem:[#allocation12_spill] sm:$0xff] %v7574_v51  ;;  %8322 = vst [vmem:[#allocation13_spill] sm:$0xff] %v7604_v10  ;;  %v5487_v7 = vld [vmem:[%s6564_s30 + $0x84] sm:$0xf] }
  0xe2   : > { %8318 = vst [vmem:[#allocation11_spill] sm:$0xff] %v7549_v22  ;;  %v3840_v63 = vshrl.u32 %v5481_v46, 16  ;;  %v8321_v45 = vcombine.low %v7275_v47, %v7302_v41  ;;  %v7582_v58 = vcombine.low %v3780_v53, %v3790_v33  ;;  %v7588_v42 = vsel %vm6816_vm7, %v5149_v28, %v1397_v61  ;;  %v6395_v61 = vld [vmem:[%s6564_s30 + $0xcc] sm:$0xff]   ;;  %v7616_v31 = vld [vmem:[%s6564_s30 + $0x88] sm:$0xf] }
  0xe3   : > { %v7591_v30 = vcombine.low %v3804_v34, %v3814_v25  ;;  %v7595_v47 = vsel %vm6816_vm7, %v1399_v8, %v1400_v26  ;;  %v7597_v41 = vrot.slane %v3835_v49, 5  ;;  %v3849_v6 = vshll.u32 %v7574_v51, 16  ;;  %8323 = vst [vmem:[#allocation14_spill] sm:$0xff] %v7616_v31  ;;  %v5490_v62 = vld [vmem:[%s6564_s30 + $0x90] sm:$0xf] }
  0xe4   : > { %v7622_v28 = vrot.slane %v1404_v50, 4  ;;  %v7624_v33 = vrot.slane %v3840_v63, 4  ;;  %v3853_v8 = vshrl.u32 %v7574_v51, 16  ;;  %v3864_v26 = vshrl.u32 %v5484_v18, 16  ;;  %v7631_v25 = vld [vmem:[%s6564_s30 + $0x94] sm:$0xf] }
  0xe5   : > { %5995 = vmatmul.mubr.msk.bf16.gmra.mrb[24].mxu0 %vm740_vm3, %v6393_v37  ;;  %v7568_v37 = vcombine.low %v3756_v43, %v3766_v48  ;;  %v7612_v43 = vsel %vm6816_vm7, %v5150_v27, %v1404_v50  ;;  %v3843_v48 = vshll.u32 %v5481_v46, 16  ;;  %v3867_v49 = vshll.u32 %v5484_v18, 16  ;;  %8324 = vst [vmem:[#allocation15_spill] sm:$0xff] %v7631_v25  ;;  %v7669_v2 = vld [vmem:[%s6564_s30 + $0x8c] sm:$0x1] }
  0xe6   : > { %5843 = vmatmul.mubr.msk.bf16.gmra.mrb[8].mxu1 %vm740_vm3, %v8319_v3  ;;  %5998 = vmatprep.mubr.msk.bf16.mxu0 %vm740_vm3, %v6394_v5  ;;  %v7608_v5 = vrot.slane %v3832_v4, 4  ;;  %v3873_v46 = vshll.u32 %v7604_v10, 16  ;;  %v3877_v34 = vshrl.u32 %v7604_v10, 16  ;;  %v3888_v4 = vshrl.u32 %v5487_v7, 16 }
  0xe7   : > { %5846 = vmatprep.mubr.msk.bf16.mxu1 %vm740_vm3, %v8321_v45  ;;  %v3891_v27 = vshll.u32 %v5487_v7, 16  ;;  %v3897_v3 = vshll.u32 %v7616_v31, 16  ;;  %v3901_v50 = vshrl.u32 %v7616_v31, 16  ;;  %v7641_v45 = vld [vmem:[%s6564_s30 + $0x74] sm:$0x1]  ;;  %v3845_v18 = vrot.slane %v3843_v48, 5 }
  0xe8   : > { %v3912_v52 = vshrl.u32 %v5490_v62, 16  ;;  %v3915_v53 = vshll.u32 %v5490_v62, 16  ;;  %v8325_v7 = vcombine.low %v7286_v60, %v7311_v44  ;;  %v3855_v59 = vrot.slane %v3853_v8, 4  ;;  %v5493_v48 = vld [vmem:[%s6564_s30 + $0x9c] sm:$0xf] }
  0xe9   : > { %v3921_v63 = vshll.u32 %v7631_v25, 16  ;;  %v3925_v23 = vshrl.u32 %v7631_v25, 16  ;;  %v8326_v62 = vcombine.low %v7326_v17, %v7330_v57  ;;  %v7659_v44 = vld [vmem:[%s6564_s30 + $0x80] sm:$0x1]  ;;  %v3866_v60 = vrot.slane %v3864_v26, 4 }
  0xea   : > { %8327 = vst [vmem:[#allocation16_spill] sm:$0xff] %v7659_v44  ;;  %v3890_v31 = vrot.slane %v3888_v4, 4  ;;  %v3893_v8 = vrot.slane %v3891_v27, 5  ;;  %v7663_v10 = vrot.slane %v3897_v3, 5  ;;  %v3903_v51 = vrot.slane %v3901_v50, 4 }
  0xeb   : > { %v7666_v25 = vld [vmem:[%s6564_s30 + $0xa0] sm:$0xf]  ;;  %v3914_v17 = vrot.slane %v3912_v52, 4  ;;  %v3917_v57 = vrot.slane %v3915_v53, 5  ;;  %v3939_v9 = vshll.u32 %v5493_v48, 16  ;;  %v3846_v26 = vor.u32 %v3845_v18, %v7624_v33 }
  0xec   : > { %v3883_v27 = vshll.u32 %v7659_v44, 16  ;;  %v7678_v3 = vld [vmem:[%s6564_s30 + $0x98] sm:$0x1]  ;;  %v3945_v50 = vshll.u32 %v7666_v25, 16  ;;  %v3949_v52 = vshrl.u32 %v7666_v25, 16  ;;  %v3894_v22 = vor.u32 %v3893_v8, %v3890_v31 }
  0xed   : > { %5999 = vmatmul.mubr.msk.bf16.gmra.mrb[28].mxu0 %vm740_vm3, %v6395_v61  ;;  %v7649_v61 = vrot.slane %v3849_v6, 5  ;;  %v3879_v6 = vrot.slane %v3877_v34, 4  ;;  %v3927_v34 = vrot.slane %v3925_v23, 4  ;;  %v3907_v33 = vshll.u32 %v7669_v2, 16 }
  0xee   : > { %5847 = vmatmul.mubr.msk.bf16.gmra.mrb[12].mxu1 %vm740_vm3, %v8325_v7  ;;  %6004 = vmatprep.mubr.msk.bf16.mxu0 %vm740_vm3, %v7391_v20  ;;  %v3869_v7 = vrot.slane %v3867_v49, 5  ;;  %v7661_v20 = vrot.slane %v3873_v46, 5  ;;  %v3859_v49 = vshll.u32 %v7641_v45, 16  ;;  %v7673_v46 = vrot.slane %v3921_v63, 5 }
  0xef   : > { %5850 = vmatprep.mubr.msk.bf16.mxu1 %vm740_vm3, %v8326_v62  ;;  %v3936_v62 = vshrl.u32 %v5493_v48, 16  ;;  %v3856_v4 = vor.u32 %v3855_v59, %v7649_v61  ;;  %v3904_v23 = vor.u32 %v3903_v51, %v7663_v10  ;;  %v3918_v59 = vor.u32 %v3917_v57, %v3914_v17  ;;  %v7711_v57 = vld [vmem:[%s6564_s30 + $0xa4] sm:$0x1] }
  0xf0   : > { %v3870_v53 = vor.u32 %v3869_v7, %v3866_v60  ;;  %v3880_v48 = vor.u32 %v3879_v6, %v7661_v20  ;;  %v3941_v18 = vrot.slane %v3939_v9, 5  ;;  %v8328_v44 = vcombine.low %v7338_v11, %v7342_v40 }
  0xf1   : > { %v3938_v63 = vrot.slane %v3936_v62, 4  ;;  %v8329_v31 = vrot.slane %v7600_v54, 5  ;;  %v3861_v51 = vrot.slane %v3859_v49, 5  ;;  %v3928_v60 = vor.u32 %v3927_v34, %v7673_v46  ;;  %v7714_v34 = vld [vmem:[%s6564_s30 + $0xac] sm:$0xf] }
  0xf2   : > { %v3931_v9 = vshll.u32 %v7678_v3, 16  ;;  %v8330_v11 = vcombine.low %v7410_v39, %v7414_v55  ;;  %v3847_v40 = vrot.slane %v3846_v26, 4  ;;  %v7707_v54 = vrot.slane %v3945_v50, 5 }
  0xf3   : > { %v3871_v7 = vrot.slane %v3870_v53, 4  ;;  %v3881_v6 = vrot.slane %v3880_v48, 4  ;;  %v3885_v8 = vrot.slane %v3883_v27, 5  ;;  %v3909_v17 = vrot.slane %v3907_v33, 5  ;;  %v7724_v48 = vld [vmem:[%s6564_s30 + $0xb0] sm:$0x1] }
  0xf4   : > { %v3895_v39 = vrot.slane %v3894_v22, 4  ;;  %v3905_v55 = vrot.slane %v3904_v23, 4  ;;  %v3919_v62 = vrot.slane %v3918_v59, 4  ;;  %v3942_v49 = vor.u32 %v3941_v18, %v3938_v63 }
  0xf5   : > { %6005 = vmatmul.mubr.msk.bf16.vlgmr.msra.gmra.mrb[0].mxu0 %vm740_vm3, %v7454_v16  ;;  %v7697_v16 = vsel %vm6816_vm7, %v7622_v28, %v8329_v31  ;;  %v3951_v28 = vrot.slane %v3949_v52, 4  ;;  %v3933_v26 = vrot.slane %v3931_v9, 5  ;;  %v3852_v52 = vsel %vm6590_vm4, %v3847_v40, %v7649_v61 }
  0xf6   : > { %5851 = vmatmul.mubr.msk.bf16.gmra.mrb[16].mxu1 %vm740_vm3, %v8328_v44  ;;  %6037 = vmatpush3.bf16.msra.mxu0 %v7395_v14  ;;  %v3857_v14 = vrot.slane %v3856_v4, 4  ;;  %v5496_v44 = vld [vmem:[%s6564_s30 + $0xa8] sm:$0xf]  ;;  %v3955_v22 = vshll.u32 %v7711_v57, 16  ;;  %v3876_v33 = vsel %vm6590_vm4, %v3871_v7, %v7661_v20  ;;  %v3886_v23 = vsel %vm6590_vm4, %v3881_v6, %v3885_v8 }
  0xf7   : > { %5854 = vmatprep.mubr.msk.bf16.mxu1 %vm740_vm3, %v8330_v11  ;;  %6008 = vmatprep.mubr.msk.bf16.mxu0 %vm740_vm3, %v7465_v29  ;;  %v3929_v29 = vrot.slane %v3928_v60, 4  ;;  %v3960_v4 = vshrl.u32 %v5496_v44, 16  ;;  %v3963_v50 = vshll.u32 %v5496_v44, 16  ;;  %v3952_v53 = vor.u32 %v3951_v28, %v7707_v54  ;;  %v5545_v11 = vld [vmem:[%s6564_s30 + $0x48] sm:$0xe] }
  0xf8   : > { %v3862_v27 = vsel %vm6590_vm4, %v3857_v14, %v3861_v51  ;;  %v3969_v59 = vshll.u32 %v7714_v34, 16  ;;  %v3973_v61 = vshrl.u32 %v7714_v34, 16  ;;  %v3900_v63 = vsel %vm6590_vm4, %v3895_v39, %v7663_v10  ;;  %v7789_v39 = vld [vmem:[%s6564_s30 + $0xb8] sm:$0xf] }
  0xf9   : > { %v3910_v18 = vsel %vm6590_vm4, %v3905_v55, %v3909_v17  ;;  %v3924_v20 = vsel %vm6590_vm4, %v3919_v62, %v7673_v46  ;;  %v3943_v31 = vrot.slane %v3942_v49, 4  ;;  %v8331_v51 = vcombine.low %v7427_v12, %v7442_v35 }
  0xfa   : > { %v3962_v10 = vrot.slane %v3960_v4, 4  ;;  %v3965_v60 = vrot.slane %v3963_v50, 5  ;;  %v3979_v9 = vshll.u32 %v7724_v48, 16  ;;  %v8332_v46 = vcombine.low %v7512_v21, %v7537_v56  ;;  %v5499_v21 = vld [vmem:[%s6564_s30 + $0xb4] sm:$0xf] }
  0xfb   : > { %v5166_v12 = vcombine.low %v7588_v42, %v7595_v47  ;;  %v8333_v35 = vsel %vm6590_vm4, %v7608_v5, %v7597_v41  ;;  %v3953_v14 = vrot.slane %v3952_v53, 4  ;;  %v3957_v28 = vrot.slane %v3955_v22, 5  ;;  %v5547_v4 = vld [vmem:[%s6564_s30 + $0x60] sm:$0xe]  ;;  %v5548_v53 = vld [vmem:[%s6564_s30 + $0x6c] sm:$0xe] }
  0xfc   : > { %v5167_v56 = vcombine.low %v7612_v43, %v7697_v16  ;;  %v7772_v44 = vcombine.low %v3852_v52, %v3862_v27  ;;  %v7774_v42 = vrot.slane %v3969_v59, 5  ;;  %v3975_v47 = vrot.slane %v3973_v61, 4  ;;  %v8342_v16 = vld [vmem:[#allocation4_spill] sm:$0xff] }
  0xfd   : > { %6009 = vmatmul.mubr.msk.bf16.gmra.mrb[4].mxu0 %vm740_vm3, %v7568_v37  ;;  %v3934_v37 = vsel %vm6590_vm4, %v3929_v29, %v3933_v26  ;;  %v7776_v41 = vcombine.low %v3876_v33, %v3886_v23  ;;  %v7778_v5 = vcombine.low %v3900_v63, %v3910_v18  ;;  %v3948_v6 = vsel %vm6590_vm4, %v3943_v31, %v7707_v54  ;;  %v8335_v23 = vld [vmem:[#allocation11_spill] sm:$0xff]  ;;  %v5502_v63 = vld [vmem:[%s6564_s30 + $0xc0] sm:$0xf]  ;;  %v8337_v18 = vld [vmem:[#allocation9_spill] sm:$0xff] }
  0xfe   : > { %5855 = vmatmul.mubr.msk.bf16.gmra.mrb[20].mxu1 %vm740_vm3, %v8331_v51  ;;  %6012 = vmatprep.mubr.msk.bf16.mxu0 %vm740_vm3, %v7582_v58  ;;  %v8334_v58 = vsel %vm6590_vm4, %v7570_v19, %v7525_v1  ;;  %v7780_v7 = vcombine.low %v3924_v20, %v3934_v37  ;;  %v5561_v1 = vrot.slane %v5545_v11, 9  ;;  %v5546_v19 = vld [vmem:[%s6564_s30 + $0x54] sm:$0xe]  ;;  %v3966_v8 = vor.u32 %v3965_v60, %v3962_v10  ;;  %v8338_v31 = vld [vmem:[#allocation10_spill] sm:$0xff] }
  0xff   : > { %5858 = vmatprep.mubr.msk.bf16.mxu1 %vm740_vm3, %v8332_v46  ;;  %v5515_v40 = vcombine.low %v8334_v58, %v8333_v35  ;;  %v7786_v17 = vrot.slane %v3979_v9, 5  ;;  %v3984_v55 = vshrl.u32 %v5499_v21, 16  ;;  %v3958_v62 = vsel %vm6590_vm4, %v3953_v14, %v3957_v28  ;;  %v8339_v9 = vld [vmem:[#allocation12_spill] sm:$0xff]  ;;  %v7838_v35 = vld [vmem:[%s6564_s30 + $0xbc] sm:$0x1] }
 0x100   : > { %v3987_v49 = vshll.u32 %v5499_v21, 16  ;;  %v4443_v29 = vrot.slane %v7420_v0, 5  ;;  %v4446_v26 = vrot.slane %v7474_v38, 5  ;;  %v3976_v50 = vor.u32 %v3975_v47, %v7774_v42  ;;  %v7841_v58 = vld [vmem:[%s6564_s30 + $0xc4] sm:$0xf] }
 0x101   : > { %v5562_v52 = vrot.slane %v5546_v19, 9  ;;  %v4450_v54 = vrot.slane %v7431_v24, 5  ;;  %v4453_v27 = vrot.slane %v7483_v15, 5  ;;  %v3993_v22 = vshll.u32 %v7789_v39, 16  ;;  %v5549_v19 = vld [vmem:[%s6564_s30 + $0x78] sm:$0xe] }
 0x102   : > { %v3997_v33 = vshrl.u32 %v7789_v39, 16  ;;  %v7806_v0 = vsel %vm6816_vm7, %v5561_v1, %v4443_v29  ;;  %v4445_v38 = vrot.slane %v4443_v29, 4  ;;  %v8336_v59 = vcombine.low %v7545_v36, %v8335_v23  ;;  %v8340_v23 = vld [vmem:[#allocation13_spill] sm:$0xff] }
 0x103   : > { %v7813_v24 = vcombine.low %v3948_v6, %v3958_v62  ;;  %v7817_v15 = vsel %vm6816_vm7, %v5562_v52, %v4450_v54  ;;  %v5563_v61 = vrot.slane %v5547_v4, 9  ;;  %v4457_v20 = vrot.slane %v8337_v18, 5  ;;  %v6396_v6 = vld [vmem:[%s6564_s30 + $0xc] sm:$0xff]  }
 0x104   : > { %v7823_v36 = vsel %vm6816_vm7, %v4445_v38, %v4446_v26  ;;  %v4460_v51 = vrot.slane %v8338_v31, 5  ;;  %v5564_v37 = vrot.slane %v5548_v53, 9  ;;  %v4464_v11 = vrot.slane %v8339_v9, 5 }
 0x105   : > { %6013 = vmatmul.mubr.msk.bf16.gmra.mrb[8].mxu0 %vm740_vm3, %v7591_v30  ;;  %v4452_v30 = vrot.slane %v4450_v54, 4  ;;  %v5578_v10 = vcombine.low %v7806_v0, %v7823_v36  ;;  %v4467_v46 = vrot.slane %v7641_v45, 5  ;;  %v7847_v14 = vsel %vm6816_vm7, %v5563_v61, %v4457_v20 }
 0x106   : > { %5859 = vmatmul.mubr.msk.bf16.gmra.mrb[24].mxu1 %vm740_vm3, %v8336_v59  ;;  %6016 = vmatprep.mubr.msk.bf16.mxu0 %vm740_vm3, %v5515_v40  ;;  %v4459_v28 = vrot.slane %v4457_v20, 4  ;;  %v7849_v21 = vrot.slane %v3984_v55, 4  ;;  %v4008_v47 = vshrl.u32 %v5502_v63, 16  ;;  %v7853_v45 = vsel %vm6816_vm7, %v5564_v37, %v4464_v11  ;;  %v5276_v55 = vld [vmem:[%s6564_s30 + $0x78] sm:$0xf]  ;;  %v8341_v59 = vld [vmem:[#allocation16_spill] sm:$0xff] }
 0x107   : > { %5862 = vmatprep.mubr.msk.bf16.mxu1 %vm740_vm3, %v5166_v12  ;;  %v7831_v60 = vsel %vm6816_vm7, %v4452_v30, %v4453_v27  ;;  %v7835_v12 = vrot.slane %v3966_v8, 4  ;;  %v4466_v1 = vrot.slane %v4464_v11, 4  ;;  %v7857_v8 = vrot.slane %v3976_v50, 4 }
 0x108   : > { %v5579_v40 = vcombine.low %v7817_v15, %v7831_v60  ;;  %v7859_v62 = vrot.slane %v3987_v49, 5  ;;  %v4011_v29 = vshll.u32 %v5502_v63, 16  ;;  %v7863_v26 = vsel %vm6816_vm7, %v4459_v28, %v4460_v51  ;;  %v8344_v28 = vld [vmem:[#allocation14_spill] sm:$0xff] }
 0x109   : > { %v7866_v4 = vrot.slane %v3993_v22, 5  ;;  %v7868_v52 = vrot.slane %v3997_v33, 4  ;;  %v5580_v54 = vcombine.low %v7847_v14, %v7863_v26  ;;  %v7874_v27 = vsel %vm6816_vm7, %v4466_v1, %v4467_v46  ;;  %v5550_v33 = vld [vmem:[%s6564_s30 + $0x84] sm:$0xe]  ;;  %v6397_v1 = vld [vmem:[%s6564_s30 + $0x18] sm:$0xff]  }
 0x10a   : > { %v4003_v49 = vshll.u32 %v7838_v35, 16  ;;  %v4017_v50 = vshll.u32 %v7841_v58, 16  ;;  %v5581_v53 = vcombine.low %v7853_v45, %v7874_v27  ;;  %v5565_v22 = vrot.slane %v5549_v19, 9  ;;  %v6459_v60 = vld [vmem:[%s6564_s30 + $0xa0] sm:$0xf] }
 0x10b   : > { %v4010_v38 = vrot.slane %v4008_v47, 4  ;;  %v4474_v30 = vrot.slane %v8341_v59, 5  ;;  %v2330_v61 = vshrl.u32 %v5276_v55, 16  ;;  %v4013_v63 = vrot.slane %v4011_v29, 5  ;;  %v5505_v29 = vld [vmem:[%s6564_s30 + $0xcc] sm:$0xf] }
 0x10c   : > { %v4021_v18 = vshrl.u32 %v7841_v58, 16  ;;  %v2333_v43 = vshll.u32 %v5276_v55, 16  ;;  %v5566_v37 = vrot.slane %v5550_v33, 9  ;;  %v3972_v9 = vsel %vm6590_vm4, %v7835_v12, %v7774_v42  ;;  %v7917_v55 = vld [vmem:[%s6564_s30 + $0xd0] sm:$0xf] }
 0x10d   : > { %6017 = vmatmul.mubr.msk.bf16.gmra.mrb[12].mxu0 %vm740_vm3, %v7772_v44  ;;  %v4471_v44 = vrot.slane %v8340_v23, 5  ;;  %v2332_v51 = vrot.slane %v2330_v61, 4  ;;  %v3990_v11 = vor.u32 %v7859_v62, %v7849_v21  ;;  %v4478_v47 = vrot.slane %v8344_v28, 5  ;;  %v6398_v21 = vld [vmem:[%s6564_s30 + $0x24] sm:$0xff]   ;;  %v6463_v27 = vld [vmem:[%s6564_s30 + $0xac] sm:$0xf] }
 0x10e   : > { %5863 = vmatmul.mubr.msk.bf16.gmra.mrb[28].mxu1 %vm740_vm3, %v5167_v56  ;;  %6020 = vmatprep.mubr.msk.bf16.mxu0 %vm740_vm3, %v7776_v41  ;;  %v8343_v56 = vld [vmem:[#allocation5_spill] sm:$0xff]  ;;  %v2335_v46 = vrot.slane %v2333_v43, 5  ;;  %v3982_v19 = vsel %vm6590_vm4, %v7857_v8, %v7786_v17  ;;  %v4481_v12 = vrot.slane %v7669_v2, 5  ;;  %v7925_v62 = vrot.slane %v4017_v50, 5  ;;  %v5551_v8 = vld [vmem:[%s6564_s30 + $0x90] sm:$0xe] }
 0x10f   : > { %5868 = vmatprep.mubr.msk.bf16.mxu1 %vm740_vm3, %v6396_v6  ;;  %v2352_v41 = vsel %vm6590_vm4, %v8343_v56, %v8342_v16  ;;  %v7899_v20 = vsel %vm6816_vm7, %v5565_v22, %v4471_v44  ;;  %v4473_v31 = vrot.slane %v4471_v44, 4  ;;  %v4000_v6 = vor.u32 %v7868_v52, %v7866_v4  ;;  %v7931_v52 = vld [vmem:[%s6564_s30 + $0xc8] sm:$0x1]  ;;  %v8346_v16 = vld [vmem:[#allocation2_spill] sm:$0xff] }
 0x110   : > { %v4023_v22 = vrot.slane %v4021_v18, 4  ;;  %v2336_v17 = vor.u32 %v2335_v46, %v2332_v51  ;;  %v4005_v23 = vrot.slane %v4003_v49, 5  ;;  %v4014_v44 = vor.u32 %v4013_v63, %v4010_v38  ;;  %v8347_v51 = vld [vmem:[#allocation3_spill] sm:$0xff] }
 0x111   : > { %v7921_v42 = vsel %vm6816_vm7, %v4473_v31, %v4474_v30  ;;  %v7935_v59 = vsel %vm6816_vm7, %v5566_v37, %v4478_v47  ;;  %v4480_v30 = vrot.slane %v4478_v47, 4  ;;  %v4032_v2 = vshrl.u32 %v5505_v29, 16 }
 0x112   : > { %v5582_v33 = vcombine.low %v7899_v20, %v7921_v42  ;;  %v4035_v50 = vshll.u32 %v5505_v29, 16  ;;  %v4041_v61 = vshll.u32 %v7917_v55, 16  ;;  %v2337_v18 = vrot.slane %v2336_v17, 4  ;;  %v6399_v29 = vld [vmem:[%s6564_s30 + $0x30] sm:$0xff]  }
 0x113   : > { %v4045_v49 = vshrl.u32 %v7917_v55, 16  ;;  %v7946_v38 = vsel %vm6816_vm7, %v4480_v30, %v4481_v12  ;;  %v5567_v63 = vrot.slane %v5551_v8, 9  ;;  %v4024_v56 = vor.u32 %v4023_v22, %v7925_v62 }
 0x114   : > { %v4027_v31 = vshll.u32 %v7931_v52, 16  ;;  %v5583_v37 = vcombine.low %v7935_v59, %v7946_v38  ;;  %v5521_v46 = vcombine.low %v3972_v9, %v3982_v19  ;;  %v3991_v28 = vrot.slane %v3990_v11, 4  ;;  %v5552_v11 = vld [vmem:[%s6564_s30 + $0x9c] sm:$0xe] }
 0x115   : > { %6021 = vmatmul.mubr.msk.bf16.gmra.mrb[16].mxu0 %vm740_vm3, %v7778_v5  ;;  %v8345_v5 = vld [vmem:[#allocation15_spill] sm:$0xff]  ;;  %v4001_v47 = vrot.slane %v4000_v6, 4  ;;  %v4015_v12 = vrot.slane %v4014_v44, 4  ;;  %v4488_v8 = vrot.slane %v7678_v3, 5  ;;  %v4034_v30 = vrot.slane %v4032_v2, 4  ;;  %v6400_v19 = vld [vmem:[%s6564_s30 + $0x3c] sm:$0xff]  }
 0x116   : > { %5869 = vmatmul.mubr.msk.bf16.vlgmr.msra.gmra.mrb[0].mxu1 %vm740_vm3, %v6397_v1  ;;  %6024 = vmatprep.mubr.msk.bf16.mxu0 %vm740_vm3, %v7780_v7  ;;  %v4485_v43 = vrot.slane %v8345_v5, 5  ;;  %v2342_v7 = vsel %vm6590_vm4, %v2337_v18, %v8347_v51  ;;  %v4037_v18 = vrot.slane %v4035_v50, 5  ;;  %v7969_v5 = vrot.slane %v4041_v61, 5 }
 0x117   : > { %6071 = vmatpush3.bf16.msra.mxu1 %v8346_v16  ;;  %5872 = vmatprep.mubr.msk.bf16.mxu1 %vm740_vm3, %v6398_v21  ;;  %v7958_v1 = vcombine.low %v2342_v7, %v2352_v41  ;;  %v7962_v21 = vld [vmem:[%s6564_s30 + $0xd4] sm:$0x1]  ;;  %v4047_v9 = vrot.slane %v4045_v49, 4  ;;  %v4025_v41 = vrot.slane %v4024_v56, 4  ;;  %v4029_v6 = vrot.slane %v4027_v31, 5 }
 0x118   : > { %v7966_v22 = vsel %vm6816_vm7, %v5567_v63, %v4485_v43  ;;  %v4487_v17 = vrot.slane %v4485_v43, 4  ;;  %v3996_v63 = vsel %vm6590_vm4, %v3991_v28, %v7866_v4  ;;  %v4006_v2 = vsel %vm6590_vm4, %v4001_v47, %v4005_v23  ;;  %v6450_v16 = vld [vmem:[%s6564_s30 + $0x1c] sm:$0xf]  ;;  %v5553_v28 = vld [vmem:[%s6564_s30 + $0xa8] sm:$0xe] }
 0x119   : > { %v4051_v50 = vshll.u32 %v7962_v21, 16  ;;  %v5568_v61 = vrot.slane %v5552_v11, 9  ;;  %v4492_v49 = vrot.slane %v7666_v25, 5  ;;  %v4020_v4 = vsel %vm6590_vm4, %v4015_v12, %v7925_v62  ;;  %v5541_v62 = vld [vmem:[%s6564_s30 + $0x18] sm:$0xe]  ;;  %v6401_v47 = vld [vmem:[%s6564_s30 + $0x48] sm:$0xff]  }
 0x11a   : > { %v7975_v44 = vsel %vm6816_vm7, %v4487_v17, %v4488_v8  ;;  %v4048_v43 = vor.u32 %v4047_v9, %v7969_v5  ;;  %v4495_v23 = vrot.slane %v7711_v57, 5  ;;  %v4030_v25 = vsel %vm6590_vm4, %v4025_v41, %v4029_v6  ;;  %v6451_v11 = vld [vmem:[%s6564_s30 + $0x20] sm:$0x1] }
 0x11b   : > { %v5584_v3 = vcombine.low %v7966_v22, %v7975_v44  ;;  %v4415_v56 = vrot.slane %v6450_v16, 5  ;;  %v8001_v31 = vsel %vm6816_vm7, %v5568_v61, %v4492_v49  ;;  %v4494_v51 = vrot.slane %v4492_v49, 4  ;;  %v5554_v49 = vld [vmem:[%s6564_s30 + $0xb4] sm:$0xe] }
 0x11c   : > { %v5522_v7 = vcombine.low %v3996_v63, %v4006_v2  ;;  %v4049_v17 = vrot.slane %v4048_v43, 4  ;;  %v5569_v41 = vrot.slane %v5553_v28, 9  ;;  %v4499_v6 = vrot.slane %v7714_v34, 5  ;;  %v5542_v2 = vld [vmem:[%s6564_s30 + $0x24] sm:$0xe] }
 0x11d   : > { %6025 = vmatmul.mubr.msk.bf16.gmra.mrb[20].mxu0 %vm740_vm3, %v7813_v24  ;;  %v4038_v24 = vor.u32 %v4037_v18, %v4034_v30  ;;  %v8006_v57 = vsel %vm6816_vm7, %v4494_v51, %v4495_v23  ;;  %v6402_v30 = vld [vmem:[%s6564_s30 + $0x54] sm:$0xff]   ;;  %v5557_v18 = vrot.slane %v5541_v62, 9  ;;  %v4417_v9 = vrot.slane %v4415_v56, 4  ;;  %v6454_v28 = vld [vmem:[%s6564_s30 + $0x2c] sm:$0x1] }
 0x11e   : > { %5873 = vmatmul.mubr.msk.bf16.gmra.mrb[4].mxu1 %vm740_vm3, %v6399_v29  ;;  %6028 = vmatprep.mubr.msk.bf16.mxu0 %vm740_vm3, %v5521_v46  ;;  %v4053_v46 = vrot.slane %v4051_v50, 5  ;;  %v5523_v29 = vcombine.low %v4020_v4, %v4030_v25  ;;  %v5585_v8 = vcombine.low %v8001_v31, %v8006_v57  ;;  %v4502_v63 = vrot.slane %v7724_v48, 5  ;;  %v6452_v50 = vld [vmem:[%s6564_s30 + $0x28] sm:$0xf]  ;;  %v5543_v25 = vld [vmem:[%s6564_s30 + $0x30] sm:$0xe] }
 0x11f   : > { %5876 = vmatprep.mubr.msk.bf16.mxu1 %vm740_vm3, %v6400_v19  ;;  %v4039_v12 = vrot.slane %v4038_v24, 4  ;;  %v4418_v19 = vrot.slane %v6451_v11, 5  ;;  %v4422_v61 = vrot.slane %v6452_v50, 5  ;;  %v8029_v48 = vsel %vm6816_vm7, %v5569_v41, %v4499_v6  ;;  %v6404_v11 = vld [vmem:[%s6564_s30 + $0x6c] sm:$0xff]   ;;  %v8348_v41 = vld [vmem:[#allocation6_spill] sm:$0xff] }
 0x120   : > { %v4054_v34 = vsel %vm6590_vm4, %v4049_v17, %v4053_v46  ;;  %v4501_v24 = vrot.slane %v4499_v6, 4  ;;  %v4416_v43 = vsel %vm6816_vm7, %v5557_v18, %v4415_v56  ;;  %v5558_v51 = vrot.slane %v5542_v2, 9  ;;  %v5555_v50 = vld [vmem:[%s6564_s30 + $0xc0] sm:$0xe]  ;;  %v6468_v31 = vld [vmem:[%s6564_s30 + $0xc8] sm:$0x1] }
 0x121   : > { %v4044_v4 = vsel %vm6590_vm4, %v4039_v12, %v7969_v5  ;;  %v4419_v23 = vsel %vm6816_vm7, %v4417_v9, %v4418_v19  ;;  %v6453_v5 = vld [vmem:[%s6564_s30 + $0x34] sm:$0xf]  ;;  %v6403_v12 = vld [vmem:[%s6564_s30 + $0x60] sm:$0xff]   ;;  %v5559_v18 = vrot.slane %v5543_v25, 9  ;;  %v4509_v9 = vrot.slane %v7838_v35, 5 }
 0x122   : > { %v4429_v16 = vrot.slane %v6453_v5, 5  ;;  %v8040_v62 = vsel %vm6816_vm7, %v4501_v24, %v4502_v63  ;;  %v5524_v46 = vcombine.low %v4044_v4, %v4054_v34  ;;  %v5574_v17 = vcombine.low %v4416_v43, %v4419_v23  ;;  %v5544_v24 = vld [vmem:[%s6564_s30 + $0x3c] sm:$0xe] }
 0x123   : > { %v5586_v56 = vcombine.low %v8029_v48, %v8040_v62  ;;  %v4432_v6 = vrot.slane %v8348_v41, 5  ;;  %v4423_v35 = vsel %vm6816_vm7, %v5558_v51, %v4422_v61  ;;  %v5571_v5 = vrot.slane %v5555_v50, 9 }
 0x124   : > { %v4431_v19 = vrot.slane %v4429_v16, 4  ;;  %v4430_v23 = vsel %vm6816_vm7, %v5559_v18, %v4429_v16  ;;  %v4516_v51 = vrot.slane %v7931_v52, 5  ;;  %v2493_v57 = vshll.u32 %v6468_v31, 16 }
 0x125   : > { %6029 = vmatmul.mubr.msk.bf16.gmra.mrb[24].mxu0 %vm740_vm3, %v5522_v7  ;;  %v5570_v7 = vrot.slane %v5554_v49, 9 }
 0x126   : > { %5877 = vmatmul.mubr.msk.bf16.gmra.mrb[8].mxu1 %vm740_vm3, %v6401_v47  ;;  %6032 = vmatprep.mubr.msk.bf16.mxu0 %vm740_vm3, %v5523_v29  ;;  %v4425_v47 = vrot.slane %v6454_v28, 5  ;;  %v4506_v29 = vrot.slane %v7789_v39, 5  ;;  %v8349_v39 = vld [vmem:[#allocation7_spill] sm:$0xff]  ;;  %v4433_v25 = vsel %vm6816_vm7, %v4431_v19, %v4432_v6  ;;  %v5560_v28 = vrot.slane %v5544_v24, 9 }
 0x127   : > { %5880 = vmatprep.mubr.msk.bf16.mxu1 %vm740_vm3, %v6402_v30  ;;  %v4424_v30 = vrot.slane %v4422_v61, 4  ;;  %v4436_v49 = vrot.slane %v8349_v39, 5  ;;  %v4513_v61 = vrot.slane %v7841_v58, 5  ;;  %v6455_v39 = vld [vmem:[%s6564_s30 + $0x70] sm:$0xf]  ;;  %v4520_v24 = vrot.slane %v7917_v55, 5 }
 0x128   : > { %v8052_v63 = vsel %vm6816_vm7, %v5570_v7, %v4506_v29  ;;  %v4508_v2 = vrot.slane %v4506_v29, 4  ;;  %v5273_v7 = vld [vmem:[%s6564_s30 + $0x6c] sm:$0xf]  ;;  %v8350_v29 = vld [vmem:[#allocation8_spill] sm:$0xff] }
 0x129   : > { %v4426_v34 = vsel %vm6816_vm7, %v4424_v30, %v4425_v47  ;;  %v4438_v47 = vrot.slane %v4436_v49, 4  ;;  %v6405_v30 = vld [vmem:[%s6564_s30 + $0x78] sm:$0xff]   ;;  %v8083_v16 = vsel %vm6816_vm7, %v5571_v5, %v4513_v61  ;;  %v4515_v18 = vrot.slane %v4513_v61, 4 }
 0x12a   : > { %v8059_v4 = vsel %vm6816_vm7, %v4508_v2, %v4509_v9  ;;  %v5576_v9 = vcombine.low %v4430_v23, %v4433_v25  ;;  %v2306_v19 = vshrl.u32 %v5273_v7, 16  ;;  %v2309_v41 = vshll.u32 %v5273_v7, 16 }
 0x12b   : > { %v5587_v43 = vcombine.low %v8052_v63, %v8059_v4  ;;  %v8088_v58 = vsel %vm6816_vm7, %v4515_v18, %v4516_v51  ;;  %v4437_v6 = vsel %vm6816_vm7, %v5560_v28, %v4436_v49  ;;  %v4523_v49 = vrot.slane %v7962_v21, 5  ;;  %v6407_v51 = vld [vmem:[%s6564_s30 + $0x90] sm:$0xff]   ;;  %v6408_v21 = vld [vmem:[%s6564_s30 + $0x9c] sm:$0xff]  }
 0x12c   : > { %v5588_v50 = vcombine.low %v8083_v16, %v8088_v58  ;;  %v2308_v23 = vrot.slane %v2306_v19, 4  ;;  %v2311_v25 = vrot.slane %v2309_v41, 5  ;;  %v4522_v7 = vrot.slane %v4520_v24, 4 }
 0x12d   : > { %6033 = vmatmul.mubr.msk.bf16.gmra.mrb[28].mxu0 %vm740_vm3, %v5524_v46  ;;  %v5575_v46 = vcombine.low %v4423_v35, %v4426_v34  ;;  %v2315_v35 = vshll.u32 %v6455_v39, 16  ;;  %v2319_v34 = vshrl.u32 %v6455_v39, 16 }
 0x12e   : > { %5881 = vmatmul.mubr.msk.bf16.gmra.mrb[12].mxu1 %vm740_vm3, %v6403_v12  ;;  %6038 = vmatprep.mubr.msk.bf16.mxu0 %vm740_vm3, %v5574_v17  ;;  %v4439_v12 = vrot.slane %v8350_v29, 5  ;;  %v5556_v17 = vld [vmem:[%s6564_s30 + $0xcc] sm:$0xe]  ;;  %v8110_v55 = vsel %vm6816_vm7, %v4522_v7, %v4523_v49 }
 0x12f   : > { %5884 = vmatprep.mubr.msk.bf16.mxu1 %vm740_vm3, %v6404_v11  ;;  %v6406_v11 = vld [vmem:[%s6564_s30 + $0x84] sm:$0xff]   ;;  %v5572_v52 = vrot.slane %v5556_v17, 9  ;;  %v2321_v28 = vrot.slane %v2319_v34, 4  ;;  %v6456_v17 = vld [vmem:[%s6564_s30 + $0x74] sm:$0x1] }
 0x130   : > { %v4440_v2 = vsel %vm6816_vm7, %v4438_v47, %v4439_v12  ;;  %v5279_v47 = vld [vmem:[%s6564_s30 + $0x84] sm:$0xf]  ;;  %v2312_v12 = vor.u32 %v2311_v25, %v2308_v23  ;;  %v6410_v34 = vld [vmem:[%s6564_s30 + $0xb4] sm:$0xff]  }
 0x131   : > { %v8105_v5 = vsel %vm6816_vm7, %v5572_v52, %v4520_v24  ;;  %v5577_v61 = vcombine.low %v4437_v6, %v4440_v2  ;;  %v2357_v18 = vshll.u32 %v5279_v47, 16  ;;  %v5282_v6 = vld [vmem:[%s6564_s30 + $0x90] sm:$0xf]  ;;  %v6409_v2 = vld [vmem:[%s6564_s30 + $0xa8] sm:$0xff]  }
 0x132   : > { %v5589_v29 = vcombine.low %v8105_v5, %v8110_v55  ;;  %v2313_v52 = vrot.slane %v2312_v12, 4  ;;  %v2378_v23 = vshrl.u32 %v5282_v6, 16  ;;  %v2381_v25 = vshll.u32 %v5282_v6, 16 }
 0x133   : > { %v2411_v12 = vshll.u32 %v6459_v60, 16 }
 0x134   : > { %v2383_v14 = vrot.slane %v2381_v25, 5  ;;  %v6462_v25 = vld [vmem:[%s6564_s30 + $0xa4] sm:$0x1] }
 0x135   : > { %6039 = vmatmul.mubr.msk.bf16.vlgmr.msra.gmra.mrb[0].mxu0 %vm740_vm3, %v5575_v46  ;;  %v2317_v46 = vrot.slane %v2315_v35, 5  ;;  %v5285_v35 = vld [vmem:[%s6564_s30 + $0x9c] sm:$0xf]  ;;  %v8152_v6 = vrot.slane %v2411_v12, 5 }
 0x136   : > { %5885 = vmatmul.mubr.msk.bf16.gmra.mrb[16].mxu1 %vm740_vm3, %v6405_v30  ;;  %6042 = vmatprep.mubr.msk.bf16.mxu0 %vm740_vm3, %v5576_v9  ;;  %v2325_v30 = vshll.u32 %v6456_v17, 16  ;;  %v2354_v9 = vshrl.u32 %v5279_v47, 16  ;;  %v2405_v47 = vshll.u32 %v5285_v35, 16  ;;  %v6460_v17 = vld [vmem:[%s6564_s30 + $0x8c] sm:$0x1] }
 0x137   : > { %5888 = vmatprep.mubr.msk.bf16.mxu1 %vm740_vm3, %v6406_v11  ;;  %v2322_v13 = vor.u32 %v2321_v28, %v2317_v46  ;;  %v6457_v11 = vld [vmem:[%s6564_s30 + $0x88] sm:$0xf]  ;;  %v2318_v7 = vsel %vm6590_vm4, %v2313_v52, %v2317_v46 }
 0x138   : > { %v2363_v19 = vshll.u32 %v6457_v11, 16  ;;  %v2367_v41 = vshrl.u32 %v6457_v11, 16  ;;  %v2327_v0 = vrot.slane %v2325_v30, 5  ;;  %v2356_v36 = vrot.slane %v2354_v9, 4 }
 0x139   : > { %v2323_v39 = vrot.slane %v2322_v13, 4  ;;  %v2373_v30 = vshll.u32 %v6460_v17, 16  ;;  %v2380_v9 = vrot.slane %v2378_v23, 4  ;;  %v2407_v11 = vrot.slane %v2405_v47, 5 }
 0x13a   : > { %v8129_v24 = vrot.slane %v2363_v19, 5  ;;  %v2369_v49 = vrot.slane %v2367_v41, 4  ;;  %v6411_v19 = vld [vmem:[%s6564_s30 + $0xc0] sm:$0xff]  }
 0x13b   : > { %v2328_v46 = vsel %vm6590_vm4, %v2323_v39, %v2327_v0  ;;  %v5288_v39 = vld [vmem:[%s6564_s30 + $0xa8] sm:$0xf] }
 0x13c   : > { %v2370_v13 = vor.u32 %v2369_v49, %v8129_v24  ;;  %v5306_v41 = vcombine.low %v2318_v7, %v2328_v46  ;;  %v2421_v7 = vshll.u32 %v6462_v25, 16  ;;  %v2429_v45 = vshll.u32 %v5288_v39, 16 }
 0x13d   : > { %6043 = vmatmul.mubr.msk.bf16.gmra.mrb[4].mxu0 %vm740_vm3, %v5577_v61  ;;  %v6458_v61 = vld [vmem:[%s6564_s30 + $0x94] sm:$0xf] }
 0x13e   : > { %5889 = vmatmul.mubr.msk.bf16.gmra.mrb[20].mxu1 %vm740_vm3, %v6407_v51  ;;  %6046 = vmatprep.mubr.msk.bf16.mxu0 %vm740_vm3, %v5578_v10  ;;  %v2359_v10 = vrot.slane %v2357_v18, 5  ;;  %v2387_v51 = vshll.u32 %v6458_v61, 16  ;;  %v2391_v28 = vshrl.u32 %v6458_v61, 16  ;;  %v2371_v0 = vrot.slane %v2370_v13, 4 }
 0x13f   : > { %5892 = vmatprep.mubr.msk.bf16.mxu1 %vm740_vm3, %v6408_v21  ;;  %v2402_v21 = vshrl.u32 %v5285_v35, 16  ;;  %v6461_v35 = vld [vmem:[%s6564_s30 + $0x98] sm:$0x1]  ;;  %v2426_v61 = vshrl.u32 %v5288_v39, 16  ;;  %v5294_v39 = vld [vmem:[%s6564_s30 + $0xc0] sm:$0xf] }
 0x140   : > { %v2360_v15 = vor.u32 %v2359_v10, %v2356_v36  ;;  %v8149_v26 = vrot.slane %v2387_v51, 5  ;;  %v2375_v36 = vrot.slane %v2373_v30, 5  ;;  %v2384_v10 = vor.u32 %v2383_v14, %v2380_v9  ;;  %v5291_v51 = vld [vmem:[%s6564_s30 + $0xb4] sm:$0xf] }
 0x141   : > { %v2404_v18 = vrot.slane %v2402_v21, 4  ;;  %v2439_v21 = vshrl.u32 %v6463_v27, 16  ;;  %v2450_v20 = vshrl.u32 %v5291_v51, 16  ;;  %v2453_v42 = vshll.u32 %v5291_v51, 16 }
 0x142   : > { %v2361_v52 = vrot.slane %v2360_v15, 4  ;;  %v2376_v46 = vsel %vm6590_vm4, %v2371_v0, %v2375_v36  ;;  %v2385_v15 = vrot.slane %v2384_v10, 4  ;;  %v2423_v30 = vrot.slane %v2421_v7, 5 }
 0x143   : > { %v2408_v23 = vor.u32 %v2407_v11, %v2404_v18  ;;  %v2428_v9 = vrot.slane %v2426_v61, 4  ;;  %v2441_v11 = vrot.slane %v2439_v21, 4  ;;  %v6467_v61 = vld [vmem:[%s6564_s30 + $0xbc] sm:$0x1] }
 0x144   : > { %v2366_v47 = vsel %vm6590_vm4, %v2361_v52, %v8129_v24  ;;  %v2390_v0 = vsel %vm6590_vm4, %v2385_v15, %v8149_v26  ;;  %v2469_v22 = vshll.u32 %v6467_v61, 16 }
 0x145   : > { %6047 = vmatmul.mubr.msk.bf16.gmra.mrb[8].mxu0 %vm740_vm3, %v5579_v40  ;;  %v2415_v40 = vshrl.u32 %v6459_v60, 16  ;;  %v2409_v17 = vrot.slane %v2408_v23, 4  ;;  %v5308_v24 = vcombine.low %v2366_v47, %v2376_v46 }
 0x146   : > { %5893 = vmatmul.mubr.msk.bf16.gmra.mrb[24].mxu1 %vm740_vm3, %v6409_v2  ;;  %6050 = vmatprep.mubr.msk.bf16.mxu0 %vm740_vm3, %v5580_v54  ;;  %v2393_v54 = vrot.slane %v2391_v28, 4 }
 0x147   : > { %5896 = vmatprep.mubr.msk.bf16.mxu1 %vm740_vm3, %v6410_v34  ;;  %v2417_v2 = vrot.slane %v2415_v40, 4  ;;  %v2397_v34 = vshll.u32 %v6461_v35, 16  ;;  %v2414_v10 = vsel %vm6590_vm4, %v2409_v17, %v8152_v6  ;;  %v2495_v17 = vrot.slane %v2493_v57, 5 }
 0x148   : > { %v2394_v49 = vor.u32 %v2393_v54, %v8149_v26  ;;  %v2431_v54 = vrot.slane %v2429_v45, 5  ;;  %v6465_v26 = vld [vmem:[%s6564_s30 + $0xb0] sm:$0x1] }
 0x149   : > { %v2418_v28 = vor.u32 %v2417_v2, %v8152_v6  ;;  %v2399_v60 = vrot.slane %v2397_v34, 5  ;;  %v2445_v35 = vshll.u32 %v6465_v26, 16  ;;  %v2474_v34 = vshrl.u32 %v5294_v39, 16 }
 0x14a   : > { %v2395_v13 = vrot.slane %v2394_v49, 4  ;;  %v2432_v38 = vor.u32 %v2431_v54, %v2428_v9  ;;  %v2477_v6 = vshll.u32 %v5294_v39, 16  ;;  %v6466_v49 = vld [vmem:[%s6564_s30 + $0xc4] sm:$0xf] }
 0x14b   : > { %v2419_v14 = vrot.slane %v2418_v28, 4  ;;  %v2483_v23 = vshll.u32 %v6466_v49, 16  ;;  %v2487_v25 = vshrl.u32 %v6466_v49, 16  ;;  %v2447_v45 = vrot.slane %v2445_v35, 5 }
 0x14c   : > { %v2400_v36 = vsel %vm6590_vm4, %v2395_v13, %v2399_v60  ;;  %v2433_v51 = vrot.slane %v2432_v38, 4  ;;  %v2471_v60 = vrot.slane %v2469_v22, 5 }
 0x14d   : > { %6051 = vmatmul.mubr.msk.bf16.gmra.mrb[12].mxu0 %vm740_vm3, %v5581_v53  ;;  %v2435_v53 = vshll.u32 %v6463_v27, 16  ;;  %v2424_v59 = vsel %vm6590_vm4, %v2419_v14, %v2423_v30  ;;  %v5309_v44 = vcombine.low %v2390_v0, %v2400_v36  ;;  %v2476_v27 = vrot.slane %v2474_v34, 4 }
 0x14e   : > { %5897 = vmatmul.mubr.msk.bf16.gmra.mrb[28].mxu1 %vm740_vm3, %v6411_v19  ;;  %6054 = vmatprep.mubr.msk.bf16.mxu0 %vm740_vm3, %v5582_v33  ;;  %v6464_v33 = vld [vmem:[%s6564_s30 + $0xb8] sm:$0xf]  ;;  %v2452_v19 = vrot.slane %v2450_v20, 4  ;;  %v2485_v21 = vrot.slane %v2483_v23, 5  ;;  %v2489_v47 = vrot.slane %v2487_v25, 4 }
 0x14f   : > { %5918 = vmatprep.mubr.msk.bf16.mxu1 %vm740_vm3, %v5306_v41  ;;  %v2459_v12 = vshll.u32 %v6464_v33, 16  ;;  %v2463_v40 = vshrl.u32 %v6464_v33, 16  ;;  %v2437_v18 = vrot.slane %v2435_v53, 5  ;;  %v2455_v41 = vrot.slane %v2453_v42, 5 }
 0x150   : > { %v2479_v53 = vrot.slane %v2477_v6, 5 }
 0x151   : > { %v2461_v52 = vrot.slane %v2459_v12, 5  ;;  %v2465_v2 = vrot.slane %v2463_v40, 4  ;;  %v2438_v20 = vsel %vm6590_vm4, %v2433_v51, %v2437_v18  ;;  %v2490_v12 = vor.u32 %v2489_v47, %v2485_v21 }
 0x152   : > { %v2480_v33 = vor.u32 %v2479_v53, %v2476_v27 }
 0x153   : > { %v2466_v7 = vor.u32 %v2465_v2, %v2461_v52  ;;  %v2491_v13 = vrot.slane %v2490_v12, 4 }
 0x154   : > { %v2481_v40 = vrot.slane %v2480_v33, 4 }
 0x155   : > { %6055 = vmatmul.mubr.msk.bf16.gmra.mrb[16].mxu0 %vm740_vm3, %v5583_v37  ;;  %v2442_v37 = vor.u32 %v2441_v11, %v2437_v18  ;;  %v2467_v15 = vrot.slane %v2466_v7, 4  ;;  %v2496_v9 = vsel %vm6590_vm4, %v2491_v13, %v2495_v17 }
 0x156   : > { %5919 = vmatmul.mubr.msk.bf16.vlgmr.msra.gmra.mrb[16].mxu1 %vm740_vm3, %v7958_v1  ;;  %6058 = vmatprep.mubr.msk.bf16.mxu0 %vm740_vm3, %v5584_v3  ;;  %v2456_v1 = vor.u32 %v2455_v41, %v2452_v19  ;;  %v5310_v3 = vcombine.low %v2414_v10, %v2424_v59  ;;  %v2486_v30 = vsel %vm6590_vm4, %v2481_v40, %v2485_v21 }
 0x157   : > { %5922 = vmatprep.mubr.msk.bf16.mxu1 %vm740_vm3, %v5308_v24  ;;  %v2443_v28 = vrot.slane %v2442_v37, 4  ;;  %v2472_v48 = vsel %vm6590_vm4, %v2467_v15, %v2471_v60  ;;  %v5313_v14 = vcombine.low %v2486_v30, %v2496_v9 }
 0x158   : > { %v2457_v46 = vrot.slane %v2456_v1, 4 }
 0x159   : > { %v2448_v42 = vsel %vm6590_vm4, %v2443_v28, %v2447_v45 }
 0x15a   : > { %v5311_v62 = vcombine.low %v2438_v20, %v2448_v42 }
 0x15d   : > { %6059 = vmatmul.mubr.msk.bf16.gmra.mrb[20].mxu0 %vm740_vm3, %v5585_v8  ;;  %v2462_v8 = vsel %vm6590_vm4, %v2457_v46, %v2461_v52 }
 0x15e   : > { %5923 = vmatmul.mubr.msk.bf16.gmra.mrb[20].mxu1 %vm740_vm3, %v5309_v44  ;;  %6062 = vmatprep.mubr.msk.bf16.mxu0 %vm740_vm3, %v5586_v56  ;;  %v5312_v56 = vcombine.low %v2462_v8, %v2472_v48 }
 0x15f   : > { %5926 = vmatprep.mubr.msk.bf16.mxu1 %vm740_vm3, %v5310_v3 }
 0x165   : > { %6063 = vmatmul.mubr.msk.bf16.gmra.mrb[24].mxu0 %vm740_vm3, %v5587_v43 }
 0x166   : > { %5927 = vmatmul.mubr.msk.bf16.gmra.mrb[24].mxu1 %vm740_vm3, %v5311_v62  ;;  %6066 = vmatprep.mubr.msk.bf16.mxu0 %vm740_vm3, %v5588_v50 }
 0x167   : > { %5930 = vmatprep.mubr.msk.bf16.mxu1 %vm740_vm3, %v5312_v56 }
 0x16d   : > { %6067 = vmatmul.mubr.msk.bf16.gmra.mrb[28].mxu0 %vm740_vm3, %v5589_v29 }
 0x16e   : > { %5931 = vmatmul.mubr.msk.bf16.gmra.mrb[28].mxu1 %vm740_vm3, %v5313_v14 }
 0x1e9   : > { %v5870_v63 = vpop.f32.mrb[0].mxu1 }
 0x1ea   : > { %v1906_v4 = vpop.f32.mrb[1].mxu1 }
 0x1eb   : > { %v5871_v43 = vpop.f32.mrb[2].mxu1 }
 0x1ec   : > { %v1909_v16 = vpop.f32.mrb[3].mxu1 }
 0x1f1   : > { %v5874_v58 = vpop.f32.mrb[4].mxu1 }
 0x1f2   : > { %v1922_v50 = vpop.f32.mrb[5].mxu1 }
 0x1f3   : > { %v5875_v54 = vpop.f32.mrb[6].mxu1 }
 0x1f4   : > { %v1925_v18 = vpop.f32.mrb[7].mxu1 }
 0x1f9   : > { %v5878_v11 = vpop.f32.mrb[8].mxu1 }
 0x1fa   : > { %v1938_v24 = vpop.f32.mrb[9].mxu1 }
 0x1fb   : > { %v5879_v32 = vpop.f32.mrb[10].mxu1 }
 0x1fc   : > { %v1941_v19 = vpop.f32.mrb[11].mxu1 }
 0x201   : > { %v5882_v41 = vpop.f32.mrb[12].mxu1 }
 0x202   : > { %v1954_v52 = vpop.f32.mrb[13].mxu1 }
 0x203   : > { %v5883_v2 = vpop.f32.mrb[14].mxu1 }
 0x204   : > { %v1957_v5 = vpop.f32.mrb[15].mxu1 }
 0x208   : > { %v6040_v55 = vpop.f32.mrb[0].mxu0 }
 0x209   : > { %v6072_v29 = vadd.f32 %v6040_v55, %v5870_v63  ;;  %v4660_v39 = vpop.f32.mrb[1].mxu0 }
 0x20a   : > { %v6041_v0 = vpop.f32.mrb[2].mxu0  ;;  %v6073_v36 = vadd.f32 %v4660_v39, %v1906_v4 }
 0x20b   : > { %v6074_v10 = vadd.f32 %v6041_v0, %v5871_v43  ;;  %v4663_v59 = vpop.f32.mrb[3].mxu0 }
 0x20c   : > { %v6075_v38 = vadd.f32 %v4663_v59, %v1909_v16  ;;  %4819 = vxpose.xlu0.b32.start [1/16] (narrow) %v6073_v36, 8 }
 0x210   : > { %v6044_v37 = vpop.f32.mrb[4].mxu0  ;;  %4820 = vxpose.xlu0.b32.cont [2/16] (narrow) %v6075_v38, 8 }
 0x211   : > { %v6076_v26 = vadd.f32 %v6044_v37, %v5874_v58  ;;  %v4676_v35 = vpop.f32.mrb[5].mxu0 }
 0x212   : > { %v6077_v34 = vadd.f32 %v4676_v35, %v1922_v50  ;;  %v6045_v6 = vpop.f32.mrb[6].mxu0  ;;  %v6493_v50 = vmov 0.0  }
 0x213   : > { %v6078_v49 = vadd.f32 %v6045_v6, %v5875_v54  ;;  %v4679_v23 = vpop.f32.mrb[7].mxu0  ;;  %248 = vst.msk [vmem:[%s8251_s26] sm:$0xff] %vm247_vm8, %v6493_v50  ;;  %249 = vst.msk [vmem:[%s241_s5] sm:$0xff] %vm247_vm8, %v6493_v50 }
 0x214   : > { %v6079_v25 = vadd.f32 %v4679_v23, %v1925_v18  ;;  %4821 = vxpose.xlu0.b32.cont [3/16] (narrow) %v6072_v29, 8 }
 0x218   : > { %v6048_v1 = vpop.f32.mrb[8].mxu0  ;;  %4822 = vxpose.xlu0.b32.cont [4/16] (narrow) %v6074_v10, 8 }
 0x219   : > { %v6080_v7 = vadd.f32 %v6048_v1, %v5878_v11  ;;  %v4692_v61 = vpop.f32.mrb[9].mxu0 }
 0x21a   : > { %v6081_v22 = vadd.f32 %v4692_v61, %v1938_v24  ;;  %v6049_v44 = vpop.f32.mrb[10].mxu0 }
 0x21b   : > { %v6082_v3 = vadd.f32 %v6049_v44, %v5879_v32  ;;  %v4695_v51 = vpop.f32.mrb[11].mxu0 }
 0x21c   : > { %v6083_v28 = vadd.f32 %v4695_v51, %v1941_v19  ;;  %4823 = vxpose.xlu0.b32.cont [5/16] (narrow) %v6077_v34, 8 }
 0x220   : > { %v6052_v45 = vpop.f32.mrb[12].mxu0  ;;  %4824 = vxpose.xlu0.b32.cont [6/16] (narrow) %v6079_v25, 8 }
 0x221   : > { %v8240_v27 = vadd.f32 %v6052_v45, %v5882_v41  ;;  %v4708_v53 = vpop.f32.mrb[13].mxu0  ;;  %v4892_v45 = vld [vmem:[%s8251_s26] sm:$0xff] }
 0x222   : > { %v6085_v21 = vadd.f32 %v4708_v53, %v1954_v52  ;;  %v6053_v47 = vpop.f32.mrb[14].mxu0  ;;  %v4899_v53 = vld [vmem:[%s241_s5] sm:$0xff] }
 0x223   : > { %v8242_v46 = vadd.f32 %v6053_v47, %v5883_v2  ;;  %v4711_v15 = vpop.f32.mrb[15].mxu0 }
 0x224   : > { %v6087_v60 = vadd.f32 %v4711_v15, %v1957_v5  ;;  %4825 = vxpose.xlu0.b32.cont [7/16] (narrow) %v6076_v26, 8 }
 0x228   : > { %v6056_v20 = vpop.f32.mrb[16].mxu0  ;;  %4826 = vxpose.xlu0.b32.cont [8/16] (narrow) %v6078_v49, 8 }
 0x229   : > { %v5920_v42 = vpop.f32.mrb[16].mxu1  ;;  %v4724_v33 = vpop.f32.mrb[17].mxu0 }
 0x22a   : > { %v6088_v12 = vadd.f32 %v6056_v20, %v5920_v42  ;;  %v2696_v31 = vpop.f32.mrb[17].mxu1  ;;  %v6057_v57 = vpop.f32.mrb[18].mxu0 }
 0x22b   : > { %v5921_v8 = vpop.f32.mrb[18].mxu1  ;;  %v4727_v48 = vpop.f32.mrb[19].mxu0  ;;  %v6089_v62 = vadd.f32 %v4724_v33, %v2696_v31 }
 0x22c   : > { %v6090_v56 = vadd.f32 %v6057_v57, %v5921_v8  ;;  %v2699_v40 = vpop.f32.mrb[19].mxu1  ;;  %4827 = vxpose.xlu0.b32.cont [9/16] (narrow) %v6081_v22, 8 }
 0x22d   : > { %v6091_v13 = vadd.f32 %v4727_v48, %v2699_v40  ;;  %4851 = vxpose.xlu1.b32.start [1/16] (narrow) %v6089_v62, 8 }
 0x230   : > { %v6060_v17 = vpop.f32.mrb[20].mxu0  ;;  %4828 = vxpose.xlu0.b32.cont [10/16] (narrow) %v6083_v28, 8 }
 0x231   : > { %4852 = vxpose.xlu1.b32.cont [2/16] (narrow) %v6091_v13, 8  ;;  %v5924_v30 = vpop.f32.mrb[20].mxu1  ;;  %v4740_v9 = vpop.f32.mrb[21].mxu0 }
 0x232   : > { %v6092_v14 = vadd.f32 %v6060_v17, %v5924_v30  ;;  %v2712_v63 = vpop.f32.mrb[21].mxu1  ;;  %v6061_v4 = vpop.f32.mrb[22].mxu0 }
 0x233   : > { %v6093_v43 = vadd.f32 %v4740_v9, %v2712_v63  ;;  %v5925_v16 = vpop.f32.mrb[22].mxu1  ;;  %v4743_v58 = vpop.f32.mrb[23].mxu0 }
 0x234   : > { %v6094_v54 = vadd.f32 %v6061_v4, %v5925_v16  ;;  %v2715_v18 = vpop.f32.mrb[23].mxu1  ;;  %4829 = vxpose.xlu0.b32.cont [11/16] (narrow) %v6080_v7, 8 }
 0x235   : > { %v6095_v11 = vadd.f32 %v4743_v58, %v2715_v18  ;;  %4853 = vxpose.xlu1.b32.cont [3/16] (narrow) %v6088_v12, 8 }
 0x238   : > { %v6064_v24 = vpop.f32.mrb[24].mxu0  ;;  %4830 = vxpose.xlu0.b32.cont [12/16] (narrow) %v6082_v3, 8 }
 0x239   : > { %4854 = vxpose.xlu1.b32.cont [4/16] (narrow) %v6090_v56, 8  ;;  %v5928_v32 = vpop.f32.mrb[24].mxu1  ;;  %v4756_v19 = vpop.f32.mrb[25].mxu0 }
 0x23a   : > { %v6096_v41 = vadd.f32 %v6064_v24, %v5928_v32  ;;  %v2728_v52 = vpop.f32.mrb[25].mxu1  ;;  %v6065_v2 = vpop.f32.mrb[26].mxu0 }
 0x23b   : > { %v6097_v5 = vadd.f32 %v4756_v19, %v2728_v52  ;;  %v5929_v55 = vpop.f32.mrb[26].mxu1  ;;  %v4759_v29 = vpop.f32.mrb[27].mxu0 }
 0x23c   : > { %v6098_v39 = vadd.f32 %v6065_v2, %v5929_v55  ;;  %v2731_v0 = vpop.f32.mrb[27].mxu1  ;;  %4831 = vxpose.xlu0.b32.cont [13/16] (narrow) %v6085_v21, 8 }
 0x23d   : > { %v6099_v36 = vadd.f32 %v4759_v29, %v2731_v0  ;;  %4855 = vxpose.xlu1.b32.cont [5/16] (narrow) %v6093_v43, 8 }
 0x240   : > { %v6068_v10 = vpop.f32.mrb[28].mxu0  ;;  %4832 = vxpose.xlu0.b32.cont [14/16] (narrow) %v6087_v60, 8 }
 0x241   : > { %4856 = vxpose.xlu1.b32.cont [6/16] (narrow) %v6095_v11, 8  ;;  %v5932_v59 = vpop.f32.mrb[28].mxu1  ;;  %v4772_v38 = vpop.f32.mrb[29].mxu0 }
 0x242   : > { %v6100_v37 = vadd.f32 %v6068_v10, %v5932_v59  ;;  %v2744_v26 = vpop.f32.mrb[29].mxu1  ;;  %v6069_v35 = vpop.f32.mrb[30].mxu0 }
 0x243   : > { %v6101_v34 = vadd.f32 %v4772_v38, %v2744_v26  ;;  %v5933_v6 = vpop.f32.mrb[30].mxu1  ;;  %v4775_v49 = vpop.f32.mrb[31].mxu0 }
 0x244   : > { %v6102_v23 = vadd.f32 %v6069_v35, %v5933_v6  ;;  %v2747_v25 = vpop.f32.mrb[31].mxu1  ;;  %4833 = vxpose.xlu0.b32.cont [15/16] (narrow) %v8240_v27, 8 }
 0x245   : > { %v6103_v1 = vadd.f32 %v4775_v49, %v2747_v25  ;;  %4857 = vxpose.xlu1.b32.cont [7/16] (narrow) %v6092_v14, 8 }
 0x248   : > { %4834 = vxpose.xlu0.b32.end [16/16] (narrow) %v8242_v46, 8 }
 0x249   : > { %4858 = vxpose.xlu1.b32.cont [8/16] (narrow) %v6094_v54, 8 }
 0x24d   : > { %4859 = vxpose.xlu1.b32.cont [9/16] (narrow) %v6097_v5, 8 }
 0x251   : > { %4860 = vxpose.xlu1.b32.cont [10/16] (narrow) %v6099_v36, 8 }
 0x255   : > { %4861 = vxpose.xlu1.b32.cont [11/16] (narrow) %v6096_v41, 8 }
 0x259   : > { %4862 = vxpose.xlu1.b32.cont [12/16] (narrow) %v6098_v39, 8 }
 0x25d   : > { %4863 = vxpose.xlu1.b32.cont [13/16] (narrow) %v6101_v34, 8 }
 0x261   : > { %4864 = vxpose.xlu1.b32.cont [14/16] (narrow) %v6103_v1, 8 }
 0x265   : > { %4865 = vxpose.xlu1.b32.cont [15/16] (narrow) %v6100_v37, 8 }
 0x269   : > { %4866 = vxpose.xlu1.b32.end [16/16] (narrow) %v6102_v23, 8 }
 0x28c   : > { %v4835_v7 = vpop.trf.xlu0 }
 0x28d   : > { %v4900_v61 = vmul.f32 %v4835_v7, %v4835_v7 }
 0x2ad   : > { %v4867_v22 = vpop.trf.xlu1 }
 0x2ae   : > { %v5610_v44 = vpack.c.bf16 %v4867_v22, %v4835_v7  ;;  %v4893_v3 = vadd.f32 %v4867_v22, %v4835_v7  ;;  %v4901_v51 = vmul.f32 %v4867_v22, %v4867_v22 }
 0x2b0   : > { %4891 = vst [vmem:[%s232_s28] sm:$0xff] %v5610_v44  ;;  %4894 = vadd.xlane.f32.xlu0 %v4893_v3  ;;  %v4902_v28 = vadd.f32 %v4901_v51, %v4900_v61 }
 0x2b2   : > { %4903 = vadd.xlane.f32.xlu1 %v4902_v28 }
 0x33d   : > { %v4895_v27 = vpop.xlane.xlu0 %4894 }
 0x33e   : > { %v4896_v21 = vadd.f32 %v4895_v27, %v4892_v45 }
 0x33f   : > { %v4904_v47 = vpop.xlane.xlu1 %4903 }
 0x340   : > { %4898 = vst.msk [vmem:[%s8251_s26] sm:$0xff] %vm247_vm8, %v4896_v21  ;;  %v4905_v46 = vadd.f32 %v4904_v47, %v4899_v53 }
 0x342   : > { %4906 = vst.msk [vmem:[%s241_s5] sm:$0xff] %vm247_vm8, %v4905_v46 }
 0x343 PF: > { %s15_s17 = sadd.s32 1, %s6491_s17   ;;  %s8351_s15 = smov %s6487_s16 }
 0x344   : > { %p12_p5 = scmp.ge.s32.totalorder %s15_s17, 4   ;;  %s8352_s16 = smov %s8354_s18 }
 0x346   :  { %14 = sbr.rel (!%p12_p5) target bundleno = 2 (0x2), region = 97 }

</bundles_post_ra>
